<compile_context>
chip_gen: v7x
topology: tpu7x:2x2x1
jax: 0.10.0
libtpu: 0.0.40
codegen_flags: <defaults>
</compile_context>

<pallas_src>
import functools

import jax
import jax.numpy as jnp
from jax.experimental import pallas as pl
from jax.experimental.pallas import tpu as pltpu


LEAKY_SLOPE = 0.2
IN_EPS = 1e-5
# Spatial sizes (Ho*Wo) up to this use a single full-extent M block, which
# enables fusing InstanceNorm+LeakyReLU into the conv epilogue and avoids any
# M-tail padding / post-slice.
M_SINGLE_TILE_MAX = 2048


@functools.lru_cache(maxsize=None)
def _vmem_limit_bytes():
    """Generation-aware scoped-VMEM budget: ~3/4 of physical, capped at 96 MiB
    (=> ~48 MiB on v7x's 64 MiB VMEM, ~96 MiB on v5e/v6e's 128 MiB)."""
    try:
        cap = int(pltpu.get_tpu_info().vmem_capacity_bytes)
        if cap <= 0:
            cap = 64 * 1024 * 1024
    except Exception:
        cap = 64 * 1024 * 1024
    return min((cap * 3) // 4, 96 * 1024 * 1024)


# ----------------------------------------------------------------------------
# Pallas kernels
# ----------------------------------------------------------------------------

def _conv_kernel(*refs, act, has_bias, hw, eps, slope):
    """One (Cout_t, tm) output tile: W(Cout_t,K) @ A(K,tm) on the MXU with f32
    accumulation, plus a fused epilogue:
      act == "leaky"    : bias + LeakyReLU(0.2)
      act == "none"     : bias only (if present)
      act == "in_leaky" : InstanceNorm2d(affine=False) + LeakyReLU(0.2), valid
                          because tm == full spatial extent for this layer.
    The lane axis is the (large) spatial dim -> lane-dense loads/stores."""
    if has_bias:
        a_ref, w_ref, b_ref, o_ref = refs
    else:
        a_ref, w_ref, o_ref = refs
        b_ref = None

    acc = jnp.dot(w_ref[...], a_ref[0], preferred_element_type=jnp.float32)
    if has_bias:
        acc = acc + b_ref[...]                        # (Cout_t, 1) broadcast
    if act == "leaky":
        acc = jnp.where(acc > 0, acc, slope * acc)
    elif act == "in_leaky":
        inv_hw = 1.0 / hw
        mean = jnp.sum(acc, axis=1, keepdims=True) * inv_hw
        cen = acc - mean                               # two-pass variance, f32
        var = jnp.sum(cen * cen, axis=1, keepdims=True) * inv_hw
        acc = cen * jax.lax.rsqrt(var + eps)
        acc = jnp.where(acc > 0, acc, slope * acc)
    o_ref[0] = acc.astype(o_ref.dtype)


def _in_leaky_kernel(x_ref, o_ref, *, inv_hw, eps, slope):
    """Standalone fused InstanceNorm2d(affine=False) + LeakyReLU(0.2) for one
    (batch, channel-tile) block; spatial is the lane axis, stats in f32, no
    padding mask (full-extent blocks)."""
    x = x_ref[0].astype(jnp.float32)                  # (ct, hw)
    mean = jnp.sum(x, axis=1, keepdims=True) * inv_hw
    cen = x - mean
    var = jnp.sum(cen * cen, axis=1, keepdims=True) * inv_hw
    y = cen * jax.lax.rsqrt(var + eps)
    o_ref[0] = jnp.where(y > 0, y, slope * y).astype(o_ref.dtype)


# ----------------------------------------------------------------------------
# Pallas wrappers
# ----------------------------------------------------------------------------

def conv2d(x_nchw, w, b, *, stride, padding, act="none", out_dtype=jnp.bfloat16):
    """Conv2d with PyTorch weight layout (Cout, Cin, kh, kw), NCHW activations.
    Patch matrix built per batch as (K, M) in bf16 so M (spatial) is the lane
    dim; bias / LeakyReLU / fused InstanceNorm+LeakyReLU live in the matmul
    epilogue.  act in {"none", "leaky", "in_leaky"}."""
    x = x_nchw.astype(jnp.bfloat16)                   # cast BEFORE patch extraction
    if padding:
        x = jnp.pad(x, ((0, 0), (0, 0), (padding, padding), (padding, padding)))
    B, Cin, Hp, Wp = x.shape
    Cout, _, kh, kw = w.shape
    Ho = (Hp - kh) // stride + 1
    Wo = (Wp - kw) // stride + 1
    M = Ho * Wo
    K = Cin * kh * kw

    # TODO(synk): the (K, M) patch matrix is still materialized by XLA in HBM;
    # folding the strided taps into the kernel (manual strided DMA) would cut
    # conv input traffic by another ~kh*kw x.
    taps = []
    for i in range(kh):
        for j in range(kw):
            taps.append(x[:, :, i:i + (Ho - 1) * stride + 1:stride,
                             j:j + (Wo - 1) * stride + 1:stride])
    cols = jnp.stack(taps, axis=2).reshape(B, K, M)    # K ordered (Cin, kh, kw)
    wmat = w.reshape(Cout, K).astype(jnp.bfloat16)     # same K ordering

    # --- Cout tiling: full extent for the small channel counts here; 256-wide
    # for wide production layers (fills a 256-col MXU on v6e/v7x). -------------
    if Cout > 256 and Cout % 256 == 0:
        tn = 256
    else:
        tn = Cout
    n_ct = Cout // tn

    # --- M (spatial) tiling: single full-extent block when small (no tail);
    # otherwise 128-aligned tiles budgeted against the scoped-VMEM limit. ------
    vmem = _vmem_limit_bytes()
    if M <= M_SINGLE_TILE_MAX or M % 128 != 0:
        # TODO(synk): very large non-128-multiple M would need a masked tail tile.
        tm, n_mt = M, 1
    else:
        tm = 512
        budget = vmem // 2
        while tm > 128 and (M % tm != 0 or 2 * tm * (K * 2 + tn * 4) > budget):
            tm //= 2
        n_mt = M // tm
    if act == "in_leaky":
        assert n_mt == 1, "fused InstanceNorm needs the full spatial extent per block"

    has_bias = b is not None
    kern = functools.partial(_conv_kernel, act=act, has_bias=has_bias,
                             hw=float(M), eps=IN_EPS, slope=LEAKY_SLOPE)

    in_specs = [
        pl.BlockSpec((1, K, tm), lambda bb, n, m: (bb, 0, m)),
        pl.BlockSpec((tn, K), lambda bb, n, m: (n, 0)),
    ]
    inputs = [cols, wmat]
    if has_bias:
        in_specs.append(pl.BlockSpec((tn, 1), lambda bb, n, m: (n, 0)))
        inputs.append(b.reshape(Cout, 1).astype(jnp.float32))

    out = pl.pallas_call(
        kern,
        out_shape=jax.ShapeDtypeStruct((B, Cout, M), out_dtype),
        grid_spec=pltpu.PrefetchScalarGridSpec(
            num_scalar_prefetch=0,
            grid=(B, n_ct, n_mt),
            in_specs=in_specs,
            out_specs=pl.BlockSpec((1, tn, tm), lambda bb, n, m: (bb, n, m)),
        ),
        compiler_params=pltpu.CompilerParams(
            dimension_semantics=("parallel", "parallel", "parallel"),
            vmem_limit_bytes=vmem),
    )(*inputs)
    return out.reshape(B, Cout, Ho, Wo)


def instance_norm_leaky(x_nchw):
    """Fallback fused InstanceNorm2d(affine=False) + LeakyReLU(0.2) when the
    spatial extent is too large to fuse into the conv epilogue."""
    B, C, H, W = x_nchw.shape
    hw = H * W
    x = x_nchw.reshape(B, C, hw)
    vmem = _vmem_limit_bytes()
    # Channel tile: keep in+out double-buffered blocks comfortably under budget.
    # TODO(synk): extreme H*W (with C tiled to 8) would additionally need a
    # chunked (two-pass) spatial reduction.
    ct = C
    while (ct % 16 == 0) and 4 * ct * hw * x.dtype.itemsize > vmem // 2:
        ct //= 2

    y = pl.pallas_call(
        functools.partial(_in_leaky_kernel, inv_hw=1.0 / hw, eps=IN_EPS,
                          slope=LEAKY_SLOPE),
        out_shape=jax.ShapeDtypeStruct((B, C, hw), x.dtype),
        grid_spec=pltpu.PrefetchScalarGridSpec(
            num_scalar_prefetch=0,
            grid=(B, C // ct),
            in_specs=[pl.BlockSpec((1, ct, hw), lambda b, c: (b, c, 0))],
            out_specs=pl.BlockSpec((1, ct, hw), lambda b, c: (b, c, 0)),
        ),
        compiler_params=pltpu.CompilerParams(
            dimension_semantics=("parallel", "parallel"),
            vmem_limit_bytes=vmem),
    )(x)
    return y.reshape(B, C, H, W)


# ----------------------------------------------------------------------------
# NLayerDiscriminator forward (input_nc, ndf, n_layers=3)
# ----------------------------------------------------------------------------

def nlayer_discriminator_forward(x_nchw, params):
    x = x_nchw.astype(jnp.float32)

    def conv_norm_act(h, w, stride):
        # conv (bias exactly cancelled by InstanceNorm(affine=False) -> dropped)
        # + InstanceNorm2d + LeakyReLU; norm+act fuse into the conv epilogue
        # whenever the full spatial extent fits one output block.
        _, _, H, W = h.shape
        kh = w.shape[2]
        Ho = (H + 2 - kh) // stride + 1
        Wo = (W + 2 - kh) // stride + 1
        if Ho * Wo <= M_SINGLE_TILE_MAX:
            return conv2d(h, w, None, stride=stride, padding=1, act="in_leaky")
        h = conv2d(h, w, None, stride=stride, padding=1, act="none")
        return instance_norm_leaky(h)

    # conv0 (bias) + LeakyReLU(0.2) fused into the matmul epilogue.
    h = conv2d(x, params["w0"], params["b0"], stride=2, padding=1, act="leaky")

    # conv1 .. conv3: conv -> InstanceNorm -> LeakyReLU (fused).
    h = conv_norm_act(h, params["w1"], stride=2)
    h = conv_norm_act(h, params["w2"], stride=2)
    h = conv_norm_act(h, params["w3"], stride=1)

    # final 1-channel patch-logit conv (bias, no activation); (1, M) layout so
    # the single output channel still stores lane-dense.
    h = conv2d(h, params["w4"], params["b4"], stride=1, padding=1,
               act="none", out_dtype=jnp.float32)
    return h                                           # NCHW patch logits


# ----------------------------------------------------------------------------
# Deterministic parameter init (synthetic weights; no checkpoint loading)
# ----------------------------------------------------------------------------

def init_params(key, input_nc=3, ndf=16, n_layers=3):
    keys = iter(jax.random.split(key, 16))

    def w(shape, scale=0.05):
        return (scale * jax.random.normal(next(keys), shape)).astype(jnp.float32)

    # Channel progression, matching the PyTorch constructor (kw=4, padw=1):
    #   conv0: input_nc -> ndf                         (stride 2)
    #   conv_n (n=1..n_layers-1): -> ndf*min(2^n, 8)   (stride 2)
    #   conv_{n_layers}: -> ndf*min(2^n_layers, 8)     (stride 1)
    #   conv_final: -> 1                               (stride 1)
    chans = [input_nc, ndf]
    for n in range(1, n_layers):
        chans.append(ndf * min(2 ** n, 8))
    chans.append(ndf * min(2 ** n_layers, 8))
    chans.append(1)

    p = {}
    for idx in range(len(chans) - 1):
        p[f"w{idx}"] = w((chans[idx + 1], chans[idx], 4, 4))
        p[f"b{idx}"] = w((chans[idx + 1],), 0.01)
    return p


if __name__ == "__main__":
    key = jax.random.PRNGKey(0)
    pkey, xkey = jax.random.split(key)

    # Small shapes consistent with the module (ndf scaled down from 64 -> 16).
    params = init_params(pkey, input_nc=3, ndf=16, n_layers=3)
    x = jax.random.normal(xkey, (2, 3, 32, 32), dtype=jnp.float32)

    fwd = jax.jit(nlayer_discriminator_forward)
    out = fwd(x, params)
    jax.block_until_ready(out)

    # spatial: 32 -> 16 -> 8 -> 4 -> 3 -> 2 (PatchGAN patch logits)
    assert out.shape == (2, 1, 2, 2), out.shape
    assert bool(jnp.all(jnp.isfinite(out)))
    print("KERNEL_OK")
</pallas_src>

<mosaic_0001>
module attributes {stable_mosaic.version = 11 : i64} {
  func.func @_conv_kernel(%arg0: i32, %arg1: i32, %arg2: i32, %arg3: memref<1x48x256xbf16, #tpu.memory_space<vmem>>, %arg4: memref<16x48xbf16, #tpu.memory_space<vmem>>, %arg5: memref<16x1xf32, #tpu.memory_space<vmem>>, %arg6: memref<1x16x256xbf16, #tpu.memory_space<vmem>>) attributes {dimension_semantics = [#tpu.dimension_semantics<parallel>, #tpu.dimension_semantics<parallel>, #tpu.dimension_semantics<parallel>], iteration_bounds = array<i64: 2, 1, 1>, scalar_prefetch = 0 : i64, scratch_operands = 0 : i64, tpu.core_type = #tpu.core_type<tc>, window_params = [{transform_indices = @transform_0, window_bounds = array<i64: 1, 48, 256>}, {transform_indices = @transform_1, window_bounds = array<i64: 16, 48>}, {transform_indices = @transform_2, window_bounds = array<i64: 16, 1>}, {transform_indices = @transform_3, window_bounds = array<i64: 1, 16, 256>}]} {
    %c0 = arith.constant 0 : index
    %c0_0 = arith.constant 0 : index
    %0 = vector.load %arg4[%c0, %c0_0] : memref<16x48xbf16, #tpu.memory_space<vmem>>, vector<16x48xbf16>
    %c0_1 = arith.constant 0 : index
    %c0_2 = arith.constant 0 : index
    %c0_3 = arith.constant 0 : index
    %1 = vector.load %arg3[%c0_1, %c0_2, %c0_3] : memref<1x48x256xbf16, #tpu.memory_space<vmem>>, vector<1x48x256xbf16>
    %2 = vector.shape_cast %1 : vector<1x48x256xbf16> to vector<48x256xbf16>
    %cst = arith.constant dense<0.000000e+00> : vector<16x256xf32>
    %3 = tpu.matmul %0, %2, %cst {dimension_numbers = #tpu.dot_dimension_numbers<[1], [0], [0], [1], [0, 0, 1, 1], [], []>} : vector<16x48xbf16>, vector<48x256xbf16>, vector<16x256xf32> -> vector<16x256xf32>
    %c0_4 = arith.constant 0 : index
    %c0_5 = arith.constant 0 : index
    %4 = vector.load %arg5[%c0_4, %c0_5] : memref<16x1xf32, #tpu.memory_space<vmem>>, vector<16x1xf32>
    %5 = vector.broadcast %4 : vector<16x1xf32> to vector<16x256xf32>
    %6 = arith.addf %3, %5 : vector<16x256xf32>
    %cst_6 = arith.constant 0.000000e+00 : f32
    %7 = vector.broadcast %cst_6 : f32 to vector<16x256xf32>
    %8 = arith.cmpf ogt, %6, %7 : vector<16x256xf32>
    %cst_7 = arith.constant 2.000000e-01 : f32
    %9 = vector.broadcast %cst_7 : f32 to vector<16x256xf32>
    %10 = arith.mulf %9, %6 : vector<16x256xf32>
    %11 = arith.select %8, %6, %10 : vector<16x256xi1>, vector<16x256xf32>
    %12 = arith.truncf %11 : vector<16x256xf32> to vector<16x256xbf16>
    %c0_8 = arith.constant 0 : index
    %c0_9 = arith.constant 0 : index
    %c0_10 = arith.constant 0 : index
    %13 = vector.load %arg6[%c0_8, %c0_9, %c0_10] : memref<1x16x256xbf16, #tpu.memory_space<vmem>>, vector<1x16x256xbf16>
    %14 = vector.shape_cast %13 : vector<1x16x256xbf16> to vector<16x256xbf16>
    %15 = vector.shape_cast %12 : vector<16x256xbf16> to vector<1x16x256xbf16>
    tpu.vector_store %arg6[%c0_8, %c0_9, %c0_10], %15 {strides = array<i32>} : memref<1x16x256xbf16, #tpu.memory_space<vmem>>, vector<1x16x256xbf16>,
    return
  }
  func.func @transform_0(%arg0: i32, %arg1: i32, %arg2: i32) -> (i32, i32, i32) {
    %c0_i32 = arith.constant 0 : i32
    %c0_i32_0 = arith.constant 0 : i32
    return %arg0, %c0_i32, %arg2 : i32, i32, i32
  }
  func.func @transform_1(%arg0: i32, %arg1: i32, %arg2: i32) -> (i32, i32) {
    %c0_i32 = arith.constant 0 : i32
    %c0_i32_0 = arith.constant 0 : i32
    return %arg1, %c0_i32 : i32, i32
  }
  func.func @transform_2(%arg0: i32, %arg1: i32, %arg2: i32) -> (i32, i32) {
    %c0_i32 = arith.constant 0 : i32
    %c0_i32_0 = arith.constant 0 : i32
    return %arg1, %c0_i32 : i32, i32
  }
  func.func @transform_3(%arg0: i32, %arg1: i32, %arg2: i32) -> (i32, i32, i32) {
    %c0_i32 = arith.constant 0 : i32
    return %arg0, %arg1, %arg2 : i32, i32, i32
  }
}

module attributes {stable_mosaic.version = 11 : i64} {
  func.func @_conv_kernel(%arg0: i32, %arg1: i32, %arg2: i32, %arg3: memref<1x256x64xbf16, #tpu.memory_space<vmem>>, %arg4: memref<32x256xbf16, #tpu.memory_space<vmem>>, %arg5: memref<1x32x64xbf16, #tpu.memory_space<vmem>>) attributes {dimension_semantics = [#tpu.dimension_semantics<parallel>, #tpu.dimension_semantics<parallel>, #tpu.dimension_semantics<parallel>], iteration_bounds = array<i64: 2, 1, 1>, scalar_prefetch = 0 : i64, scratch_operands = 0 : i64, tpu.core_type = #tpu.core_type<tc>, window_params = [{transform_indices = @transform_0, window_bounds = array<i64: 1, 256, 64>}, {transform_indices = @transform_1, window_bounds = array<i64: 32, 256>}, {transform_indices = @transform_2, window_bounds = array<i64: 1, 32, 64>}]} {
    %c0 = arith.constant 0 : index
    %c0_0 = arith.constant 0 : index
    %0 = vector.load %arg4[%c0, %c0_0] : memref<32x256xbf16, #tpu.memory_space<vmem>>, vector<32x256xbf16>
    %c0_1 = arith.constant 0 : index
    %c0_2 = arith.constant 0 : index
    %c0_3 = arith.constant 0 : index
    %1 = vector.load %arg3[%c0_1, %c0_2, %c0_3] : memref<1x256x64xbf16, #tpu.memory_space<vmem>>, vector<1x256x64xbf16>
    %2 = vector.shape_cast %1 : vector<1x256x64xbf16> to vector<256x64xbf16>
    %cst = arith.constant dense<0.000000e+00> : vector<32x64xf32>
    %3 = tpu.matmul %0, %2, %cst {dimension_numbers = #tpu.dot_dimension_numbers<[1], [0], [0], [1], [0, 0, 1, 1], [], []>} : vector<32x256xbf16>, vector<256x64xbf16>, vector<32x64xf32> -> vector<32x64xf32>
    %cst_4 = arith.constant dense<0.000000e+00> : vector<32xf32>
    %4 = vector.multi_reduction <add>, %3, %cst_4 [1] : vector<32x64xf32> to vector<32xf32>
    %5 = vector.shape_cast %4 : vector<32xf32> to vector<32x1xf32>
    %cst_5 = arith.constant 1.562500e-02 : f32
    %6 = vector.broadcast %cst_5 : f32 to vector<32x1xf32>
    %7 = arith.mulf %5, %6 : vector<32x1xf32>
    %8 = vector.broadcast %7 : vector<32x1xf32> to vector<32x64xf32>
    %9 = arith.subf %3, %8 : vector<32x64xf32>
    %10 = arith.mulf %9, %9 : vector<32x64xf32>
    %cst_6 = arith.constant dense<0.000000e+00> : vector<32xf32>
    %11 = vector.multi_reduction <add>, %10, %cst_6 [1] : vector<32x64xf32> to vector<32xf32>
    %12 = vector.shape_cast %11 : vector<32xf32> to vector<32x1xf32>
    %cst_7 = arith.constant 1.562500e-02 : f32
    %13 = vector.broadcast %cst_7 : f32 to vector<32x1xf32>
    %14 = arith.mulf %12, %13 : vector<32x1xf32>
    %cst_8 = arith.constant 9.99999974E-6 : f32
    %15 = vector.broadcast %cst_8 : f32 to vector<32x1xf32>
    %16 = arith.addf %14, %15 : vector<32x1xf32>
    %17 = math.rsqrt %16 : vector<32x1xf32>
    %18 = vector.broadcast %17 : vector<32x1xf32> to vector<32x64xf32>
    %19 = arith.mulf %9, %18 : vector<32x64xf32>
    %cst_9 = arith.constant 0.000000e+00 : f32
    %20 = vector.broadcast %cst_9 : f32 to vector<32x64xf32>
    %21 = arith.cmpf ogt, %19, %20 : vector<32x64xf32>
    %cst_10 = arith.constant 2.000000e-01 : f32
    %22 = vector.broadcast %cst_10 : f32 to vector<32x64xf32>
    %23 = arith.mulf %22, %19 : vector<32x64xf32>
    %24 = arith.select %21, %19, %23 : vector<32x64xi1>, vector<32x64xf32>
    %25 = arith.truncf %24 : vector<32x64xf32> to vector<32x64xbf16>
    %c0_11 = arith.constant 0 : index
    %c0_12 = arith.constant 0 : index
    %c0_13 = arith.constant 0 : index
    %26 = vector.load %arg5[%c0_11, %c0_12, %c0_13] : memref<1x32x64xbf16, #tpu.memory_space<vmem>>, vector<1x32x64xbf16>
    %27 = vector.shape_cast %26 : vector<1x32x64xbf16> to vector<32x64xbf16>
    %28 = vector.shape_cast %25 : vector<32x64xbf16> to vector<1x32x64xbf16>
    tpu.vector_store %arg5[%c0_11, %c0_12, %c0_13], %28 {strides = array<i32>} : memref<1x32x64xbf16, #tpu.memory_space<vmem>>, vector<1x32x64xbf16>,
    return
  }
  func.func @transform_0(%arg0: i32, %arg1: i32, %arg2: i32) -> (i32, i32, i32) {
    %c0_i32 = arith.constant 0 : i32
    %c0_i32_0 = arith.constant 0 : i32
    return %arg0, %c0_i32, %arg2 : i32, i32, i32
  }
  func.func @transform_1(%arg0: i32, %arg1: i32, %arg2: i32) -> (i32, i32) {
    %c0_i32 = arith.constant 0 : i32
    %c0_i32_0 = arith.constant 0 : i32
    return %arg1, %c0_i32 : i32, i32
  }
  func.func @transform_2(%arg0: i32, %arg1: i32, %arg2: i32) -> (i32, i32, i32) {
    %c0_i32 = arith.constant 0 : i32
    return %arg0, %arg1, %arg2 : i32, i32, i32
  }
}

module attributes {stable_mosaic.version = 11 : i64} {
  func.func @_conv_kernel(%arg0: i32, %arg1: i32, %arg2: i32, %arg3: memref<1x512x16xbf16, #tpu.memory_space<vmem>>, %arg4: memref<64x512xbf16, #tpu.memory_space<vmem>>, %arg5: memref<1x64x16xbf16, #tpu.memory_space<vmem>>) attributes {dimension_semantics = [#tpu.dimension_semantics<parallel>, #tpu.dimension_semantics<parallel>, #tpu.dimension_semantics<parallel>], iteration_bounds = array<i64: 2, 1, 1>, scalar_prefetch = 0 : i64, scratch_operands = 0 : i64, tpu.core_type = #tpu.core_type<tc>, window_params = [{transform_indices = @transform_0, window_bounds = array<i64: 1, 512, 16>}, {transform_indices = @transform_1, window_bounds = array<i64: 64, 512>}, {transform_indices = @transform_2, window_bounds = array<i64: 1, 64, 16>}]} {
    %c0 = arith.constant 0 : index
    %c0_0 = arith.constant 0 : index
    %0 = vector.load %arg4[%c0, %c0_0] : memref<64x512xbf16, #tpu.memory_space<vmem>>, vector<64x512xbf16>
    %c0_1 = arith.constant 0 : index
    %c0_2 = arith.constant 0 : index
    %c0_3 = arith.constant 0 : index
    %1 = vector.load %arg3[%c0_1, %c0_2, %c0_3] : memref<1x512x16xbf16, #tpu.memory_space<vmem>>, vector<1x512x16xbf16>
    %2 = vector.shape_cast %1 : vector<1x512x16xbf16> to vector<512x16xbf16>
    %cst = arith.constant dense<0.000000e+00> : vector<64x16xf32>
    %3 = tpu.matmul %0, %2, %cst {dimension_numbers = #tpu.dot_dimension_numbers<[1], [0], [0], [1], [0, 0, 1, 1], [], []>} : vector<64x512xbf16>, vector<512x16xbf16>, vector<64x16xf32> -> vector<64x16xf32>
    %cst_4 = arith.constant dense<0.000000e+00> : vector<64xf32>
    %4 = vector.multi_reduction <add>, %3, %cst_4 [1] : vector<64x16xf32> to vector<64xf32>
    %5 = vector.shape_cast %4 : vector<64xf32> to vector<64x1xf32>
    %cst_5 = arith.constant 6.250000e-02 : f32
    %6 = vector.broadcast %cst_5 : f32 to vector<64x1xf32>
    %7 = arith.mulf %5, %6 : vector<64x1xf32>
    %8 = vector.broadcast %7 : vector<64x1xf32> to vector<64x16xf32>
    %9 = arith.subf %3, %8 : vector<64x16xf32>
    %10 = arith.mulf %9, %9 : vector<64x16xf32>
    %cst_6 = arith.constant dense<0.000000e+00> : vector<64xf32>
    %11 = vector.multi_reduction <add>, %10, %cst_6 [1] : vector<64x16xf32> to vector<64xf32>
    %12 = vector.shape_cast %11 : vector<64xf32> to vector<64x1xf32>
    %cst_7 = arith.constant 6.250000e-02 : f32
    %13 = vector.broadcast %cst_7 : f32 to vector<64x1xf32>
    %14 = arith.mulf %12, %13 : vector<64x1xf32>
    %cst_8 = arith.constant 9.99999974E-6 : f32
    %15 = vector.broadcast %cst_8 : f32 to vector<64x1xf32>
    %16 = arith.addf %14, %15 : vector<64x1xf32>
    %17 = math.rsqrt %16 : vector<64x1xf32>
    %18 = vector.broadcast %17 : vector<64x1xf32> to vector<64x16xf32>
    %19 = arith.mulf %9, %18 : vector<64x16xf32>
    %cst_9 = arith.constant 0.000000e+00 : f32
    %20 = vector.broadcast %cst_9 : f32 to vector<64x16xf32>
    %21 = arith.cmpf ogt, %19, %20 : vector<64x16xf32>
    %cst_10 = arith.constant 2.000000e-01 : f32
    %22 = vector.broadcast %cst_10 : f32 to vector<64x16xf32>
    %23 = arith.mulf %22, %19 : vector<64x16xf32>
    %24 = arith.select %21, %19, %23 : vector<64x16xi1>, vector<64x16xf32>
    %25 = arith.truncf %24 : vector<64x16xf32> to vector<64x16xbf16>
    %c0_11 = arith.constant 0 : index
    %c0_12 = arith.constant 0 : index
    %c0_13 = arith.constant 0 : index
    %26 = vector.load %arg5[%c0_11, %c0_12, %c0_13] : memref<1x64x16xbf16, #tpu.memory_space<vmem>>, vector<1x64x16xbf16>
    %27 = vector.shape_cast %26 : vector<1x64x16xbf16> to vector<64x16xbf16>
    %28 = vector.shape_cast %25 : vector<64x16xbf16> to vector<1x64x16xbf16>
    tpu.vector_store %arg5[%c0_11, %c0_12, %c0_13], %28 {strides = array<i32>} : memref<1x64x16xbf16, #tpu.memory_space<vmem>>, vector<1x64x16xbf16>,
    return
  }
  func.func @transform_0(%arg0: i32, %arg1: i32, %arg2: i32) -> (i32, i32, i32) {
    %c0_i32 = arith.constant 0 : i32
    %c0_i32_0 = arith.constant 0 : i32
    return %arg0, %c0_i32, %arg2 : i32, i32, i32
  }
  func.func @transform_1(%arg0: i32, %arg1: i32, %arg2: i32) -> (i32, i32) {
    %c0_i32 = arith.constant 0 : i32
    %c0_i32_0 = arith.constant 0 : i32
    return %arg1, %c0_i32 : i32, i32
  }
  func.func @transform_2(%arg0: i32, %arg1: i32, %arg2: i32) -> (i32, i32, i32) {
    %c0_i32 = arith.constant 0 : i32
    return %arg0, %arg1, %arg2 : i32, i32, i32
  }
}

module attributes {stable_mosaic.version = 11 : i64} {
  func.func @_conv_kernel(%arg0: i32, %arg1: i32, %arg2: i32, %arg3: memref<1x1024x9xbf16, #tpu.memory_space<vmem>>, %arg4: memref<128x1024xbf16, #tpu.memory_space<vmem>>, %arg5: memref<1x128x9xbf16, #tpu.memory_space<vmem>>) attributes {dimension_semantics = [#tpu.dimension_semantics<parallel>, #tpu.dimension_semantics<parallel>, #tpu.dimension_semantics<parallel>], iteration_bounds = array<i64: 2, 1, 1>, scalar_prefetch = 0 : i64, scratch_operands = 0 : i64, tpu.core_type = #tpu.core_type<tc>, window_params = [{transform_indices = @transform_0, window_bounds = array<i64: 1, 1024, 9>}, {transform_indices = @transform_1, window_bounds = array<i64: 128, 1024>}, {transform_indices = @transform_2, window_bounds = array<i64: 1, 128, 9>}]} {
    %c0 = arith.constant 0 : index
    %c0_0 = arith.constant 0 : index
    %0 = vector.load %arg4[%c0, %c0_0] : memref<128x1024xbf16, #tpu.memory_space<vmem>>, vector<128x1024xbf16>
    %c0_1 = arith.constant 0 : index
    %c0_2 = arith.constant 0 : index
    %c0_3 = arith.constant 0 : index
    %1 = vector.load %arg3[%c0_1, %c0_2, %c0_3] : memref<1x1024x9xbf16, #tpu.memory_space<vmem>>, vector<1x1024x9xbf16>
    %2 = vector.shape_cast %1 : vector<1x1024x9xbf16> to vector<1024x9xbf16>
    %cst = arith.constant dense<0.000000e+00> : vector<128x9xf32>
    %3 = tpu.matmul %0, %2, %cst {dimension_numbers = #tpu.dot_dimension_numbers<[1], [0], [0], [1], [0, 0, 1, 1], [], []>} : vector<128x1024xbf16>, vector<1024x9xbf16>, vector<128x9xf32> -> vector<128x9xf32>
    %cst_4 = arith.constant dense<0.000000e+00> : vector<128xf32>
    %4 = vector.multi_reduction <add>, %3, %cst_4 [1] : vector<128x9xf32> to vector<128xf32>
    %5 = vector.shape_cast %4 : vector<128xf32> to vector<128x1xf32>
    %cst_5 = arith.constant 0.111111112 : f32
    %6 = vector.broadcast %cst_5 : f32 to vector<128x1xf32>
    %7 = arith.mulf %5, %6 : vector<128x1xf32>
    %8 = vector.broadcast %7 : vector<128x1xf32> to vector<128x9xf32>
    %9 = arith.subf %3, %8 : vector<128x9xf32>
    %10 = arith.mulf %9, %9 : vector<128x9xf32>
    %cst_6 = arith.constant dense<0.000000e+00> : vector<128xf32>
    %11 = vector.multi_reduction <add>, %10, %cst_6 [1] : vector<128x9xf32> to vector<128xf32>
    %12 = vector.shape_cast %11 : vector<128xf32> to vector<128x1xf32>
    %cst_7 = arith.constant 0.111111112 : f32
    %13 = vector.broadcast %cst_7 : f32 to vector<128x1xf32>
    %14 = arith.mulf %12, %13 : vector<128x1xf32>
    %cst_8 = arith.constant 9.99999974E-6 : f32
    %15 = vector.broadcast %cst_8 : f32 to vector<128x1xf32>
    %16 = arith.addf %14, %15 : vector<128x1xf32>
    %17 = math.rsqrt %16 : vector<128x1xf32>
    %18 = vector.broadcast %17 : vector<128x1xf32> to vector<128x9xf32>
    %19 = arith.mulf %9, %18 : vector<128x9xf32>
    %cst_9 = arith.constant 0.000000e+00 : f32
    %20 = vector.broadcast %cst_9 : f32 to vector<128x9xf32>
    %21 = arith.cmpf ogt, %19, %20 : vector<128x9xf32>
    %cst_10 = arith.constant 2.000000e-01 : f32
    %22 = vector.broadcast %cst_10 : f32 to vector<128x9xf32>
    %23 = arith.mulf %22, %19 : vector<128x9xf32>
    %24 = arith.select %21, %19, %23 : vector<128x9xi1>, vector<128x9xf32>
    %25 = arith.truncf %24 : vector<128x9xf32> to vector<128x9xbf16>
    %c0_11 = arith.constant 0 : index
    %c0_12 = arith.constant 0 : index
    %c0_13 = arith.constant 0 : index
    %26 = vector.load %arg5[%c0_11, %c0_12, %c0_13] : memref<1x128x9xbf16, #tpu.memory_space<vmem>>, vector<1x128x9xbf16>
    %27 = vector.shape_cast %26 : vector<1x128x9xbf16> to vector<128x9xbf16>
    %28 = vector.shape_cast %25 : vector<128x9xbf16> to vector<1x128x9xbf16>
    tpu.vector_store %arg5[%c0_11, %c0_12, %c0_13], %28 {strides = array<i32>} : memref<1x128x9xbf16, #tpu.memory_space<vmem>>, vector<1x128x9xbf16>,
    return
  }
  func.func @transform_0(%arg0: i32, %arg1: i32, %arg2: i32) -> (i32, i32, i32) {
    %c0_i32 = arith.constant 0 : i32
    %c0_i32_0 = arith.constant 0 : i32
    return %arg0, %c0_i32, %arg2 : i32, i32, i32
  }
  func.func @transform_1(%arg0: i32, %arg1: i32, %arg2: i32) -> (i32, i32) {
    %c0_i32 = arith.constant 0 : i32
    %c0_i32_0 = arith.constant 0 : i32
    return %arg1, %c0_i32 : i32, i32
  }
  func.func @transform_2(%arg0: i32, %arg1: i32, %arg2: i32) -> (i32, i32, i32) {
    %c0_i32 = arith.constant 0 : i32
    return %arg0, %arg1, %arg2 : i32, i32, i32
  }
}

module attributes {stable_mosaic.version = 11 : i64} {
  func.func @_conv_kernel(%arg0: i32, %arg1: i32, %arg2: i32, %arg3: memref<1x2048x4xbf16, #tpu.memory_space<vmem>>, %arg4: memref<1x2048xbf16, #tpu.memory_space<vmem>>, %arg5: memref<1x1xf32, #tpu.memory_space<vmem>>, %arg6: memref<1x1x4xf32, #tpu.memory_space<vmem>>) attributes {dimension_semantics = [#tpu.dimension_semantics<parallel>, #tpu.dimension_semantics<parallel>, #tpu.dimension_semantics<parallel>], iteration_bounds = array<i64: 2, 1, 1>, scalar_prefetch = 0 : i64, scratch_operands = 0 : i64, tpu.core_type = #tpu.core_type<tc>, window_params = [{transform_indices = @transform_0, window_bounds = array<i64: 1, 2048, 4>}, {transform_indices = @transform_1, window_bounds = array<i64: 1, 2048>}, {transform_indices = @transform_2, window_bounds = array<i64: 1, 1>}, {transform_indices = @transform_3, window_bounds = array<i64: 1, 1, 4>}]} {
    %c0 = arith.constant 0 : index
    %c0_0 = arith.constant 0 : index
    %0 = vector.load %arg4[%c0, %c0_0] : memref<1x2048xbf16, #tpu.memory_space<vmem>>, vector<1x2048xbf16>
    %c0_1 = arith.constant 0 : index
    %c0_2 = arith.constant 0 : index
    %c0_3 = arith.constant 0 : index
    %1 = vector.load %arg3[%c0_1, %c0_2, %c0_3] : memref<1x2048x4xbf16, #tpu.memory_space<vmem>>, vector<1x2048x4xbf16>
    %2 = vector.shape_cast %1 : vector<1x2048x4xbf16> to vector<2048x4xbf16>
    %cst = arith.constant dense<0.000000e+00> : vector<1x4xf32>
    %3 = tpu.matmul %0, %2, %cst {dimension_numbers = #tpu.dot_dimension_numbers<[1], [0], [0], [1], [0, 0, 1, 1], [], []>} : vector<1x2048xbf16>, vector<2048x4xbf16>, vector<1x4xf32> -> vector<1x4xf32>
    %c0_4 = arith.constant 0 : index
    %c0_5 = arith.constant 0 : index
    %4 = vector.load %arg5[%c0_4, %c0_5] : memref<1x1xf32, #tpu.memory_space<vmem>>, vector<1x1xf32>
    %5 = vector.broadcast %4 : vector<1x1xf32> to vector<1x4xf32>
    %6 = arith.addf %3, %5 : vector<1x4xf32>
    %c0_6 = arith.constant 0 : index
    %c0_7 = arith.constant 0 : index
    %c0_8 = arith.constant 0 : index
    %7 = vector.load %arg6[%c0_6, %c0_7, %c0_8] : memref<1x1x4xf32, #tpu.memory_space<vmem>>, vector<1x1x4xf32>
    %8 = vector.shape_cast %7 : vector<1x1x4xf32> to vector<1x4xf32>
    %9 = vector.shape_cast %6 : vector<1x4xf32> to vector<1x1x4xf32>
    tpu.vector_store %arg6[%c0_6, %c0_7, %c0_8], %9 {strides = array<i32>} : memref<1x1x4xf32, #tpu.memory_space<vmem>>, vector<1x1x4xf32>,
    return
  }
  func.func @transform_0(%arg0: i32, %arg1: i32, %arg2: i32) -> (i32, i32, i32) {
    %c0_i32 = arith.constant 0 : i32
    %c0_i32_0 = arith.constant 0 : i32
    return %arg0, %c0_i32, %arg2 : i32, i32, i32
  }
  func.func @transform_1(%arg0: i32, %arg1: i32, %arg2: i32) -> (i32, i32) {
    %c0_i32 = arith.constant 0 : i32
    %c0_i32_0 = arith.constant 0 : i32
    return %arg1, %c0_i32 : i32, i32
  }
  func.func @transform_2(%arg0: i32, %arg1: i32, %arg2: i32) -> (i32, i32) {
    %c0_i32 = arith.constant 0 : i32
    %c0_i32_0 = arith.constant 0 : i32
    return %arg1, %c0_i32 : i32, i32
  }
  func.func @transform_3(%arg0: i32, %arg1: i32, %arg2: i32) -> (i32, i32, i32) {
    %c0_i32 = arith.constant 0 : i32
    return %arg0, %arg1, %arg2 : i32, i32, i32
  }
}

</mosaic_0001>

<bundles_post_ra>
// kernel: nlayer_discriminator_forward.5
= control target key start
LH: loop header
LB: loop body
LE: loop exit
PB: predicated region body
PF: predicated region fallthrough
CT: control target
= control target key end

     0   :  { %s649_s12 = smov 0   ;;  %s651_s13 = smov 0   ;;  %s695_s0 = inlined_call_operand.vmem [shape: bf16[2,48,256], index: 0, kind: input, shape index: {}]   ;;  %s696_s1 = inlined_call_operand.vmem [shape: bf16[16,48], index: 1, kind: input, shape index: {}]   ;;  %s697_s2 = inlined_call_operand.vmem [shape: f32[16,1], index: 2, kind: input, shape index: {}]   ;;  %s698_s3 = inlined_call_operand.vmem [shape: bf16[2,16,256], index: 3, kind: output, shape index: {}]  }
   0x1   :  { %s653_s14 = smov 0  }
   0x2 LB: > { %s32_s15 = sadd.s32 1, %s622_s13  ;;  %p548_p0 = scmp.ge.s32.totalorder %s626_s14, 1  ;;  %s626_s14 = sphi %s653_s14, %s13_s14   ;;  %s622_s13 = sphi %s651_s13, %s700_s13   ;;  %s618_s12 = sphi %s649_s12, %s699_s12  }
   0x3   : > { %p34_p1 = scmp.ge.s32.totalorder %s32_s15, 2  ;;  %p189_p2 = scmp.lt.s32.totalorder %s626_s14, 3 }
   0x5   : > { %s702_s15 = smov (%p34_p1, %s32_s15), 0  ;;  %p190_p3 = pnand %p548_p0, %p189_p2 }
   0x6   : > { %p237_p4 = scmp.lt.s32.totalorder (!%p190_p3), %s618_s12, 1  ;;  %v628_v0 = vmov (!%p190_p3), 0   ;;  %v283_v1 = vld [vmem:[%s697_s2] sm:$0xff] (!%p190_p3)  ;;  %v284_v2 = vld [vmem:[%s697_s2 + $0x8] sm:$0xff] (!%p190_p3)  ;;  %vm330_vm0 = vcmask (!%p190_p3), 392192  }
   0x7   : > { %193 = sbr.rel (%p190_p3) target bundleno = 254 (0xfe), region = 32  ;;  %366 = vmatprep.mubr.bf16.mxu0 (!%p190_p3), %v628_v0  ;;  %593 = vset.pattern.permute.xlu0 (!%p190_p3), %v628_v0  ;;  %v603_v9 = vld [vmem:[%s696_s1] sm:$0xff] (!%p190_p3)  }
   0x8   : > { %287 = vperm.xlu0 (!%p190_p3), %593, %v283_v1  }
   0xc   : > { %292 = vperm.xlu0 (!%p190_p3), %593, %v284_v2  }
   0xe   : > { %s704_s12 = smov (!%p237_p4, %s618_s12), 1 }
   0xf   : > { %s567_s20 = smul.u32 48, %s704_s12  ;;  %s564_s26 = sshll.u32 %s704_s12, 4 }
  0x10   : > { %s271_s29 = scalar_lea.vmem %s698_s3, %s564_s26 }
  0x11   : > { %s244_s23 = scalar_lea.vmem %s695_s0, %s567_s20 }
  0x12   : > { %v594_v3 = vld [vmem:[%s244_s23 + $0x4] ss:$8 sps:$4 sm:$0xff]   ;;  %v596_v4 = vld [vmem:[%s244_s23] ss:$8 sps:$4 sm:$0xff]   ;;  %v597_v5 = vld [vmem:[%s244_s23 + $0x14] ss:$8 sps:$4 sm:$0xff]  }
  0x13   : > { %334 = vmatprep.subr.bf16.mxu0 %v594_v3  ;;  %v599_v6 = vld [vmem:[%s244_s23 + $0x10] ss:$8 sps:$4 sm:$0xff]   ;;  %v600_v7 = vld [vmem:[%s244_s23 + $0x24] ss:$8 sps:$4 sm:$0xff]   ;;  %v602_v8 = vld [vmem:[%s244_s23 + $0x20] ss:$8 sps:$4 sm:$0xff]  }
  0x14   : > { %335 = vmatpush1.bf16.msra.mxu0 %v596_v4 }
  0x15   : > { %336 = vmatprep.subr.bf16.mxu0 %v597_v5 }
  0x18   : > { %337 = vmatpush1.bf16.msra.mxu0 %v599_v6 }
  0x19   : > { %338 = vmatprep.subr.bf16.mxu0 %v600_v7 }
  0x1c   : > { %339 = vmatpush1.bf16.msra.mxu0 %v602_v8 }
  0x1f   : > { %559 = vmatmul.mubr.msk.bf16.vlgmr.msra.gmra.mrb[0].mxu0 %vm330_vm0, %v603_v9 }
  0x87   : > { %v288_v10 = vpop.permute.xlu0 %287 }
  0x8b   : > { %v293_v14 = vpop.permute.xlu0 %292 }
  0xf2   : > { %v368_v11 = vpop.f32.mrb[0].mxu0 }
  0xf3   : > { %v369_v12 = vadd.f32 %v368_v11, %v288_v10  ;;  %v370_v13 = vpop.f32.mrb[1].mxu0 }
  0xf4   : > { %v371_v15 = vadd.f32 %v370_v13, %v288_v10  ;;  %v372_v16 = vpop.f32.mrb[2].mxu0 }
  0xf5   : > { %vm377_vm1 = vcmp.gt.f32.partialorder %v369_v12, 0.0  ;;  %v381_v17 = vmul.f32 0.2, %v369_v12  ;;  %v373_v18 = vadd.f32 %v372_v16, %v293_v14  ;;  %v374_v19 = vpop.f32.mrb[3].mxu0 }
  0xf6   : > { %vm378_vm2 = vcmp.gt.f32.partialorder %v371_v15, 0.0  ;;  %v382_v20 = vmul.f32 0.2, %v371_v15  ;;  %v375_v21 = vadd.f32 %v374_v19, %v293_v14 }
  0xf7   : > { %v385_v22 = vsel %vm377_vm1, %v369_v12, %v381_v17  ;;  %vm379_vm3 = vcmp.gt.f32.partialorder %v373_v18, 0.0  ;;  %v383_v23 = vmul.f32 0.2, %v373_v18 }
  0xf8   : > { %v386_v24 = vsel %vm378_vm2, %v371_v15, %v382_v20  ;;  %vm380_vm4 = vcmp.gt.f32.partialorder %v375_v21, 0.0  ;;  %v384_v25 = vmul.f32 0.2, %v375_v21 }
  0xf9   : > { %v565_v26 = vpack.c.bf16 %v386_v24, %v385_v22  ;;  %v387_v27 = vsel %vm379_vm3, %v373_v18, %v383_v23 }
  0xfa   : > { %v388_v28 = vsel %vm380_vm4, %v375_v21, %v384_v25 }
  0xfb   : > { %401 = vst [vmem:[%s271_s29] sm:$0xff] %v565_v26  ;;  %v566_v29 = vpack.c.bf16 %v388_v28, %v387_v27 }
  0xfd   : > { %402 = vst [vmem:[%s271_s29 + $0x8] sm:$0xff] %v566_v29 }
  0xfe PF: > { %s13_s14 = sadd.s32 1, %s626_s14   ;;  %s699_s12 = smov %s622_s13 }
  0xff   : > { %p10_p5 = scmp.ge.s32.totalorder %s13_s14, 4   ;;  %s700_s13 = smov %s702_s15 }
 0x101   :  { %12 = sbr.rel (!%p10_p5) target bundleno = 2 (0x2), region = 68 }

// kernel: nlayer_discriminator_forward.6
= control target key start
LH: loop header
LB: loop body
LE: loop exit
PB: predicated region body
PF: predicated region fallthrough
CT: control target
= control target key end

     0   :  { %s800_s9 = smov 0   ;;  %s802_s10 = smov 0   ;;  %s879_s0 = inlined_call_operand.vmem [shape: bf16[2,256,64], index: 0, kind: input, shape index: {}]   ;;  %s880_s1 = inlined_call_operand.vmem [shape: bf16[32,256], index: 1, kind: input, shape index: {}]   ;;  %s881_s2 = inlined_call_operand.vmem [shape: bf16[2,32,64], index: 2, kind: output, shape index: {}]  }
   0x1   :  { %s804_s11 = smov 0  }
   0x2 LB: > { %s31_s12 = sadd.s32 1, %s779_s10  ;;  %p626_p0 = scmp.ge.s32.totalorder %s783_s11, 1  ;;  %s783_s11 = sphi %s804_s11, %s12_s11   ;;  %s779_s10 = sphi %s802_s10, %s883_s10   ;;  %s775_s9 = sphi %s800_s9, %s882_s9  }
   0x3   : > { %p33_p1 = scmp.ge.s32.totalorder %s31_s12, 2  ;;  %p152_p2 = scmp.lt.s32.totalorder %s783_s11, 3 }
   0x5   : > { %s885_s12 = smov (%p33_p1, %s31_s12), 0  ;;  %p153_p3 = pnand %p626_p0, %p152_p2 }
   0x6   : > { %p190_p4 = scmp.lt.s32.totalorder (!%p153_p3), %s775_s9, 1  ;;  %v749_v0 = vld [vmem:[%s880_s1 + $0x4] ss:$8 sps:$4 sm:$0xff] (!%p153_p3)   ;;  %v752_v1 = vld [vmem:[%s880_s1 + $0x14] ss:$8 sps:$4 sm:$0xff] (!%p153_p3)   ;;  %vm420_vm0 = vcmask (!%p153_p3), 523264  }
   0x7   : > { %156 = sbr.rel (%p153_p3) target bundleno = 588 (0x24c), region = 28  ;;  %403 = vmatprep.mubr.bf16.mxu0 (!%p153_p3), %v749_v0  ;;  %411 = vmatprep.mubr.bf16.mxu1 (!%p153_p3), %v752_v1  ;;  %v747_v18 = vld [vmem:[%s880_s1] ss:$8 sps:$4 sm:$0xff] (!%p153_p3)   ;;  %v750_v19 = vld [vmem:[%s880_s1 + $0x10] ss:$8 sps:$4 sm:$0xff] (!%p153_p3)   ;;  %vm501_vm2 = vcmask (!%p153_p3), 519168  }
   0xe   : > { %s887_s9 = smov (!%p190_p4, %s775_s9), 1 }
   0xf   : > { %s657_s17 = sshll.u32 %s887_s9, 7  ;;  %s658_s25 = sshll.u32 %s887_s9, 4 }
  0x10   : > { %s830_s20 = scalar_lea.vmem %s879_s0, %s657_s17  ;;  %s216_s28 = scalar_lea.vmem %s881_s2, %s658_s25 }
  0x11   : > { %v731_v2 = vld [vmem:[%s830_s20 + $0x40] sm:$0xff]   ;;  %v733_v4 = vld [vmem:[%s830_s20 + $0x48] sm:$0xff]   ;;  %v735_v6 = vld [vmem:[%s830_s20 + $0x50] sm:$0xff]  }
  0x12   : > { %v732_v3 = vld [vmem:[%s830_s20] sm:$0xff]   ;;  %663 = vmatprep.subr.bf16.mxu0 %v731_v2  ;;  %691 = vmatprep.subr.bf16.mxu1 %v731_v2  ;;  %v734_v5 = vld [vmem:[%s830_s20 + $0x8] sm:$0xff]   ;;  %v736_v7 = vld [vmem:[%s830_s20 + $0x10] sm:$0xff]  }
  0x13   : > { %664 = vmatpush3.bf16.msra.mxu0 %v732_v3  ;;  %699 = vmatpush3.bf16.msra.mxu1 %v732_v3  ;;  %v737_v8 = vld [vmem:[%s830_s20 + $0x58] sm:$0xff]   ;;  %v739_v10 = vld [vmem:[%s830_s20 + $0x60] sm:$0xff]   ;;  %v741_v12 = vld [vmem:[%s830_s20 + $0x68] sm:$0xff]  }
  0x14   : > { %665 = vmatprep.subr.bf16.mxu0 %v733_v4  ;;  %692 = vmatprep.subr.bf16.mxu1 %v733_v4  ;;  %v738_v9 = vld [vmem:[%s830_s20 + $0x18] sm:$0xff]   ;;  %v740_v11 = vld [vmem:[%s830_s20 + $0x20] sm:$0xff]   ;;  %v742_v13 = vld [vmem:[%s830_s20 + $0x28] sm:$0xff]  }
  0x15   : > { %v743_v14 = vld [vmem:[%s830_s20 + $0x70] sm:$0xff]   ;;  %v745_v16 = vld [vmem:[%s830_s20 + $0x78] sm:$0xff]  }
  0x16   : > { %v744_v15 = vld [vmem:[%s830_s20 + $0x30] sm:$0xff]   ;;  %v746_v17 = vld [vmem:[%s830_s20 + $0x38] sm:$0xff]  }
  0x17   : > { %666 = vmatpush3.bf16.msra.mxu0 %v734_v5  ;;  %700 = vmatpush3.bf16.msra.mxu1 %v734_v5 }
  0x18   : > { %667 = vmatprep.subr.bf16.mxu0 %v735_v6  ;;  %693 = vmatprep.subr.bf16.mxu1 %v735_v6 }
  0x1b   : > { %668 = vmatpush3.bf16.msra.mxu0 %v736_v7  ;;  %701 = vmatpush3.bf16.msra.mxu1 %v736_v7 }
  0x1c   : > { %669 = vmatprep.subr.bf16.mxu0 %v737_v8  ;;  %694 = vmatprep.subr.bf16.mxu1 %v737_v8 }
  0x1f   : > { %670 = vmatpush3.bf16.msra.mxu0 %v738_v9  ;;  %702 = vmatpush3.bf16.msra.mxu1 %v738_v9 }
  0x20   : > { %671 = vmatprep.subr.bf16.mxu0 %v739_v10  ;;  %695 = vmatprep.subr.bf16.mxu1 %v739_v10 }
  0x23   : > { %672 = vmatpush3.bf16.msra.mxu0 %v740_v11  ;;  %703 = vmatpush3.bf16.msra.mxu1 %v740_v11 }
  0x24   : > { %673 = vmatprep.subr.bf16.mxu0 %v741_v12  ;;  %696 = vmatprep.subr.bf16.mxu1 %v741_v12 }
  0x27   : > { %674 = vmatpush3.bf16.msra.mxu0 %v742_v13  ;;  %704 = vmatpush3.bf16.msra.mxu1 %v742_v13 }
  0x28   : > { %675 = vmatprep.subr.bf16.mxu0 %v743_v14  ;;  %697 = vmatprep.subr.bf16.mxu1 %v743_v14 }
  0x2b   : > { %676 = vmatpush3.bf16.msra.mxu0 %v744_v15  ;;  %705 = vmatpush3.bf16.msra.mxu1 %v744_v15 }
  0x2c   : > { %677 = vmatprep.subr.bf16.mxu0 %v745_v16  ;;  %698 = vmatprep.subr.bf16.mxu1 %v745_v16 }
  0x2f   : > { %678 = vmatpush3.bf16.msra.mxu0 %v746_v17  ;;  %706 = vmatpush3.bf16.msra.mxu1 %v746_v17 }
  0x32   : > { %404 = vmatmul.mubr.bf16.vlgmr.msra.gmra.mrb[0].mxu0 %v747_v18  ;;  %412 = vmatmul.mubr.bf16.vlgmr.msra.gmra.mrb[0].mxu1 %v750_v19 }
 0x105   : > { %v679_v20 = vpop.f32.mrb[0].mxu0  ;;  %v685_v21 = vpop.f32.mrb[0].mxu1 }
 0x106   : > { %v680_v22 = vpop.f32.mrb[1].mxu0  ;;  %v686_v23 = vpop.f32.mrb[1].mxu1 }
 0x107   : > { %v681_v24 = vadd.f32 %v680_v22, %v679_v20  ;;  %v687_v25 = vadd.f32 %v686_v23, %v685_v21  ;;  %v682_v26 = vpop.f32.mrb[2].mxu0  ;;  %v688_v27 = vpop.f32.mrb[2].mxu1 }
 0x108   : > { %v683_v28 = vpop.f32.mrb[3].mxu0  ;;  %v689_v29 = vpop.f32.mrb[3].mxu1 }
 0x109   : > { %v684_v30 = vadd.f32 %v683_v28, %v682_v26  ;;  %v690_v31 = vadd.f32 %v689_v29, %v688_v27  ;;  %v427_v32 = vsel %vm420_vm0, %v687_v25, 0.0  ;;  %v421_v33 = vsel %vm420_vm0, %v681_v24, 0.0 }
 0x10a   : > { %428 = vadd.xlane.f32.xlu1 %v427_v32  ;;  %422 = vadd.xlane.f32.xlu0 %v421_v33 }
 0x10b   : > { %v430_v34 = vsel %vm420_vm0, %v690_v31, 0.0  ;;  %v424_v35 = vsel %vm420_vm0, %v684_v30, 0.0 }
 0x10e   : > { %431 = vadd.xlane.f32.xlu1 %v430_v34  ;;  %425 = vadd.xlane.f32.xlu0 %v424_v35 }
 0x197   : > { %v429_v36 = vpop.xlane.xlu1 %428  ;;  %v423_v37 = vpop.xlane.xlu0 %422 }
 0x198   : > { %v435_v38 = vmul.f32 0.015625, %v429_v36  ;;  %v433_v39 = vmul.f32 0.015625, %v423_v37 }
 0x19a   : > { %v439_v40 = vsub.f32 %v687_v25, %v435_v38  ;;  %v437_v41 = vsub.f32 %v681_v24, %v433_v39 }
 0x19b   : > { %v432_v42 = vpop.xlane.xlu1 %431  ;;  %v426_v43 = vpop.xlane.xlu0 %425 }
 0x19c   : > { %v436_v44 = vmul.f32 0.015625, %v432_v42  ;;  %v434_v45 = vmul.f32 0.015625, %v426_v43  ;;  %v441_v46 = vmul.f32 %v437_v41, %v437_v41  ;;  %v443_v50 = vmul.f32 %v439_v40, %v439_v40 }
 0x19e   : > { %v440_v47 = vsub.f32 %v690_v31, %v436_v44  ;;  %v438_v48 = vsub.f32 %v684_v30, %v434_v45  ;;  %v445_v49 = vsel %vm420_vm0, %v441_v46, 0.0  ;;  %v451_v52 = vsel %vm420_vm0, %v443_v50, 0.0 }
 0x19f   : > { %446 = vadd.xlane.f32.xlu0 %v445_v49 }
 0x1a0   : > { %v442_v51 = vmul.f32 %v438_v48, %v438_v48  ;;  %v444_v54 = vmul.f32 %v440_v47, %v440_v47 }
 0x1a2   : > { %v448_v53 = vsel %vm420_vm0, %v442_v51, 0.0  ;;  %v454_v55 = vsel %vm420_vm0, %v444_v54, 0.0 }
 0x1a3   : > { %452 = vadd.xlane.f32.xlu0 %v451_v52  ;;  %449 = vadd.xlane.f32.xlu1 %v448_v53 }
 0x1a7   : > { %455 = vadd.xlane.f32.xlu1 %v454_v55 }
 0x22c   : > { %v447_v56 = vpop.xlane.xlu0 %446 }
 0x22d   : > { %v457_v57 = vmul.f32 0.015625, %v447_v56 }
 0x22f   : > { %v461_v58 = vadd.f32 1e-05, %v457_v57 }
 0x230   : > { %v450_v59 = vpop.xlane.xlu1 %449  ;;  %v453_v60 = vpop.xlane.xlu0 %452 }
 0x231   : > { %753 = vrsqrt.f32 %v461_v58  ;;  %v458_v61 = vmul.f32 0.015625, %v450_v59  ;;  %v459_v62 = vmul.f32 0.015625, %v453_v60 }
 0x233   : > { %v462_v63 = vadd.f32 1e-05, %v458_v61  ;;  %v463_v0 = vadd.f32 1e-05, %v459_v62 }
 0x234   : > { %v456_v1 = vpop.xlane.xlu1 %455 }
 0x235   : > { %755 = vrsqrt.f32 %v462_v63  ;;  %v460_v2 = vmul.f32 0.015625, %v456_v1 }
 0x236   : > { %757 = vrsqrt.f32 %v463_v0 }
 0x237   : > { %v464_v3 = vadd.f32 1e-05, %v460_v2 }
 0x239   : > { %759 = vrsqrt.f32 %v464_v3 }
 0x23b   : > { %v754_v4 = vpop.eup %753 }
 0x23c   : > { %v469_v5 = vmul.f32 %v754_v4, %v437_v41 }
 0x23e   : > { %vm473_vm1 = vcmp.gt.f32.partialorder %v469_v5, 0.0  ;;  %v477_v6 = vmul.f32 0.2, %v469_v5 }
 0x23f   : > { %v756_v7 = vpop.eup %755 }
 0x240   : > { %v758_v8 = vpop.eup %757  ;;  %v481_v9 = vsel %vm473_vm1, %v469_v5, %v477_v6  ;;  %v470_v10 = vmul.f32 %v756_v7, %v438_v48 }
 0x241   : > { %v659_v11 = vpack.c.bf16 %v481_v9, %v481_v9  ;;  %v471_v12 = vmul.f32 %v758_v8, %v439_v40 }
 0x242   : > { %vm474_vm3 = vcmp.gt.f32.partialorder %v470_v10, 0.0  ;;  %v478_v13 = vmul.f32 0.2, %v470_v10 }
 0x243   : > { %v760_v14 = vpop.eup %759  ;;  %502 = vst.msk [vmem:[%s216_s28] sm:$0xf] %vm501_vm2, %v659_v11  ;;  %vm475_vm4 = vcmp.gt.f32.partialorder %v471_v12, 0.0  ;;  %v479_v15 = vmul.f32 0.2, %v471_v12 }
 0x244   : > { %v482_v16 = vsel %vm474_vm3, %v470_v10, %v478_v13  ;;  %v472_v17 = vmul.f32 %v760_v14, %v440_v47 }
 0x245   : > { %v660_v18 = vpack.c.bf16 %v482_v16, %v482_v16  ;;  %v483_v19 = vsel %vm475_vm4, %v471_v12, %v479_v15 }
 0x246   : > { %v661_v20 = vpack.c.bf16 %v483_v19, %v483_v19  ;;  %vm476_vm5 = vcmp.gt.f32.partialorder %v472_v17, 0.0  ;;  %v480_v21 = vmul.f32 0.2, %v472_v17 }
 0x247   : > { %503 = vst.msk [vmem:[%s216_s28 + $0x4] sm:$0xf] %vm501_vm2, %v660_v18 }
 0x248   : > { %504 = vst.msk [vmem:[%s216_s28 + $0x8] sm:$0xf] %vm501_vm2, %v661_v20  ;;  %v484_v22 = vsel %vm476_vm5, %v472_v17, %v480_v21 }
 0x249   : > { %v662_v23 = vpack.c.bf16 %v484_v22, %v484_v22 }
 0x24b   : > { %505 = vst.msk [vmem:[%s216_s28 + $0xc] sm:$0xf] %vm501_vm2, %v662_v23 }
 0x24c PF: > { %s12_s11 = sadd.s32 1, %s783_s11   ;;  %s882_s9 = smov %s779_s10 }
 0x24d   : > { %p9_p5 = scmp.ge.s32.totalorder %s12_s11, 4   ;;  %s883_s10 = smov %s885_s12 }
 0x24f   :  { %11 = sbr.rel (!%p9_p5) target bundleno = 2 (0x2), region = 61 }

// kernel: nlayer_discriminator_forward.7
= control target key start
LH: loop header
LB: loop body
LE: loop exit
PB: predicated region body
PF: predicated region fallthrough
CT: control target
= control target key end

     0   :  { %s1279_s9 = smov 0   ;;  %s1281_s10 = smov 0   ;;  %s1471_s0 = inlined_call_operand.vmem [shape: bf16[2,512,16], index: 0, kind: input, shape index: {}]   ;;  %s1472_s1 = inlined_call_operand.vmem [shape: bf16[64,512], index: 1, kind: input, shape index: {}]   ;;  %s1473_s2 = inlined_call_operand.vmem [shape: bf16[2,64,16], index: 2, kind: output, shape index: {}]  }
   0x1   :  { %s1283_s11 = smov 0  }
   0x2 LB: > { %s31_s12 = sadd.s32 1, %s1258_s10  ;;  %p991_p0 = scmp.ge.s32.totalorder %s1262_s11, 1  ;;  %s1262_s11 = sphi %s1283_s11, %s12_s11   ;;  %s1258_s10 = sphi %s1281_s10, %s1475_s10   ;;  %s1254_s9 = sphi %s1279_s9, %s1474_s9  }
   0x3   : > { %p33_p1 = scmp.ge.s32.totalorder %s31_s12, 2  ;;  %p152_p2 = scmp.lt.s32.totalorder %s1262_s11, 3 }
   0x5   : > { %s1477_s12 = smov (%p33_p1, %s31_s12), 0  ;;  %p153_p3 = pnand %p991_p0, %p152_p2 }
   0x6   : > { %p190_p4 = scmp.lt.s32.totalorder (!%p153_p3), %s1254_s9, 1  ;;  %v1202_v0 = vld [vmem:[%s1472_s1 + $0x4] ss:$16 sps:$4 sm:$0xff] (!%p153_p3)   ;;  %v1205_v1 = vld [vmem:[%s1472_s1 + $0xc] ss:$16 sps:$4 sm:$0xff] (!%p153_p3)   ;;  %vm701_vm0 = vcmask (!%p153_p3), 130048  }
   0x7   : > { %156 = sbr.rel (%p153_p3) target bundleno = 610 (0x262), region = 28  ;;  %603 = vmatprep.mubr.bf16.mxu0 (!%p153_p3), %v1202_v0  ;;  %668 = vmatprep.mubr.bf16.mxu1 (!%p153_p3), %v1205_v1  ;;  %v1200_v32 = vld [vmem:[%s1472_s1] ss:$16 sps:$4 sm:$0xff] (!%p153_p3)   ;;  %v1203_v34 = vld [vmem:[%s1472_s1 + $0x8] ss:$16 sps:$4 sm:$0xff] (!%p153_p3)   ;;  %vm862_vm2 = vcmask (!%p153_p3), 125952  }
   0x8   : > { %v1206_v36 = vld [vmem:[%s1472_s1 + $0x24] ss:$16 sps:$4 sm:$0xff] (!%p153_p3)   ;;  %v1208_v37 = vld [vmem:[%s1472_s1 + $0x2c] ss:$16 sps:$4 sm:$0xff] (!%p153_p3)   ;;  %v1210_v38 = vld [vmem:[%s1472_s1 + $0x20] ss:$16 sps:$4 sm:$0xff] (!%p153_p3)  }
   0x9   : > { %v1211_v39 = vld [vmem:[%s1472_s1 + $0x28] ss:$16 sps:$4 sm:$0xff] (!%p153_p3)   ;;  %v1212_v40 = vld [vmem:[%s1472_s1 + $0x44] ss:$16 sps:$4 sm:$0xff] (!%p153_p3)   ;;  %v1214_v41 = vld [vmem:[%s1472_s1 + $0x4c] ss:$16 sps:$4 sm:$0xff] (!%p153_p3)  }
   0xa   : > { %v1216_v42 = vld [vmem:[%s1472_s1 + $0x40] ss:$16 sps:$4 sm:$0xff] (!%p153_p3)   ;;  %v1217_v43 = vld [vmem:[%s1472_s1 + $0x48] ss:$16 sps:$4 sm:$0xff] (!%p153_p3)   ;;  %v1218_v44 = vld [vmem:[%s1472_s1 + $0x64] ss:$16 sps:$4 sm:$0xff] (!%p153_p3)  }
   0xb   : > { %v1220_v45 = vld [vmem:[%s1472_s1 + $0x6c] ss:$16 sps:$4 sm:$0xff] (!%p153_p3)   ;;  %v1222_v46 = vld [vmem:[%s1472_s1 + $0x60] ss:$16 sps:$4 sm:$0xff] (!%p153_p3)   ;;  %v1223_v47 = vld [vmem:[%s1472_s1 + $0x68] ss:$16 sps:$4 sm:$0xff] (!%p153_p3)  }
   0xe   : > { %s1479_s9 = smov (!%p190_p4, %s1254_s9), 1 }
   0xf   : > { %s1054_s17 = sshll.u32 %s1479_s9, 8  ;;  %s1055_s25 = sshll.u32 %s1479_s9, 5 }
  0x10   : > { %s1309_s20 = scalar_lea.vmem %s1471_s0, %s1054_s17  ;;  %s1437_s28 = scalar_lea.vmem %s1473_s2, %s1055_s25 }
  0x11   : > { %v1168_v2 = vld [vmem:[%s1309_s20 + $0x40] sm:$0xff]   ;;  %v1172_v6 = vld [vmem:[%s1309_s20 + $0x48] sm:$0xff]   ;;  %v1176_v10 = vld [vmem:[%s1309_s20 + $0x50] sm:$0xff]  }
  0x12   : > { %v1169_v3 = vld [vmem:[%s1309_s20 + $0xc0] sm:$0xff]   ;;  %1064 = vmatprep.subr.bf16.mxu0 %v1168_v2  ;;  %v1173_v7 = vld [vmem:[%s1309_s20 + $0xc8] sm:$0xff]   ;;  %v1177_v11 = vld [vmem:[%s1309_s20 + $0xd0] sm:$0xff]  }
  0x13   : > { %v1170_v4 = vld [vmem:[%s1309_s20] sm:$0xff]   ;;  %1104 = vmatprep.subr.bf16.mxu1 %v1169_v3  ;;  %v1174_v8 = vld [vmem:[%s1309_s20 + $0x8] sm:$0xff]   ;;  %v1178_v12 = vld [vmem:[%s1309_s20 + $0x10] sm:$0xff]  }
  0x14   : > { %v1171_v5 = vld [vmem:[%s1309_s20 + $0x80] sm:$0xff]   ;;  %1065 = vmatpush3.bf16.msra.mxu0 %v1170_v4  ;;  %v1175_v9 = vld [vmem:[%s1309_s20 + $0x88] sm:$0xff]   ;;  %v1179_v13 = vld [vmem:[%s1309_s20 + $0x90] sm:$0xff]  }
  0x15   : > { %1105 = vmatpush3.bf16.msra.mxu1 %v1171_v5  ;;  %1066 = vmatprep.subr.bf16.mxu0 %v1172_v6  ;;  %v1180_v14 = vld [vmem:[%s1309_s20 + $0x58] sm:$0xff]   ;;  %v1184_v18 = vld [vmem:[%s1309_s20 + $0x60] sm:$0xff]   ;;  %v1188_v22 = vld [vmem:[%s1309_s20 + $0x68] sm:$0xff]  }
  0x16   : > { %1106 = vmatprep.subr.bf16.mxu1 %v1173_v7  ;;  %v1181_v15 = vld [vmem:[%s1309_s20 + $0xd8] sm:$0xff]   ;;  %v1185_v19 = vld [vmem:[%s1309_s20 + $0xe0] sm:$0xff]   ;;  %v1189_v23 = vld [vmem:[%s1309_s20 + $0xe8] sm:$0xff]  }
  0x17   : > { %v1182_v16 = vld [vmem:[%s1309_s20 + $0x18] sm:$0xff]   ;;  %v1186_v20 = vld [vmem:[%s1309_s20 + $0x20] sm:$0xff]   ;;  %v1190_v24 = vld [vmem:[%s1309_s20 + $0x28] sm:$0xff]  }
  0x18   : > { %1067 = vmatpush3.bf16.msra.mxu0 %v1174_v8  ;;  %v1183_v17 = vld [vmem:[%s1309_s20 + $0x98] sm:$0xff]   ;;  %v1187_v21 = vld [vmem:[%s1309_s20 + $0xa0] sm:$0xff]   ;;  %v1191_v25 = vld [vmem:[%s1309_s20 + $0xa8] sm:$0xff]  }
  0x19   : > { %1107 = vmatpush3.bf16.msra.mxu1 %v1175_v9  ;;  %1068 = vmatprep.subr.bf16.mxu0 %v1176_v10  ;;  %v1192_v26 = vld [vmem:[%s1309_s20 + $0x70] sm:$0xff]   ;;  %v1196_v30 = vld [vmem:[%s1309_s20 + $0x78] sm:$0xff]  }
  0x1a   : > { %1108 = vmatprep.subr.bf16.mxu1 %v1177_v11  ;;  %v1193_v27 = vld [vmem:[%s1309_s20 + $0xf0] sm:$0xff]   ;;  %v1197_v31 = vld [vmem:[%s1309_s20 + $0xf8] sm:$0xff]  }
  0x1b   : > { %v1194_v28 = vld [vmem:[%s1309_s20 + $0x30] sm:$0xff]   ;;  %v1198_v33 = vld [vmem:[%s1309_s20 + $0x38] sm:$0xff]  }
  0x1c   : > { %1069 = vmatpush3.bf16.msra.mxu0 %v1178_v12  ;;  %v1195_v29 = vld [vmem:[%s1309_s20 + $0xb0] sm:$0xff]   ;;  %v1199_v35 = vld [vmem:[%s1309_s20 + $0xb8] sm:$0xff]  }
  0x1d   : > { %1109 = vmatpush3.bf16.msra.mxu1 %v1179_v13  ;;  %1070 = vmatprep.subr.bf16.mxu0 %v1180_v14 }
  0x1e   : > { %1110 = vmatprep.subr.bf16.mxu1 %v1181_v15 }
  0x20   : > { %1071 = vmatpush3.bf16.msra.mxu0 %v1182_v16 }
  0x21   : > { %1111 = vmatpush3.bf16.msra.mxu1 %v1183_v17  ;;  %1072 = vmatprep.subr.bf16.mxu0 %v1184_v18 }
  0x22   : > { %1112 = vmatprep.subr.bf16.mxu1 %v1185_v19 }
  0x24   : > { %1073 = vmatpush3.bf16.msra.mxu0 %v1186_v20 }
  0x25   : > { %1113 = vmatpush3.bf16.msra.mxu1 %v1187_v21  ;;  %1074 = vmatprep.subr.bf16.mxu0 %v1188_v22 }
  0x26   : > { %1114 = vmatprep.subr.bf16.mxu1 %v1189_v23 }
  0x28   : > { %1075 = vmatpush3.bf16.msra.mxu0 %v1190_v24 }
  0x29   : > { %1115 = vmatpush3.bf16.msra.mxu1 %v1191_v25  ;;  %1076 = vmatprep.subr.bf16.mxu0 %v1192_v26 }
  0x2a   : > { %1116 = vmatprep.subr.bf16.mxu1 %v1193_v27 }
  0x2c   : > { %1077 = vmatpush3.bf16.msra.mxu0 %v1194_v28 }
  0x2d   : > { %1117 = vmatpush3.bf16.msra.mxu1 %v1195_v29  ;;  %1078 = vmatprep.subr.bf16.mxu0 %v1196_v30 }
  0x2e   : > { %1118 = vmatprep.subr.bf16.mxu1 %v1197_v31 }
  0x30   : > { %1079 = vmatpush3.bf16.msra.mxu0 %v1198_v33 }
  0x31   : > { %1119 = vmatpush3.bf16.msra.mxu1 %v1199_v35 }
  0x33   : > { %604 = vmatmul.mubr.bf16.vlgmr.msra.gmra.mrb[0].mxu0 %v1200_v32 }
  0x34   : > { %669 = vmatmul.mubr.bf16.vlgmr.msra.gmra.mrb[0].mxu1 %v1203_v34  ;;  %611 = vmatprep.mubr.bf16.mxu0 %v1206_v36 }
  0x35   : > { %676 = vmatprep.mubr.bf16.mxu1 %v1208_v37 }
  0x3b   : > { %612 = vmatmul.mubr.bf16.gmra.mrb[4].mxu0 %v1210_v38 }
  0x3c   : > { %677 = vmatmul.mubr.bf16.gmra.mrb[4].mxu1 %v1211_v39  ;;  %619 = vmatprep.mubr.bf16.mxu0 %v1212_v40 }
  0x3d   : > { %684 = vmatprep.mubr.bf16.mxu1 %v1214_v41 }
  0x43   : > { %620 = vmatmul.mubr.bf16.gmra.mrb[8].mxu0 %v1216_v42 }
  0x44   : > { %685 = vmatmul.mubr.bf16.gmra.mrb[8].mxu1 %v1217_v43  ;;  %627 = vmatprep.mubr.bf16.mxu0 %v1218_v44 }
  0x45   : > { %692 = vmatprep.mubr.bf16.mxu1 %v1220_v45 }
  0x4b   : > { %628 = vmatmul.mubr.bf16.gmra.mrb[12].mxu0 %v1222_v46 }
  0x4c   : > { %693 = vmatmul.mubr.bf16.gmra.mrb[12].mxu1 %v1223_v47 }
 0x106   : > { %v1080_v48 = vpop.f32.mrb[0].mxu0 }
 0x107   : > { %v1120_v49 = vpop.f32.mrb[0].mxu1  ;;  %v1081_v50 = vpop.f32.mrb[1].mxu0 }
 0x108   : > { %v1082_v51 = vadd.f32 %v1081_v50, %v1080_v48  ;;  %v1121_v52 = vpop.f32.mrb[1].mxu1  ;;  %v1083_v53 = vpop.f32.mrb[2].mxu0 }
 0x109   : > { %v1122_v54 = vadd.f32 %v1121_v52, %v1120_v49  ;;  %v1123_v55 = vpop.f32.mrb[2].mxu1  ;;  %v1084_v56 = vpop.f32.mrb[3].mxu0 }
 0x10a   : > { %v1085_v57 = vadd.f32 %v1084_v56, %v1083_v53  ;;  %v1124_v58 = vpop.f32.mrb[3].mxu1 }
 0x10b   : > { %v1125_v59 = vadd.f32 %v1124_v58, %v1123_v55  ;;  %v671_v60 = vadd.f32 %v1122_v54, %v1082_v51 }
 0x10d   : > { %v702_v61 = vsel %vm701_vm0, %v671_v60, 0.0  ;;  %v1386_v62 = vadd.f32 %v1125_v59, %v1085_v57 }
 0x10e   : > { %703 = vadd.xlane.f32.xlu0 %v702_v61  ;;  %v1086_v63 = vpop.f32.mrb[4].mxu0 }
 0x10f   : > { %v1126_v0 = vpop.f32.mrb[4].mxu1  ;;  %v1087_v1 = vpop.f32.mrb[5].mxu0  ;;  %v705_v8 = vsel %vm701_vm0, %v1386_v62, 0.0 }
 0x110   : > { %v1088_v2 = vadd.f32 %v1087_v1, %v1086_v63  ;;  %v1127_v3 = vpop.f32.mrb[5].mxu1  ;;  %v1089_v4 = vpop.f32.mrb[6].mxu0 }
 0x111   : > { %v1128_v5 = vadd.f32 %v1127_v3, %v1126_v0  ;;  %v1129_v6 = vpop.f32.mrb[6].mxu1  ;;  %v1090_v7 = vpop.f32.mrb[7].mxu0 }
 0x112   : > { %v1091_v9 = vadd.f32 %v1090_v7, %v1089_v4  ;;  %v1130_v10 = vpop.f32.mrb[7].mxu1  ;;  %706 = vadd.xlane.f32.xlu0 %v705_v8 }
 0x113   : > { %v1131_v11 = vadd.f32 %v1130_v10, %v1129_v6  ;;  %v679_v12 = vadd.f32 %v1128_v5, %v1088_v2 }
 0x115   : > { %v708_v13 = vsel %vm701_vm0, %v679_v12, 0.0  ;;  %v682_v14 = vadd.f32 %v1131_v11, %v1091_v9 }
 0x116   : > { %709 = vadd.xlane.f32.xlu1 %v708_v13  ;;  %v1092_v15 = vpop.f32.mrb[8].mxu0 }
 0x117   : > { %v1132_v16 = vpop.f32.mrb[8].mxu1  ;;  %v1093_v17 = vpop.f32.mrb[9].mxu0  ;;  %v711_v24 = vsel %vm701_vm0, %v682_v14, 0.0 }
 0x118   : > { %v1094_v18 = vadd.f32 %v1093_v17, %v1092_v15  ;;  %v1133_v19 = vpop.f32.mrb[9].mxu1  ;;  %v1095_v20 = vpop.f32.mrb[10].mxu0 }
 0x119   : > { %v1134_v21 = vadd.f32 %v1133_v19, %v1132_v16  ;;  %v1135_v22 = vpop.f32.mrb[10].mxu1  ;;  %v1096_v23 = vpop.f32.mrb[11].mxu0 }
 0x11a   : > { %v1097_v25 = vadd.f32 %v1096_v23, %v1095_v20  ;;  %v1136_v26 = vpop.f32.mrb[11].mxu1  ;;  %712 = vadd.xlane.f32.xlu1 %v711_v24 }
 0x11b   : > { %v1137_v27 = vadd.f32 %v1136_v26, %v1135_v22  ;;  %v687_v28 = vadd.f32 %v1134_v21, %v1094_v18 }
 0x11d   : > { %v714_v29 = vsel %vm701_vm0, %v687_v28, 0.0  ;;  %v690_v30 = vadd.f32 %v1137_v27, %v1097_v25 }
 0x11e   : > { %715 = vadd.xlane.f32.xlu0 %v714_v29  ;;  %v1098_v31 = vpop.f32.mrb[12].mxu0 }
 0x11f   : > { %v1138_v32 = vpop.f32.mrb[12].mxu1  ;;  %v1099_v33 = vpop.f32.mrb[13].mxu0  ;;  %v717_v34 = vsel %vm701_vm0, %v690_v30, 0.0 }
 0x120   : > { %v1100_v35 = vadd.f32 %v1099_v33, %v1098_v31  ;;  %v1139_v36 = vpop.f32.mrb[13].mxu1  ;;  %718 = vadd.xlane.f32.xlu1 %v717_v34  ;;  %v1101_v37 = vpop.f32.mrb[14].mxu0 }
 0x121   : > { %v1140_v38 = vadd.f32 %v1139_v36, %v1138_v32  ;;  %v1141_v39 = vpop.f32.mrb[14].mxu1  ;;  %v1102_v40 = vpop.f32.mrb[15].mxu0 }
 0x122   : > { %v1103_v41 = vadd.f32 %v1102_v40, %v1101_v37  ;;  %v1142_v42 = vpop.f32.mrb[15].mxu1 }
 0x123   : > { %v1143_v43 = vadd.f32 %v1142_v42, %v1141_v39  ;;  %v695_v44 = vadd.f32 %v1140_v38, %v1100_v35 }
 0x125   : > { %v720_v45 = vsel %vm701_vm0, %v695_v44, 0.0  ;;  %v698_v46 = vadd.f32 %v1143_v43, %v1103_v41 }
 0x126   : > { %721 = vadd.xlane.f32.xlu0 %v720_v45 }
 0x127   : > { %v723_v47 = vsel %vm701_vm0, %v698_v46, 0.0 }
 0x128   : > { %724 = vadd.xlane.f32.xlu1 %v723_v47 }
 0x19b   : > { %v704_v48 = vpop.xlane.xlu0 %703 }
 0x19c   : > { %v726_v49 = vmul.f32 0.0625, %v704_v48 }
 0x19e   : > { %v734_v50 = vsub.f32 %v671_v60, %v726_v49 }
 0x19f   : > { %v707_v51 = vpop.xlane.xlu0 %706 }
 0x1a0   : > { %v727_v52 = vmul.f32 0.0625, %v707_v51  ;;  %v742_v53 = vmul.f32 %v734_v50, %v734_v50 }
 0x1a2   : > { %v1397_v54 = vsub.f32 %v1386_v62, %v727_v52  ;;  %v750_v55 = vsel %vm701_vm0, %v742_v53, 0.0 }
 0x1a3   : > { %v710_v56 = vpop.xlane.xlu1 %709  ;;  %751 = vadd.xlane.f32.xlu0 %v750_v55 }
 0x1a4   : > { %v728_v57 = vmul.f32 0.0625, %v710_v56  ;;  %v743_v58 = vmul.f32 %v1397_v54, %v1397_v54 }
 0x1a6   : > { %v1402_v59 = vsub.f32 %v679_v12, %v728_v57  ;;  %v753_v61 = vsel %vm701_vm0, %v743_v58, 0.0 }
 0x1a7   : > { %v713_v63 = vpop.xlane.xlu1 %712  ;;  %754 = vadd.xlane.f32.xlu1 %v753_v61 }
 0x1a8   : > { %v729_v60 = vmul.f32 0.0625, %v713_v63  ;;  %v744_v0 = vmul.f32 %v1402_v59, %v1402_v59 }
 0x1aa   : > { %v1407_v62 = vsub.f32 %v682_v14, %v729_v60  ;;  %v756_v1 = vsel %vm701_vm0, %v744_v0, 0.0 }
 0x1ab   : > { %757 = vadd.xlane.f32.xlu0 %v756_v1  ;;  %v716_v2 = vpop.xlane.xlu0 %715 }
 0x1ac   : > { %v730_v3 = vmul.f32 0.0625, %v716_v2  ;;  %v745_v4 = vmul.f32 %v1407_v62, %v1407_v62 }
 0x1ad   : > { %v719_v5 = vpop.xlane.xlu1 %718 }
 0x1ae   : > { %v1412_v6 = vsub.f32 %v687_v28, %v730_v3  ;;  %v731_v7 = vmul.f32 0.0625, %v719_v5  ;;  %v759_v8 = vsel %vm701_vm0, %v745_v4, 0.0 }
 0x1af   : > { %760 = vadd.xlane.f32.xlu1 %v759_v8 }
 0x1b0   : > { %v1415_v9 = vsub.f32 %v690_v30, %v731_v7  ;;  %v746_v10 = vmul.f32 %v1412_v6, %v1412_v6 }
 0x1b2   : > { %v762_v11 = vsel %vm701_vm0, %v746_v10, 0.0  ;;  %v747_v12 = vmul.f32 %v1415_v9, %v1415_v9 }
 0x1b3   : > { %763 = vadd.xlane.f32.xlu0 %v762_v11  ;;  %v722_v13 = vpop.xlane.xlu0 %721 }
 0x1b4   : > { %v732_v14 = vmul.f32 0.0625, %v722_v13  ;;  %v765_v15 = vsel %vm701_vm0, %v747_v12, 0.0 }
 0x1b5   : > { %v725_v16 = vpop.xlane.xlu1 %724  ;;  %766 = vadd.xlane.f32.xlu1 %v765_v15 }
 0x1b6   : > { %v1423_v17 = vsub.f32 %v695_v44, %v732_v14  ;;  %v733_v18 = vmul.f32 0.0625, %v725_v16 }
 0x1b8   : > { %v1425_v19 = vsub.f32 %v698_v46, %v733_v18  ;;  %v748_v20 = vmul.f32 %v1423_v17, %v1423_v17 }
 0x1ba   : > { %v768_v21 = vsel %vm701_vm0, %v748_v20, 0.0  ;;  %v749_v22 = vmul.f32 %v1425_v19, %v1425_v19 }
 0x1bb   : > { %769 = vadd.xlane.f32.xlu0 %v768_v21 }
 0x1bc   : > { %v771_v23 = vsel %vm701_vm0, %v749_v22, 0.0 }
 0x1bd   : > { %772 = vadd.xlane.f32.xlu1 %v771_v23 }
 0x230   : > { %v752_v24 = vpop.xlane.xlu0 %751 }
 0x231   : > { %v774_v25 = vmul.f32 0.0625, %v752_v24 }
 0x233   : > { %v782_v26 = vadd.f32 1e-05, %v774_v25 }
 0x234   : > { %v755_v27 = vpop.xlane.xlu1 %754 }
 0x235   : > { %1224 = vrsqrt.f32 %v782_v26  ;;  %v775_v28 = vmul.f32 0.0625, %v755_v27 }
 0x237   : > { %v783_v29 = vadd.f32 1e-05, %v775_v28 }
 0x238   : > { %v758_v30 = vpop.xlane.xlu0 %757 }
 0x239   : > { %1226 = vrsqrt.f32 %v783_v29  ;;  %v776_v31 = vmul.f32 0.0625, %v758_v30 }
 0x23b   : > { %v784_v32 = vadd.f32 1e-05, %v776_v31 }
 0x23c   : > { %v761_v33 = vpop.xlane.xlu1 %760 }
 0x23d   : > { %1228 = vrsqrt.f32 %v784_v32  ;;  %v777_v34 = vmul.f32 0.0625, %v761_v33 }
 0x23f   : > { %v1225_v35 = vpop.eup %1224  ;;  %v785_v36 = vadd.f32 1e-05, %v777_v34 }
 0x240   : > { %v798_v37 = vmul.f32 %v1225_v35, %v734_v50  ;;  %v764_v38 = vpop.xlane.xlu0 %763 }
 0x241   : > { %1230 = vrsqrt.f32 %v785_v36  ;;  %v778_v39 = vmul.f32 0.0625, %v764_v38 }
 0x242   : > { %vm806_vm1 = vcmp.gt.f32.partialorder %v798_v37, 0.0  ;;  %v814_v40 = vmul.f32 0.2, %v798_v37  ;;  %v767_v41 = vpop.xlane.xlu1 %766 }
 0x243   : > { %v1227_v42 = vpop.eup %1226  ;;  %v786_v43 = vadd.f32 1e-05, %v778_v39  ;;  %v779_v44 = vmul.f32 0.0625, %v767_v41 }
 0x244   : > { %v822_v45 = vsel %vm806_vm1, %v798_v37, %v814_v40  ;;  %v799_v46 = vmul.f32 %v1227_v42, %v1397_v54 }
 0x245   : > { %v1056_v47 = vpack.c.bf16 %v822_v45, %v822_v45  ;;  %1232 = vrsqrt.f32 %v786_v43  ;;  %v787_v48 = vadd.f32 1e-05, %v779_v44 }
 0x246   : > { %vm807_vm3 = vcmp.gt.f32.partialorder %v799_v46, 0.0  ;;  %v815_v49 = vmul.f32 0.2, %v799_v46 }
 0x247   : > { %v1229_v50 = vpop.eup %1228  ;;  %863 = vst.msk [vmem:[%s1437_s28] sm:$0xf] %vm862_vm2, %v1056_v47  ;;  %1234 = vrsqrt.f32 %v787_v48 }
 0x248   : > { %v823_v51 = vsel %vm807_vm3, %v799_v46, %v815_v49  ;;  %v800_v52 = vmul.f32 %v1229_v50, %v1402_v59  ;;  %v770_v53 = vpop.xlane.xlu0 %769 }
 0x249   : > { %v1057_v55 = vpack.c.bf16 %v823_v51, %v823_v51  ;;  %v780_v56 = vmul.f32 0.0625, %v770_v53 }
 0x24a   : > { %vm808_vm4 = vcmp.gt.f32.partialorder %v800_v52, 0.0  ;;  %v816_v57 = vmul.f32 0.2, %v800_v52  ;;  %v773_v54 = vpop.xlane.xlu1 %772 }
 0x24b   : > { %v1231_v58 = vpop.eup %1230  ;;  %864 = vst.msk [vmem:[%s1437_s28 + $0x4] sm:$0xf] %vm862_vm2, %v1057_v55  ;;  %v788_v61 = vadd.f32 1e-05, %v780_v56  ;;  %v781_v63 = vmul.f32 0.0625, %v773_v54 }
 0x24c   : > { %v824_v60 = vsel %vm808_vm4, %v800_v52, %v816_v57  ;;  %v801_v0 = vmul.f32 %v1231_v58, %v1407_v62 }
 0x24d   : > { %v1058_v1 = vpack.c.bf16 %v824_v60, %v824_v60  ;;  %1236 = vrsqrt.f32 %v788_v61  ;;  %v789_v2 = vadd.f32 1e-05, %v781_v63 }
 0x24e   : > { %vm809_vm5 = vcmp.gt.f32.partialorder %v801_v0, 0.0  ;;  %v817_v59 = vmul.f32 0.2, %v801_v0 }
 0x24f   : > { %v1233_v3 = vpop.eup %1232  ;;  %865 = vst.msk [vmem:[%s1437_s28 + $0x8] sm:$0xf] %vm862_vm2, %v1058_v1  ;;  %1238 = vrsqrt.f32 %v789_v2 }
 0x250   : > { %v825_v4 = vsel %vm809_vm5, %v801_v0, %v817_v59  ;;  %v802_v5 = vmul.f32 %v1233_v3, %v1412_v6 }
 0x251   : > { %v1235_v7 = vpop.eup %1234  ;;  %v1059_v8 = vpack.c.bf16 %v825_v4, %v825_v4 }
 0x252   : > { %vm810_vm6 = vcmp.gt.f32.partialorder %v802_v5, 0.0  ;;  %v818_v10 = vmul.f32 0.2, %v802_v5  ;;  %v803_v62 = vmul.f32 %v1235_v7, %v1415_v9 }
 0x253   : > { %866 = vst.msk [vmem:[%s1437_s28 + $0xc] sm:$0xf] %vm862_vm2, %v1059_v8 }
 0x254   : > { %v826_v11 = vsel %vm810_vm6, %v802_v5, %v818_v10  ;;  %vm811_vm7 = vcmp.gt.f32.partialorder %v803_v62, 0.0  ;;  %v819_v12 = vmul.f32 0.2, %v803_v62 }
 0x255   : > { %v1060_v13 = vpack.c.bf16 %v826_v11, %v826_v11 }
 0x256   : > { %v827_v14 = vsel %vm811_vm7, %v803_v62, %v819_v12 }
 0x257   : > { %v1237_v15 = vpop.eup %1236  ;;  %867 = vst.msk [vmem:[%s1437_s28 + $0x10] sm:$0xf] %vm862_vm2, %v1060_v13  ;;  %v1061_v6 = vpack.c.bf16 %v827_v14, %v827_v14 }
 0x258   : > { %v804_v16 = vmul.f32 %v1237_v15, %v1423_v17 }
 0x259   : > { %v1239_v18 = vpop.eup %1238  ;;  %868 = vst.msk [vmem:[%s1437_s28 + $0x14] sm:$0xf] %vm862_vm2, %v1061_v6 }
 0x25a   : > { %vm812_vm8 = vcmp.gt.f32.partialorder %v804_v16, 0.0  ;;  %v820_v9 = vmul.f32 0.2, %v804_v16  ;;  %v805_v20 = vmul.f32 %v1239_v18, %v1425_v19 }
 0x25c   : > { %v828_v21 = vsel %vm812_vm8, %v804_v16, %v820_v9  ;;  %vm813_vm9 = vcmp.gt.f32.partialorder %v805_v20, 0.0  ;;  %v821_v22 = vmul.f32 0.2, %v805_v20 }
 0x25d   : > { %v1062_v23 = vpack.c.bf16 %v828_v21, %v828_v21 }
 0x25e   : > { %v829_v24 = vsel %vm813_vm9, %v805_v20, %v821_v22 }
 0x25f   : > { %869 = vst.msk [vmem:[%s1437_s28 + $0x18] sm:$0xf] %vm862_vm2, %v1062_v23  ;;  %v1063_v25 = vpack.c.bf16 %v829_v24, %v829_v24 }
 0x261   : > { %870 = vst.msk [vmem:[%s1437_s28 + $0x1c] sm:$0xf] %vm862_vm2, %v1063_v25 }
 0x262 PF: > { %s12_s11 = sadd.s32 1, %s1262_s11   ;;  %s1474_s9 = smov %s1258_s10 }
 0x263   : > { %p9_p5 = scmp.ge.s32.totalorder %s12_s11, 4   ;;  %s1475_s10 = smov %s1477_s12 }
 0x265   :  { %11 = sbr.rel (!%p9_p5) target bundleno = 2 (0x2), region = 61 }

// kernel: nlayer_discriminator_forward.8
= control target key start
LH: loop header
LB: loop body
LE: loop exit
PB: predicated region body
PF: predicated region fallthrough
CT: control target
= control target key end

     0   :  { %s2545_s9 = smov 0   ;;  %s2547_s10 = smov 0   ;;  %s3114_s0 = inlined_call_operand.vmem [shape: bf16[2,1024,9], index: 0, kind: input, shape index: {}]   ;;  %s3115_s1 = inlined_call_operand.vmem [shape: bf16[128,1024], index: 1, kind: input, shape index: {}]   ;;  %s3116_s2 = inlined_call_operand.vmem [shape: bf16[2,128,9], index: 2, kind: output, shape index: {}]  }
   0x1   :  { %s2549_s11 = smov 0  }
   0x2 LB: > { %s31_s12 = sadd.s32 1, %s2524_s10  ;;  %p1961_p0 = scmp.ge.s32.totalorder %s2528_s11, 1  ;;  %s2528_s11 = sphi %s2549_s11, %s12_s11   ;;  %s2524_s10 = sphi %s2547_s10, %s3118_s10   ;;  %s2520_s9 = sphi %s2545_s9, %s3117_s9  }
   0x3   : > { %p33_p1 = scmp.ge.s32.totalorder %s31_s12, 2  ;;  %p152_p2 = scmp.lt.s32.totalorder %s2528_s11, 3 }
   0x5   : > { %s3120_s12 = smov (%p33_p1, %s31_s12), 0  ;;  %p153_p3 = pnand %p1961_p0, %p152_p2 }
   0x6   : > { %p190_p4 = scmp.lt.s32.totalorder (!%p153_p3), %s2520_s9, 1  ;;  %v2566_v0 = vld [vmem:[%s3115_s1] sm:$0xff] (!%p153_p3)  ;;  %v2576_v2 = vld [vmem:[%s3115_s1 + $0x8] sm:$0xff] (!%p153_p3)  ;;  %vm1503_vm0 = vcmask (!%p153_p3), 72704   ;;  %vm1824_vm2 = vcmask (!%p153_p3), 68608  }
   0x7   : > { %156 = sbr.rel (%p153_p3) target bundleno = 707 (0x2c3), region = 28  ;;  %v2571_v1 = vld [vmem:[%s3115_s1 + $0x20] sm:$0xff] (!%p153_p3)  ;;  %v2583_v4 = vld [vmem:[%s3115_s1 + $0x28] sm:$0xff] (!%p153_p3) }
   0x8   : > { %v1967_v3 = vcombine.high (!%p153_p3), %v2566_v0, %v2571_v1  ;;  %v1969_v5 = vcombine.high (!%p153_p3), %v2576_v2, %v2583_v4  ;;  %v227_v35 = vld [vmem:[%s3115_s1 + $0x40] sm:$0xff] (!%p153_p3)  ;;  %v228_v38 = vld [vmem:[%s3115_s1 + $0x48] sm:$0xff] (!%p153_p3)  ;;  %v1966_v42 = vcombine.low (!%p153_p3), %v2566_v0, %v2571_v1  ;;  %v1968_v43 = vcombine.low (!%p153_p3), %v2576_v2, %v2583_v4 }
   0x9   : > { %v231_v36 = vld [vmem:[%s3115_s1 + $0x60] sm:$0xff] (!%p153_p3)  ;;  %v232_v39 = vld [vmem:[%s3115_s1 + $0x68] sm:$0xff] (!%p153_p3) }
   0xa   : > { %1147 = vmatprep.mubr.bf16.mxu0 (!%p153_p3), %v1967_v3  ;;  %1244 = vmatprep.mubr.bf16.mxu1 (!%p153_p3), %v1969_v5  ;;  %v1975_v46 = vcombine.high (!%p153_p3), %v227_v35, %v231_v36  ;;  %v1977_v48 = vcombine.high (!%p153_p3), %v228_v38, %v232_v39  ;;  %v235_v50 = vld [vmem:[%s3115_s1 + $0x80] sm:$0xff] (!%p153_p3)  ;;  %v236_v53 = vld [vmem:[%s3115_s1 + $0x88] sm:$0xff] (!%p153_p3)  ;;  %v1974_v57 = vcombine.low (!%p153_p3), %v227_v35, %v231_v36 }
   0xb   : > { %v239_v51 = vld [vmem:[%s3115_s1 + $0xa0] sm:$0xff] (!%p153_p3)  ;;  %v240_v54 = vld [vmem:[%s3115_s1 + $0xa8] sm:$0xff] (!%p153_p3)  ;;  %v1976_v59 = vcombine.low (!%p153_p3), %v228_v38, %v232_v39 }
   0xc   : > { %v1983_v60 = vcombine.high (!%p153_p3), %v235_v50, %v239_v51  ;;  %v1985_v62 = vcombine.high (!%p153_p3), %v236_v53, %v240_v54  ;;  %v243_v2 = vld [vmem:[%s3115_s1 + $0xc0] sm:$0xff] (!%p153_p3)  ;;  %v244_v4 = vld [vmem:[%s3115_s1 + $0xc8] sm:$0xff] (!%p153_p3) }
   0xd   : > { %v247_v3 = vld [vmem:[%s3115_s1 + $0xe0] sm:$0xff] (!%p153_p3)  ;;  %v248_v5 = vld [vmem:[%s3115_s1 + $0xe8] sm:$0xff] (!%p153_p3) }
   0xe   : > { %s3122_s9 = smov (!%p190_p4, %s2520_s9), 1 }
   0xf   : > { %s2112_s21 = sshll.u32 %s3122_s9, 9 }
  0x10   : > { %s2593_s24 = scalar_lea.vmem %s3114_s0, %s2112_s21 }
  0x11   : > { %v2410_v6 = vld [vmem:[%s2593_s24 + $0x40] sm:$0xff]   ;;  %v2414_v10 = vld [vmem:[%s2593_s24 + $0x48] sm:$0xff]   ;;  %v2418_v14 = vld [vmem:[%s2593_s24 + $0x50] sm:$0xff]  }
  0x12   : > { %v2411_v7 = vld [vmem:[%s2593_s24 + $0xc0] sm:$0xff]   ;;  %2130 = vmatprep.subr.bf16.mxu0 %v2410_v6  ;;  %v2415_v11 = vld [vmem:[%s2593_s24 + $0xc8] sm:$0xff]   ;;  %v2419_v15 = vld [vmem:[%s2593_s24 + $0xd0] sm:$0xff]  }
  0x13   : > { %v2412_v8 = vld [vmem:[%s2593_s24] sm:$0xff]   ;;  %2194 = vmatprep.subr.bf16.mxu1 %v2411_v7  ;;  %v2416_v12 = vld [vmem:[%s2593_s24 + $0x8] sm:$0xff]   ;;  %v2420_v16 = vld [vmem:[%s2593_s24 + $0x10] sm:$0xff]  }
  0x14   : > { %v2413_v9 = vld [vmem:[%s2593_s24 + $0x80] sm:$0xff]   ;;  %2131 = vmatpush3.bf16.msra.mxu0 %v2412_v8  ;;  %v2417_v13 = vld [vmem:[%s2593_s24 + $0x88] sm:$0xff]   ;;  %v2421_v17 = vld [vmem:[%s2593_s24 + $0x90] sm:$0xff]  }
  0x15   : > { %2195 = vmatpush3.bf16.msra.mxu1 %v2413_v9  ;;  %2132 = vmatprep.subr.bf16.mxu0 %v2414_v10  ;;  %v2422_v18 = vld [vmem:[%s2593_s24 + $0x58] sm:$0xff]   ;;  %v2426_v22 = vld [vmem:[%s2593_s24 + $0x60] sm:$0xff]   ;;  %v2430_v26 = vld [vmem:[%s2593_s24 + $0x68] sm:$0xff]   ;;  %v1982_v9 = vcombine.low %v235_v50, %v239_v51 }
  0x16   : > { %2196 = vmatprep.subr.bf16.mxu1 %v2415_v11  ;;  %v2423_v19 = vld [vmem:[%s2593_s24 + $0xd8] sm:$0xff]   ;;  %v2427_v23 = vld [vmem:[%s2593_s24 + $0xe0] sm:$0xff]   ;;  %v2431_v27 = vld [vmem:[%s2593_s24 + $0xe8] sm:$0xff]   ;;  %v1984_v11 = vcombine.low %v236_v53, %v240_v54 }
  0x17   : > { %v2424_v20 = vld [vmem:[%s2593_s24 + $0x18] sm:$0xff]   ;;  %v2428_v24 = vld [vmem:[%s2593_s24 + $0x20] sm:$0xff]   ;;  %v2432_v28 = vld [vmem:[%s2593_s24 + $0x28] sm:$0xff]  }
  0x18   : > { %2133 = vmatpush3.bf16.msra.mxu0 %v2416_v12  ;;  %v2425_v21 = vld [vmem:[%s2593_s24 + $0x98] sm:$0xff]   ;;  %v2429_v25 = vld [vmem:[%s2593_s24 + $0xa0] sm:$0xff]   ;;  %v2433_v29 = vld [vmem:[%s2593_s24 + $0xa8] sm:$0xff]   ;;  %v1991_v12 = vcombine.high %v243_v2, %v247_v3 }
  0x19   : > { %2197 = vmatpush3.bf16.msra.mxu1 %v2417_v13  ;;  %2134 = vmatprep.subr.bf16.mxu0 %v2418_v14  ;;  %v2434_v30 = vld [vmem:[%s2593_s24 + $0x70] sm:$0xff]   ;;  %v2438_v34 = vld [vmem:[%s2593_s24 + $0x78] sm:$0xff]   ;;  %v2442_v44 = vld [vmem:[%s2593_s24 + $0x140] sm:$0xff]   ;;  %v1993_v13 = vcombine.high %v244_v4, %v248_v5 }
  0x1a   : > { %2198 = vmatprep.subr.bf16.mxu1 %v2419_v15  ;;  %v2435_v31 = vld [vmem:[%s2593_s24 + $0xf0] sm:$0xff]   ;;  %v2439_v37 = vld [vmem:[%s2593_s24 + $0xf8] sm:$0xff]   ;;  %v2443_v45 = vld [vmem:[%s2593_s24 + $0x100] sm:$0xff]  }
  0x1b   : > { %v2436_v32 = vld [vmem:[%s2593_s24 + $0x30] sm:$0xff]   ;;  %v2440_v40 = vld [vmem:[%s2593_s24 + $0x38] sm:$0xff]   ;;  %v2444_v47 = vld [vmem:[%s2593_s24 + $0x1c0] sm:$0xff]  }
  0x1c   : > { %2135 = vmatpush3.bf16.msra.mxu0 %v2420_v16  ;;  %v2437_v33 = vld [vmem:[%s2593_s24 + $0xb0] sm:$0xff]   ;;  %v2441_v41 = vld [vmem:[%s2593_s24 + $0xb8] sm:$0xff]   ;;  %v2445_v49 = vld [vmem:[%s2593_s24 + $0x180] sm:$0xff]  }
  0x1d   : > { %2199 = vmatpush3.bf16.msra.mxu1 %v2421_v17  ;;  %2136 = vmatprep.subr.bf16.mxu0 %v2422_v18  ;;  %v2446_v52 = vld [vmem:[%s2593_s24 + $0x148] sm:$0xff]   ;;  %v2450_v61 = vld [vmem:[%s2593_s24 + $0x150] sm:$0xff]   ;;  %v2454_v6 = vld [vmem:[%s2593_s24 + $0x158] sm:$0xff]  }
  0x1e   : > { %2200 = vmatprep.subr.bf16.mxu1 %v2423_v19  ;;  %v2447_v55 = vld [vmem:[%s2593_s24 + $0x108] sm:$0xff]   ;;  %v2451_v63 = vld [vmem:[%s2593_s24 + $0x110] sm:$0xff]   ;;  %v2455_v7 = vld [vmem:[%s2593_s24 + $0x118] sm:$0xff]  }
  0x1f   : > { %v2448_v56 = vld [vmem:[%s2593_s24 + $0x1c8] sm:$0xff]   ;;  %v2452_v0 = vld [vmem:[%s2593_s24 + $0x1d0] sm:$0xff]   ;;  %v2456_v8 = vld [vmem:[%s2593_s24 + $0x1d8] sm:$0xff]  }
  0x20   : > { %2137 = vmatpush3.bf16.msra.mxu0 %v2424_v20  ;;  %v2449_v58 = vld [vmem:[%s2593_s24 + $0x188] sm:$0xff]   ;;  %v2453_v1 = vld [vmem:[%s2593_s24 + $0x190] sm:$0xff]   ;;  %v2457_v10 = vld [vmem:[%s2593_s24 + $0x198] sm:$0xff]  }
  0x21   : > { %2201 = vmatpush3.bf16.msra.mxu1 %v2425_v21  ;;  %2138 = vmatprep.subr.bf16.mxu0 %v2426_v22  ;;  %v2458_v14 = vld [vmem:[%s2593_s24 + $0x160] sm:$0xff]   ;;  %v252_v20 = vld [vmem:[%s3115_s1 + $0x108] sm:$0xff]  ;;  %v2467_v35 = vld [vmem:[%s2593_s24 + $0x130] sm:$0xff]  }
  0x22   : > { %2202 = vmatprep.subr.bf16.mxu1 %v2427_v23  ;;  %v2459_v15 = vld [vmem:[%s2593_s24 + $0x120] sm:$0xff]   ;;  %v256_v21 = vld [vmem:[%s3115_s1 + $0x128] sm:$0xff]  ;;  %v1990_v23 = vcombine.low %v243_v2, %v247_v3  ;;  %v2468_v36 = vld [vmem:[%s2593_s24 + $0x1f0] sm:$0xff]  }
  0x23   : > { %v2460_v16 = vld [vmem:[%s2593_s24 + $0x1e0] sm:$0xff]   ;;  %v2462_v22 = vld [vmem:[%s2593_s24 + $0x168] sm:$0xff]   ;;  %v2469_v38 = vld [vmem:[%s2593_s24 + $0x1b0] sm:$0xff]   ;;  %v2000_v39 = vcombine.low %v252_v20, %v256_v21 }
  0x24   : > { %2139 = vmatpush3.bf16.msra.mxu0 %v2428_v24  ;;  %v251_v17 = vld [vmem:[%s3115_s1 + $0x100] sm:$0xff]  ;;  %v2463_v24 = vld [vmem:[%s2593_s24 + $0x128] sm:$0xff]  }
  0x25   : > { %2203 = vmatpush3.bf16.msra.mxu1 %v2429_v25  ;;  %2140 = vmatprep.subr.bf16.mxu0 %v2430_v26  ;;  %v2461_v18 = vld [vmem:[%s2593_s24 + $0x1a0] sm:$0xff]   ;;  %v1992_v25 = vcombine.low %v244_v4, %v248_v5 }
  0x26   : > { %2204 = vmatprep.subr.bf16.mxu1 %v2431_v27  ;;  %v255_v19 = vld [vmem:[%s3115_s1 + $0x120] sm:$0xff]  ;;  %v2464_v27 = vld [vmem:[%s2593_s24 + $0x1e8] sm:$0xff]  }
  0x27   : > { %v1999_v26 = vcombine.high %v251_v17, %v255_v19  ;;  %v275_v54 = vld [vmem:[%s3115_s1 + $0x1c0] sm:$0xff] }
  0x28   : > { %2141 = vmatpush3.bf16.msra.mxu0 %v2432_v28  ;;  %v2001_v28 = vcombine.high %v252_v20, %v256_v21 }
  0x29   : > { %2205 = vmatpush3.bf16.msra.mxu1 %v2433_v29  ;;  %2142 = vmatprep.subr.bf16.mxu0 %v2434_v30  ;;  %v2465_v29 = vld [vmem:[%s2593_s24 + $0x1a8] sm:$0xff]   ;;  %v259_v30 = vld [vmem:[%s3115_s1 + $0x140] sm:$0xff] }
  0x2a   : > { %2206 = vmatprep.subr.bf16.mxu1 %v2435_v31  ;;  %v263_v31 = vld [vmem:[%s3115_s1 + $0x160] sm:$0xff] }
  0x2b   : > { %v2006_v50 = vcombine.low %v259_v30, %v263_v31 }
  0x2c   : > { %2143 = vmatpush3.bf16.msra.mxu0 %v2436_v32  ;;  %v260_v32 = vld [vmem:[%s3115_s1 + $0x148] sm:$0xff] }
  0x2d   : > { %2207 = vmatpush3.bf16.msra.mxu1 %v2437_v33  ;;  %2144 = vmatprep.subr.bf16.mxu0 %v2438_v34  ;;  %v264_v33 = vld [vmem:[%s3115_s1 + $0x168] sm:$0xff]  ;;  %v2466_v34 = vld [vmem:[%s2593_s24 + $0x170] sm:$0xff]  }
  0x2e   : > { %2208 = vmatprep.subr.bf16.mxu1 %v2439_v37  ;;  %v1998_v37 = vcombine.low %v251_v17, %v255_v19  ;;  %v2008_v51 = vcombine.low %v260_v32, %v264_v33  ;;  %v242_v17 = vld [vmem:[%s3115_s1 + $0xb8] sm:$0xff] }
  0x30   : > { %2145 = vmatpush3.bf16.msra.mxu0 %v2440_v40  ;;  %v2007_v40 = vcombine.high %v259_v30, %v263_v31  ;;  %v253_v30 = vld [vmem:[%s3115_s1 + $0x110] sm:$0xff] }
  0x31   : > { %2209 = vmatpush3.bf16.msra.mxu1 %v2441_v41  ;;  %2258 = vmatprep.subr.bf16.mxu0 %v2442_v44  ;;  %v2009_v41 = vcombine.high %v260_v32, %v264_v33  ;;  %v2472_v44 = vld [vmem:[%s2593_s24 + $0x1f8] sm:$0xff]   ;;  %v257_v31 = vld [vmem:[%s3115_s1 + $0x130] sm:$0xff] }
  0x32   : > { %2322 = vmatprep.subr.bf16.mxu1 %v2444_v47  ;;  %v271_v47 = vld [vmem:[%s3115_s1 + $0x1a0] sm:$0xff]  ;;  %v254_v32 = vld [vmem:[%s3115_s1 + $0x118] sm:$0xff] }
  0x33   : > { %1148 = vmatmul.mubr.bf16.vlgmr.msra.gmra.mrb[0].mxu0 %v1966_v42  ;;  %v2470_v42 = vld [vmem:[%s2593_s24 + $0x178] sm:$0xff]  }
  0x34   : > { %1245 = vmatmul.mubr.bf16.vlgmr.msra.gmra.mrb[0].mxu1 %v1968_v43  ;;  %2259 = vmatpush3.bf16.msra.mxu0 %v2443_v45  ;;  %v2471_v43 = vld [vmem:[%s2593_s24 + $0x138] sm:$0xff]  }
  0x35   : > { %1155 = vmatprep.mubr.bf16.mxu0 %v1975_v46  ;;  %2323 = vmatpush3.bf16.msra.mxu1 %v2445_v49  ;;  %v2473_v45 = vld [vmem:[%s2593_s24 + $0x1b8] sm:$0xff]   ;;  %v267_v46 = vld [vmem:[%s3115_s1 + $0x180] sm:$0xff]  ;;  %v272_v49 = vld [vmem:[%s3115_s1 + $0x1a8] sm:$0xff]  ;;  %s2113_s24 = sshll.u32 %s3122_s9, 6 }
  0x36   : > { %1252 = vmatprep.mubr.bf16.mxu1 %v1977_v48  ;;  %2260 = vmatprep.subr.bf16.mxu0 %v2446_v52  ;;  %v268_v48 = vld [vmem:[%s3115_s1 + $0x188] sm:$0xff]  ;;  %v2015_v52 = vcombine.high %v267_v46, %v271_v47  ;;  %v258_v33 = vld [vmem:[%s3115_s1 + $0x138] sm:$0xff]  ;;  %s3056_s29 = scalar_lea.vmem %s3116_s2, %s2113_s24 }
  0x37   : > { %2324 = vmatprep.subr.bf16.mxu1 %v2448_v56  ;;  %v2017_v53 = vcombine.high %v268_v48, %v272_v49  ;;  %v276_v56 = vld [vmem:[%s3115_s1 + $0x1c8] sm:$0xff] }
  0x38   : > { %2261 = vmatpush3.bf16.msra.mxu0 %v2447_v55  ;;  %v279_v55 = vld [vmem:[%s3115_s1 + $0x1e0] sm:$0xff] }
  0x39   : > { %2325 = vmatpush3.bf16.msra.mxu1 %v2449_v58  ;;  %2262 = vmatprep.subr.bf16.mxu0 %v2450_v61  ;;  %v2014_v58 = vcombine.low %v267_v46, %v271_v47  ;;  %v2022_v2 = vcombine.low %v275_v54, %v279_v55  ;;  %v269_v46 = vld [vmem:[%s3115_s1 + $0x190] sm:$0xff] }
  0x3a   : > { %2326 = vmatprep.subr.bf16.mxu1 %v2452_v0  ;;  %v222_v0 = vld [vmem:[%s3115_s1 + $0x18] sm:$0xff]  ;;  %v273_v47 = vld [vmem:[%s3115_s1 + $0x1b0] sm:$0xff] }
  0x3b   : > { %1156 = vmatmul.mubr.bf16.gmra.mrb[4].mxu0 %v1974_v57  ;;  %v280_v57 = vld [vmem:[%s3115_s1 + $0x1e8] sm:$0xff] }
  0x3c   : > { %1253 = vmatmul.mubr.bf16.gmra.mrb[4].mxu1 %v1976_v59  ;;  %1163 = vmatprep.mubr.bf16.mxu0 %v1983_v60  ;;  %v2016_v59 = vcombine.low %v268_v48, %v272_v49  ;;  %v2023_v60 = vcombine.high %v275_v54, %v279_v55  ;;  %v2025_v61 = vcombine.high %v276_v56, %v280_v57  ;;  %v270_v48 = vld [vmem:[%s3115_s1 + $0x198] sm:$0xff]  ;;  %v277_v54 = vld [vmem:[%s3115_s1 + $0x1d0] sm:$0xff] }
  0x3d   : > { %1260 = vmatprep.mubr.bf16.mxu1 %v1985_v62  ;;  %2263 = vmatpush3.bf16.msra.mxu0 %v2451_v63  ;;  %v221_v62 = vld [vmem:[%s3115_s1 + $0x10] sm:$0xff]  ;;  %v2024_v3 = vcombine.low %v276_v56, %v280_v57  ;;  %v274_v49 = vld [vmem:[%s3115_s1 + $0x1b8] sm:$0xff] }
  0x3e   : > { %2264 = vmatprep.subr.bf16.mxu0 %v2454_v6  ;;  %2327 = vmatpush3.bf16.msra.mxu1 %v2453_v1  ;;  %v225_v63 = vld [vmem:[%s3115_s1 + $0x30] sm:$0xff]  ;;  %v226_v1 = vld [vmem:[%s3115_s1 + $0x38] sm:$0xff] }
  0x3f   : > { %2328 = vmatprep.subr.bf16.mxu1 %v2456_v8  ;;  %v1971_v4 = vcombine.high %v221_v62, %v225_v63  ;;  %v1973_v5 = vcombine.high %v222_v0, %v226_v1  ;;  %v229_v6 = vld [vmem:[%s3115_s1 + $0x50] sm:$0xff]  ;;  %v230_v8 = vld [vmem:[%s3115_s1 + $0x58] sm:$0xff] }
  0x40   : > { %v281_v55 = vld [vmem:[%s3115_s1 + $0x1f0] sm:$0xff]  ;;  %v278_v56 = vld [vmem:[%s3115_s1 + $0x1d8] sm:$0xff] }
  0x41   : > { %2265 = vmatpush3.bf16.msra.mxu0 %v2455_v7  ;;  %v233_v7 = vld [vmem:[%s3115_s1 + $0x70] sm:$0xff]  ;;  %v282_v57 = vld [vmem:[%s3115_s1 + $0x1f8] sm:$0xff] }
  0x42   : > { %2329 = vmatpush3.bf16.msra.mxu1 %v2457_v10  ;;  %2266 = vmatprep.subr.bf16.mxu0 %v2458_v14  ;;  %v1970_v10 = vcombine.low %v221_v62, %v225_v63  ;;  %v237_v14 = vld [vmem:[%s3115_s1 + $0x90] sm:$0xff]  ;;  %v2026_v62 = vcombine.low %v277_v54, %v281_v55  ;;  %v2028_v63 = vcombine.low %v278_v56, %v282_v57 }
  0x43   : > { %1164 = vmatmul.mubr.bf16.gmra.mrb[8].mxu0 %v1982_v9  ;;  %2330 = vmatprep.subr.bf16.mxu1 %v2460_v16  ;;  %v234_v9 = vld [vmem:[%s3115_s1 + $0x78] sm:$0xff] }
  0x44   : > { %1261 = vmatmul.mubr.bf16.gmra.mrb[8].mxu1 %v1984_v11  ;;  %1171 = vmatprep.mubr.bf16.mxu0 %v1991_v12  ;;  %v1972_v11 = vcombine.low %v222_v0, %v226_v1  ;;  %v1979_v12 = vcombine.high %v229_v6, %v233_v7  ;;  %v238_v16 = vld [vmem:[%s3115_s1 + $0x98] sm:$0xff]  ;;  %v1980_v19 = vcombine.low %v230_v8, %v234_v9 }
  0x45   : > { %1268 = vmatprep.mubr.bf16.mxu1 %v1993_v13  ;;  %2267 = vmatpush3.bf16.msra.mxu0 %v2459_v15  ;;  %v1981_v13 = vcombine.high %v230_v8, %v234_v9  ;;  %v241_v15 = vld [vmem:[%s3115_s1 + $0xb0] sm:$0xff]  ;;  %v1989_v21 = vcombine.high %v238_v16, %v242_v17 }
  0x46   : > { %2331 = vmatpush3.bf16.msra.mxu1 %v2461_v18  ;;  %2268 = vmatprep.subr.bf16.mxu0 %v2462_v22  ;;  %v1978_v18 = vcombine.low %v229_v6, %v233_v7  ;;  %v1987_v20 = vcombine.high %v237_v14, %v241_v15  ;;  %v245_v22 = vld [vmem:[%s3115_s1 + $0xd0] sm:$0xff] }
  0x47   : > { %2332 = vmatprep.subr.bf16.mxu1 %v2464_v27  ;;  %v1988_v27 = vcombine.low %v238_v16, %v242_v17 }
  0x49   : > { %2269 = vmatpush3.bf16.msra.mxu0 %v2463_v24  ;;  %v246_v24 = vld [vmem:[%s3115_s1 + $0xd8] sm:$0xff] }
  0x4a   : > { %2333 = vmatpush3.bf16.msra.mxu1 %v2465_v29  ;;  %2270 = vmatprep.subr.bf16.mxu0 %v2466_v34 }
  0x4b   : > { %1172 = vmatmul.mubr.bf16.gmra.mrb[12].mxu0 %v1990_v23  ;;  %2334 = vmatprep.subr.bf16.mxu1 %v2468_v36  ;;  %v249_v23 = vld [vmem:[%s3115_s1 + $0xf0] sm:$0xff]  ;;  %v2003_v36 = vcombine.high %v253_v30, %v257_v31 }
  0x4c   : > { %1269 = vmatmul.mubr.bf16.gmra.mrb[12].mxu1 %v1992_v25  ;;  %1179 = vmatprep.mubr.bf16.mxu0 %v1999_v26  ;;  %v250_v25 = vld [vmem:[%s3115_s1 + $0xf8] sm:$0xff]  ;;  %v1986_v26 = vcombine.low %v237_v14, %v241_v15  ;;  %v1994_v34 = vcombine.low %v245_v22, %v249_v23 }
  0x4d   : > { %1276 = vmatprep.mubr.bf16.mxu1 %v2001_v28  ;;  %2271 = vmatpush3.bf16.msra.mxu0 %v2467_v35  ;;  %v1995_v28 = vcombine.high %v245_v22, %v249_v23  ;;  %v1997_v29 = vcombine.high %v246_v24, %v250_v25  ;;  %v1996_v35 = vcombine.low %v246_v24, %v250_v25 }
  0x4e   : > { %2335 = vmatpush3.bf16.msra.mxu1 %v2469_v38  ;;  %2272 = vmatprep.subr.bf16.mxu0 %v2470_v42  ;;  %v261_v38 = vld [vmem:[%s3115_s1 + $0x150] sm:$0xff]  ;;  %v2002_v42 = vcombine.low %v253_v30, %v257_v31 }
  0x4f   : > { %2336 = vmatprep.subr.bf16.mxu1 %v2472_v44 }
  0x51   : > { %2273 = vmatpush3.bf16.msra.mxu0 %v2471_v43  ;;  %v2004_v43 = vcombine.low %v254_v32, %v258_v33 }
  0x52   : > { %2337 = vmatpush3.bf16.msra.mxu1 %v2473_v45 }
  0x53   : > { %1180 = vmatmul.mubr.bf16.gmra.mrb[16].mxu0 %v1998_v37  ;;  %v2005_v37 = vcombine.high %v254_v32, %v258_v33 }
  0x54   : > { %1277 = vmatmul.mubr.bf16.gmra.mrb[16].mxu1 %v2000_v39  ;;  %1187 = vmatprep.mubr.bf16.mxu0 %v2007_v40  ;;  %v265_v39 = vld [vmem:[%s3115_s1 + $0x170] sm:$0xff]  ;;  %v262_v40 = vld [vmem:[%s3115_s1 + $0x158] sm:$0xff] }
  0x55   : > { %1284 = vmatprep.mubr.bf16.mxu1 %v2009_v41  ;;  %v266_v41 = vld [vmem:[%s3115_s1 + $0x178] sm:$0xff]  ;;  %v2011_v44 = vcombine.high %v261_v38, %v265_v39 }
  0x56   : > { %v2013_v45 = vcombine.high %v262_v40, %v266_v41 }
  0x5b   : > { %1188 = vmatmul.mubr.bf16.gmra.mrb[20].mxu0 %v2006_v50  ;;  %v2010_v50 = vcombine.low %v261_v38, %v265_v39 }
  0x5c   : > { %1285 = vmatmul.mubr.bf16.gmra.mrb[20].mxu1 %v2008_v51  ;;  %1195 = vmatprep.mubr.bf16.mxu0 %v2015_v52  ;;  %v2012_v51 = vcombine.low %v262_v40, %v266_v41  ;;  %v2019_v52 = vcombine.high %v269_v46, %v273_v47 }
  0x5d   : > { %1292 = vmatprep.mubr.bf16.mxu1 %v2017_v53  ;;  %v2021_v53 = vcombine.high %v270_v48, %v274_v49 }
  0x63   : > { %1196 = vmatmul.mubr.bf16.gmra.mrb[24].mxu0 %v2014_v58  ;;  %v2018_v58 = vcombine.low %v269_v46, %v273_v47 }
  0x64   : > { %1293 = vmatmul.mubr.bf16.gmra.mrb[24].mxu1 %v2016_v59  ;;  %1203 = vmatprep.mubr.bf16.mxu0 %v2023_v60  ;;  %v2020_v59 = vcombine.low %v270_v48, %v274_v49  ;;  %v2027_v60 = vcombine.high %v277_v54, %v281_v55 }
  0x65   : > { %1300 = vmatprep.mubr.bf16.mxu1 %v2025_v61  ;;  %v2029_v61 = vcombine.high %v278_v56, %v282_v57 }
  0x6b   : > { %1204 = vmatmul.mubr.bf16.gmra.mrb[28].mxu0 %v2022_v2 }
  0x6c   : > { %1301 = vmatmul.mubr.bf16.gmra.mrb[28].mxu1 %v2024_v3  ;;  %1341 = vmatprep.mubr.bf16.mxu0 %v1971_v4 }
  0x6d   : > { %1438 = vmatprep.mubr.bf16.mxu1 %v1973_v5 }
  0x73   : > { %1342 = vmatmul.mubr.bf16.vlgmr.msra.gmra.mrb[32].mxu0 %v1970_v10 }
  0x74   : > { %1439 = vmatmul.mubr.bf16.vlgmr.msra.gmra.mrb[32].mxu1 %v1972_v11  ;;  %1349 = vmatprep.mubr.bf16.mxu0 %v1979_v12 }
  0x75   : > { %1446 = vmatprep.mubr.bf16.mxu1 %v1981_v13 }
  0x7b   : > { %1350 = vmatmul.mubr.bf16.gmra.mrb[36].mxu0 %v1978_v18 }
  0x7c   : > { %1447 = vmatmul.mubr.bf16.gmra.mrb[36].mxu1 %v1980_v19  ;;  %1357 = vmatprep.mubr.bf16.mxu0 %v1987_v20 }
  0x7d   : > { %1454 = vmatprep.mubr.bf16.mxu1 %v1989_v21 }
  0x83   : > { %1358 = vmatmul.mubr.bf16.gmra.mrb[40].mxu0 %v1986_v26 }
  0x84   : > { %1455 = vmatmul.mubr.bf16.gmra.mrb[40].mxu1 %v1988_v27  ;;  %1365 = vmatprep.mubr.bf16.mxu0 %v1995_v28 }
  0x85   : > { %1462 = vmatprep.mubr.bf16.mxu1 %v1997_v29 }
  0x8b   : > { %1366 = vmatmul.mubr.bf16.gmra.mrb[44].mxu0 %v1994_v34 }
  0x8c   : > { %1463 = vmatmul.mubr.bf16.gmra.mrb[44].mxu1 %v1996_v35  ;;  %1373 = vmatprep.mubr.bf16.mxu0 %v2003_v36 }
  0x8d   : > { %1470 = vmatprep.mubr.bf16.mxu1 %v2005_v37 }
  0x93   : > { %1374 = vmatmul.mubr.bf16.gmra.mrb[48].mxu0 %v2002_v42 }
  0x94   : > { %1471 = vmatmul.mubr.bf16.gmra.mrb[48].mxu1 %v2004_v43  ;;  %1381 = vmatprep.mubr.bf16.mxu0 %v2011_v44 }
  0x95   : > { %1478 = vmatprep.mubr.bf16.mxu1 %v2013_v45 }
  0x9b   : > { %1382 = vmatmul.mubr.bf16.gmra.mrb[52].mxu0 %v2010_v50 }
  0x9c   : > { %1479 = vmatmul.mubr.bf16.gmra.mrb[52].mxu1 %v2012_v51  ;;  %1389 = vmatprep.mubr.bf16.mxu0 %v2019_v52 }
  0x9d   : > { %1486 = vmatprep.mubr.bf16.mxu1 %v2021_v53 }
  0xa3   : > { %1390 = vmatmul.mubr.bf16.gmra.mrb[56].mxu0 %v2018_v58 }
  0xa4   : > { %1487 = vmatmul.mubr.bf16.gmra.mrb[56].mxu1 %v2020_v59  ;;  %1397 = vmatprep.mubr.bf16.mxu0 %v2027_v60 }
  0xa5   : > { %1494 = vmatprep.mubr.bf16.mxu1 %v2029_v61 }
  0xab   : > { %1398 = vmatmul.mubr.bf16.gmra.mrb[60].mxu0 %v2026_v62 }
  0xac   : > { %1495 = vmatmul.mubr.bf16.gmra.mrb[60].mxu1 %v2028_v63 }
 0x106   : > { %v2146_v0 = vpop.f32.mrb[0].mxu0 }
 0x107   : > { %v2210_v1 = vpop.f32.mrb[0].mxu1  ;;  %v2147_v2 = vpop.f32.mrb[1].mxu0 }
 0x108   : > { %v2148_v3 = vadd.f32 %v2147_v2, %v2146_v0  ;;  %v2211_v4 = vpop.f32.mrb[1].mxu1  ;;  %v2149_v5 = vpop.f32.mrb[2].mxu0 }
 0x109   : > { %v2212_v6 = vadd.f32 %v2211_v4, %v2210_v1  ;;  %v2213_v7 = vpop.f32.mrb[2].mxu1  ;;  %v2150_v8 = vpop.f32.mrb[3].mxu0 }
 0x10a   : > { %v2151_v9 = vadd.f32 %v2150_v8, %v2149_v5  ;;  %v2214_v10 = vpop.f32.mrb[3].mxu1 }
 0x10b   : > { %v2843_v11 = vadd.f32 %v2212_v6, %v2148_v3  ;;  %v2215_v12 = vadd.f32 %v2214_v10, %v2213_v7 }
 0x10d   : > { %v2845_v13 = vadd.f32 %v2215_v12, %v2151_v9 }
 0x10e   : > { %v2152_v14 = vpop.f32.mrb[4].mxu0 }
 0x10f   : > { %v2216_v15 = vpop.f32.mrb[4].mxu1  ;;  %v2153_v16 = vpop.f32.mrb[5].mxu0 }
 0x110   : > { %v2154_v17 = vadd.f32 %v2153_v16, %v2152_v14  ;;  %v2217_v18 = vpop.f32.mrb[5].mxu1  ;;  %v2155_v19 = vpop.f32.mrb[6].mxu0 }
 0x111   : > { %v2218_v20 = vadd.f32 %v2217_v18, %v2216_v15  ;;  %v2219_v21 = vpop.f32.mrb[6].mxu1  ;;  %v2156_v22 = vpop.f32.mrb[7].mxu0 }
 0x112   : > { %v2157_v23 = vadd.f32 %v2156_v22, %v2155_v19  ;;  %v2220_v24 = vpop.f32.mrb[7].mxu1 }
 0x113   : > { %v2847_v25 = vadd.f32 %v2218_v20, %v2154_v17  ;;  %v2221_v26 = vadd.f32 %v2220_v24, %v2219_v21 }
 0x115   : > { %v2849_v27 = vadd.f32 %v2221_v26, %v2157_v23 }
 0x116   : > { %v2158_v28 = vpop.f32.mrb[8].mxu0 }
 0x117   : > { %v2222_v29 = vpop.f32.mrb[8].mxu1  ;;  %v2159_v30 = vpop.f32.mrb[9].mxu0 }
 0x118   : > { %v2160_v31 = vadd.f32 %v2159_v30, %v2158_v28  ;;  %v2223_v32 = vpop.f32.mrb[9].mxu1  ;;  %v2161_v33 = vpop.f32.mrb[10].mxu0 }
 0x119   : > { %v2224_v34 = vadd.f32 %v2223_v32, %v2222_v29  ;;  %v2225_v35 = vpop.f32.mrb[10].mxu1  ;;  %v2162_v36 = vpop.f32.mrb[11].mxu0 }
 0x11a   : > { %v2163_v37 = vadd.f32 %v2162_v36, %v2161_v33  ;;  %v2226_v38 = vpop.f32.mrb[11].mxu1 }
 0x11b   : > { %v2851_v39 = vadd.f32 %v2224_v34, %v2160_v31  ;;  %v2227_v40 = vadd.f32 %v2226_v38, %v2225_v35 }
 0x11d   : > { %v2853_v41 = vadd.f32 %v2227_v40, %v2163_v37 }
 0x11e   : > { %v2164_v42 = vpop.f32.mrb[12].mxu0 }
 0x11f   : > { %v2228_v43 = vpop.f32.mrb[12].mxu1  ;;  %v2165_v44 = vpop.f32.mrb[13].mxu0 }
 0x120   : > { %v2166_v45 = vadd.f32 %v2165_v44, %v2164_v42  ;;  %v2229_v46 = vpop.f32.mrb[13].mxu1  ;;  %v2167_v47 = vpop.f32.mrb[14].mxu0 }
 0x121   : > { %v2230_v48 = vadd.f32 %v2229_v46, %v2228_v43  ;;  %v2231_v49 = vpop.f32.mrb[14].mxu1  ;;  %v2168_v50 = vpop.f32.mrb[15].mxu0 }
 0x122   : > { %v2169_v51 = vadd.f32 %v2168_v50, %v2167_v47  ;;  %v2232_v52 = vpop.f32.mrb[15].mxu1 }
 0x123   : > { %v2855_v53 = vadd.f32 %v2230_v48, %v2166_v45  ;;  %v2233_v54 = vadd.f32 %v2232_v52, %v2231_v49 }
 0x125   : > { %v2857_v55 = vadd.f32 %v2233_v54, %v2169_v51 }
 0x126   : > { %v2170_v56 = vpop.f32.mrb[16].mxu0 }
 0x127   : > { %v2234_v57 = vpop.f32.mrb[16].mxu1  ;;  %v2171_v58 = vpop.f32.mrb[17].mxu0 }
 0x128   : > { %v2172_v59 = vadd.f32 %v2171_v58, %v2170_v56  ;;  %v2235_v60 = vpop.f32.mrb[17].mxu1  ;;  %v2173_v61 = vpop.f32.mrb[18].mxu0 }
 0x129   : > { %v2236_v62 = vadd.f32 %v2235_v60, %v2234_v57  ;;  %v2237_v63 = vpop.f32.mrb[18].mxu1  ;;  %v2174_v0 = vpop.f32.mrb[19].mxu0 }
 0x12a   : > { %v2175_v1 = vadd.f32 %v2174_v0, %v2173_v61  ;;  %v2238_v2 = vpop.f32.mrb[19].mxu1 }
 0x12b   : > { %v2859_v3 = vadd.f32 %v2236_v62, %v2172_v59  ;;  %v2239_v4 = vadd.f32 %v2238_v2, %v2237_v63 }
 0x12d   : > { %v2861_v5 = vadd.f32 %v2239_v4, %v2175_v1 }
 0x12e   : > { %v2176_v6 = vpop.f32.mrb[20].mxu0 }
 0x12f   : > { %v2240_v7 = vpop.f32.mrb[20].mxu1  ;;  %v2177_v8 = vpop.f32.mrb[21].mxu0 }
 0x130   : > { %v2178_v9 = vadd.f32 %v2177_v8, %v2176_v6  ;;  %v2241_v10 = vpop.f32.mrb[21].mxu1  ;;  %v2179_v12 = vpop.f32.mrb[22].mxu0 }
 0x131   : > { %v2242_v14 = vadd.f32 %v2241_v10, %v2240_v7  ;;  %v2243_v15 = vpop.f32.mrb[22].mxu1  ;;  %v2180_v16 = vpop.f32.mrb[23].mxu0 }
 0x132   : > { %v2181_v17 = vadd.f32 %v2180_v16, %v2179_v12  ;;  %v2244_v18 = vpop.f32.mrb[23].mxu1 }
 0x133   : > { %v2863_v19 = vadd.f32 %v2242_v14, %v2178_v9  ;;  %v2245_v20 = vadd.f32 %v2244_v18, %v2243_v15 }
 0x135   : > { %v2865_v21 = vadd.f32 %v2245_v20, %v2181_v17 }
 0x136   : > { %v2182_v22 = vpop.f32.mrb[24].mxu0 }
 0x137   : > { %v2246_v23 = vpop.f32.mrb[24].mxu1  ;;  %v2183_v24 = vpop.f32.mrb[25].mxu0 }
 0x138   : > { %v2184_v26 = vadd.f32 %v2183_v24, %v2182_v22  ;;  %v2247_v28 = vpop.f32.mrb[25].mxu1  ;;  %v2185_v29 = vpop.f32.mrb[26].mxu0 }
 0x139   : > { %v2248_v30 = vadd.f32 %v2247_v28, %v2246_v23  ;;  %v2249_v31 = vpop.f32.mrb[26].mxu1  ;;  %v2186_v32 = vpop.f32.mrb[27].mxu0 }
 0x13a   : > { %v2187_v33 = vadd.f32 %v2186_v32, %v2185_v29  ;;  %v2250_v34 = vpop.f32.mrb[27].mxu1 }
 0x13b   : > { %v2867_v35 = vadd.f32 %v2248_v30, %v2184_v26  ;;  %v2251_v36 = vadd.f32 %v2250_v34, %v2249_v31 }
 0x13d   : > { %v2869_v37 = vadd.f32 %v2251_v36, %v2187_v33 }
 0x13e   : > { %v2188_v38 = vpop.f32.mrb[28].mxu0 }
 0x13f   : > { %v2252_v40 = vpop.f32.mrb[28].mxu1  ;;  %v2189_v42 = vpop.f32.mrb[29].mxu0 }
 0x140   : > { %v2190_v43 = vadd.f32 %v2189_v42, %v2188_v38  ;;  %v2253_v44 = vpop.f32.mrb[29].mxu1  ;;  %v2191_v45 = vpop.f32.mrb[30].mxu0 }
 0x141   : > { %v2254_v46 = vadd.f32 %v2253_v44, %v2252_v40  ;;  %v2255_v47 = vpop.f32.mrb[30].mxu1  ;;  %v2192_v48 = vpop.f32.mrb[31].mxu0 }
 0x142   : > { %v2193_v49 = vadd.f32 %v2192_v48, %v2191_v45  ;;  %v2256_v50 = vpop.f32.mrb[31].mxu1 }
 0x143   : > { %v2871_v51 = vadd.f32 %v2254_v46, %v2190_v43  ;;  %v2257_v52 = vadd.f32 %v2256_v50, %v2255_v47 }
 0x145   : > { %v2873_v54 = vadd.f32 %v2257_v52, %v2193_v49 }
 0x146   : > { %v2274_v56 = vpop.f32.mrb[32].mxu0 }
 0x147   : > { %v2338_v57 = vpop.f32.mrb[32].mxu1  ;;  %v2275_v58 = vpop.f32.mrb[33].mxu0 }
 0x148   : > { %v2276_v59 = vadd.f32 %v2275_v58, %v2274_v56  ;;  %v2339_v60 = vpop.f32.mrb[33].mxu1  ;;  %v2277_v61 = vpop.f32.mrb[34].mxu0 }
 0x149   : > { %v2340_v62 = vadd.f32 %v2339_v60, %v2338_v57  ;;  %v2341_v63 = vpop.f32.mrb[34].mxu1  ;;  %v2278_v0 = vpop.f32.mrb[35].mxu0 }
 0x14a   : > { %v1344_v1 = vadd.f32 %v2276_v59, %v2843_v11  ;;  %v2279_v2 = vadd.f32 %v2278_v0, %v2277_v61  ;;  %v2342_v4 = vpop.f32.mrb[35].mxu1 }
 0x14b   : > { %v2343_v6 = vadd.f32 %v2342_v4, %v2341_v63 }
 0x14c   : > { %v1347_v7 = vadd.f32 %v2279_v2, %v2845_v13  ;;  %v2877_v8 = vadd.f32 %v2340_v62, %v1344_v1 }
 0x14e   : > { %v2280_v9 = vpop.f32.mrb[36].mxu0  ;;  %v1504_v10 = vsel %vm1503_vm0, %v2877_v8, 0.0  ;;  %v2881_v12 = vadd.f32 %v2343_v6, %v1347_v7 }
 0x14f   : > { %v2344_v14 = vpop.f32.mrb[36].mxu1  ;;  %v2281_v15 = vpop.f32.mrb[37].mxu0  ;;  %1505 = vadd.xlane.f32.xlu0 %v1504_v10 }
 0x150   : > { %v2282_v16 = vadd.f32 %v2281_v15, %v2280_v9  ;;  %v2345_v17 = vpop.f32.mrb[37].mxu1  ;;  %v2283_v11 = vpop.f32.mrb[38].mxu0  ;;  %v1507_v26 = vsel %vm1503_vm0, %v2881_v12, 0.0 }
 0x151   : > { %v2346_v18 = vadd.f32 %v2345_v17, %v2344_v14  ;;  %v2347_v20 = vpop.f32.mrb[38].mxu1  ;;  %v2284_v22 = vpop.f32.mrb[39].mxu0 }
 0x152   : > { %v1352_v23 = vadd.f32 %v2282_v16, %v2847_v25  ;;  %v2285_v13 = vadd.f32 %v2284_v22, %v2283_v11  ;;  %v2348_v24 = vpop.f32.mrb[39].mxu1 }
 0x153   : > { %v2349_v28 = vadd.f32 %v2348_v24, %v2347_v20  ;;  %1508 = vadd.xlane.f32.xlu0 %v1507_v26 }
 0x154   : > { %v1355_v29 = vadd.f32 %v2285_v13, %v2849_v27  ;;  %v2887_v30 = vadd.f32 %v2346_v18, %v1352_v23 }
 0x156   : > { %v2286_v31 = vpop.f32.mrb[40].mxu0  ;;  %v1510_v32 = vsel %vm1503_vm0, %v2887_v30, 0.0  ;;  %v2891_v33 = vadd.f32 %v2349_v28, %v1355_v29 }
 0x157   : > { %v2350_v34 = vpop.f32.mrb[40].mxu1  ;;  %v2287_v36 = vpop.f32.mrb[41].mxu0  ;;  %1511 = vadd.xlane.f32.xlu1 %v1510_v32 }
 0x158   : > { %v2288_v25 = vadd.f32 %v2287_v36, %v2286_v31  ;;  %v2351_v38 = vpop.f32.mrb[41].mxu1  ;;  %v2289_v40 = vpop.f32.mrb[42].mxu0  ;;  %v1513_v47 = vsel %vm1503_vm0, %v2891_v33, 0.0 }
 0x159   : > { %v2352_v42 = vadd.f32 %v2351_v38, %v2350_v34  ;;  %v2353_v43 = vpop.f32.mrb[42].mxu1  ;;  %v2290_v44 = vpop.f32.mrb[43].mxu0 }
 0x15a   : > { %v1360_v45 = vadd.f32 %v2288_v25, %v2851_v39  ;;  %v2291_v27 = vadd.f32 %v2290_v44, %v2289_v40  ;;  %v2354_v46 = vpop.f32.mrb[43].mxu1 }
 0x15b   : > { %v2355_v48 = vadd.f32 %v2354_v46, %v2353_v43  ;;  %1514 = vadd.xlane.f32.xlu1 %v1513_v47 }
 0x15c   : > { %v1363_v49 = vadd.f32 %v2291_v27, %v2853_v41  ;;  %v2897_v50 = vadd.f32 %v2352_v42, %v1360_v45 }
 0x15e   : > { %v2292_v52 = vpop.f32.mrb[44].mxu0  ;;  %v1516_v56 = vsel %vm1503_vm0, %v2897_v50, 0.0  ;;  %v2901_v57 = vadd.f32 %v2355_v48, %v1363_v49 }
 0x15f   : > { %v2356_v58 = vpop.f32.mrb[44].mxu1  ;;  %v2293_v59 = vpop.f32.mrb[45].mxu0  ;;  %1517 = vadd.xlane.f32.xlu0 %v1516_v56 }
 0x160   : > { %v2294_v39 = vadd.f32 %v2293_v59, %v2292_v52  ;;  %v2357_v60 = vpop.f32.mrb[45].mxu1  ;;  %v2295_v61 = vpop.f32.mrb[46].mxu0  ;;  %v1519_v62 = vsel %vm1503_vm0, %v2901_v57, 0.0 }
 0x161   : > { %v2358_v63 = vadd.f32 %v2357_v60, %v2356_v58  ;;  %v2359_v0 = vpop.f32.mrb[46].mxu1  ;;  %v2296_v41 = vpop.f32.mrb[47].mxu0  ;;  %1520 = vadd.xlane.f32.xlu1 %v1519_v62 }
 0x162   : > { %v1368_v1 = vadd.f32 %v2294_v39, %v2855_v53  ;;  %v2297_v2 = vadd.f32 %v2296_v41, %v2295_v61  ;;  %v2360_v4 = vpop.f32.mrb[47].mxu1 }
 0x163   : > { %v2361_v6 = vadd.f32 %v2360_v4, %v2359_v0 }
 0x164   : > { %v1371_v7 = vadd.f32 %v2297_v2, %v2857_v55  ;;  %v2907_v9 = vadd.f32 %v2358_v63, %v1368_v1 }
 0x166   : > { %v2298_v10 = vpop.f32.mrb[48].mxu0  ;;  %v1522_v14 = vsel %vm1503_vm0, %v2907_v9, 0.0  ;;  %v2911_v15 = vadd.f32 %v2361_v6, %v1371_v7 }
 0x167   : > { %v2362_v16 = vpop.f32.mrb[48].mxu1  ;;  %v2299_v17 = vpop.f32.mrb[49].mxu0  ;;  %1523 = vadd.xlane.f32.xlu0 %v1522_v14 }
 0x168   : > { %v2300_v11 = vadd.f32 %v2299_v17, %v2298_v10  ;;  %v2363_v18 = vpop.f32.mrb[49].mxu1  ;;  %v2301_v20 = vpop.f32.mrb[50].mxu0  ;;  %v1525_v53 = vsel %vm1503_vm0, %v2911_v15, 0.0 }
 0x169   : > { %v2364_v22 = vadd.f32 %v2363_v18, %v2362_v16  ;;  %v2365_v23 = vpop.f32.mrb[50].mxu1  ;;  %v2302_v55 = vpop.f32.mrb[51].mxu0  ;;  %1526 = vadd.xlane.f32.xlu1 %v1525_v53 }
 0x16a   : > { %v1376_v13 = vadd.f32 %v2300_v11, %v2859_v3  ;;  %v2303_v24 = vadd.f32 %v2302_v55, %v2301_v20  ;;  %v2366_v26 = vpop.f32.mrb[51].mxu1 }
 0x16b   : > { %v2367_v28 = vadd.f32 %v2366_v26, %v2365_v23 }
 0x16c   : > { %v1379_v29 = vadd.f32 %v2303_v24, %v2861_v5  ;;  %v2917_v31 = vadd.f32 %v2364_v22, %v1376_v13 }
 0x16e   : > { %v2304_v32 = vpop.f32.mrb[52].mxu0  ;;  %v1528_v34 = vsel %vm1503_vm0, %v2917_v31, 0.0  ;;  %v2921_v36 = vadd.f32 %v2367_v28, %v1379_v29 }
 0x16f   : > { %v2368_v25 = vpop.f32.mrb[52].mxu1  ;;  %v2305_v38 = vpop.f32.mrb[53].mxu0  ;;  %1529 = vadd.xlane.f32.xlu0 %v1528_v34 }
 0x170   : > { %v2306_v40 = vadd.f32 %v2305_v38, %v2304_v32  ;;  %v2369_v42 = vpop.f32.mrb[53].mxu1  ;;  %v2307_v43 = vpop.f32.mrb[54].mxu0  ;;  %v1531_v3 = vsel %vm1503_vm0, %v2921_v36, 0.0 }
 0x171   : > { %v2370_v44 = vadd.f32 %v2369_v42, %v2368_v25  ;;  %v2371_v45 = vpop.f32.mrb[54].mxu1  ;;  %v2308_v5 = vpop.f32.mrb[55].mxu0  ;;  %1532 = vadd.xlane.f32.xlu1 %v1531_v3 }
 0x172   : > { %v1384_v27 = vadd.f32 %v2306_v40, %v2863_v19  ;;  %v2309_v46 = vadd.f32 %v2308_v5, %v2307_v43  ;;  %v2372_v47 = vpop.f32.mrb[55].mxu1 }
 0x173   : > { %v2373_v48 = vadd.f32 %v2372_v47, %v2371_v45 }
 0x174   : > { %v1387_v49 = vadd.f32 %v2309_v46, %v2865_v21  ;;  %v2927_v52 = vadd.f32 %v2370_v44, %v1384_v27 }
 0x176   : > { %v2310_v56 = vpop.f32.mrb[56].mxu0  ;;  %v1534_v58 = vsel %vm1503_vm0, %v2927_v52, 0.0  ;;  %v2931_v59 = vadd.f32 %v2373_v48, %v1387_v49 }
 0x177   : > { %v2374_v39 = vpop.f32.mrb[56].mxu1  ;;  %v2311_v60 = vpop.f32.mrb[57].mxu0  ;;  %1535 = vadd.xlane.f32.xlu0 %v1534_v58 }
 0x178   : > { %v2312_v61 = vadd.f32 %v2311_v60, %v2310_v56  ;;  %v2375_v62 = vpop.f32.mrb[57].mxu1  ;;  %v2313_v63 = vpop.f32.mrb[58].mxu0  ;;  %v1537_v19 = vsel %vm1503_vm0, %v2931_v59, 0.0 }
 0x179   : > { %v2376_v0 = vadd.f32 %v2375_v62, %v2374_v39  ;;  %v2377_v41 = vpop.f32.mrb[58].mxu1  ;;  %v2314_v21 = vpop.f32.mrb[59].mxu0  ;;  %1538 = vadd.xlane.f32.xlu1 %v1537_v19 }
 0x17a   : > { %v1392_v1 = vadd.f32 %v2312_v61, %v2867_v35  ;;  %v2315_v2 = vadd.f32 %v2314_v21, %v2313_v63  ;;  %v2378_v4 = vpop.f32.mrb[59].mxu1 }
 0x17b   : > { %v2379_v6 = vadd.f32 %v2378_v4, %v2377_v41 }
 0x17c   : > { %v1395_v7 = vadd.f32 %v2315_v2, %v2869_v37  ;;  %v2937_v10 = vadd.f32 %v2376_v0, %v1392_v1 }
 0x17e   : > { %v2316_v14 = vpop.f32.mrb[60].mxu0  ;;  %v1540_v16 = vsel %vm1503_vm0, %v2937_v10, 0.0  ;;  %v2941_v17 = vadd.f32 %v2379_v6, %v1395_v7 }
 0x17f   : > { %v2380_v11 = vpop.f32.mrb[60].mxu1  ;;  %v2317_v18 = vpop.f32.mrb[61].mxu0  ;;  %1541 = vadd.xlane.f32.xlu0 %v1540_v16 }
 0x180   : > { %v2318_v20 = vadd.f32 %v2317_v18, %v2316_v14  ;;  %v2381_v53 = vpop.f32.mrb[61].mxu1  ;;  %v2319_v22 = vpop.f32.mrb[62].mxu0  ;;  %v1543_v35 = vsel %vm1503_vm0, %v2941_v17, 0.0 }
 0x181   : > { %v2382_v23 = vadd.f32 %v2381_v53, %v2380_v11  ;;  %v2383_v55 = vpop.f32.mrb[62].mxu1  ;;  %v2320_v37 = vpop.f32.mrb[63].mxu0  ;;  %1544 = vadd.xlane.f32.xlu1 %v1543_v35 }
 0x182   : > { %v1400_v13 = vadd.f32 %v2318_v20, %v2871_v51  ;;  %v2321_v24 = vadd.f32 %v2320_v37, %v2319_v22  ;;  %v2384_v26 = vpop.f32.mrb[63].mxu1 }
 0x183   : > { %v2385_v28 = vadd.f32 %v2384_v26, %v2383_v55 }
 0x184   : > { %v1403_v29 = vadd.f32 %v2321_v24, %v2873_v54  ;;  %v2947_v32 = vadd.f32 %v2382_v23, %v1400_v13 }
 0x186   : > { %v1546_v34 = vsel %vm1503_vm0, %v2947_v32, 0.0  ;;  %v2951_v25 = vadd.f32 %v2385_v28, %v1403_v29 }
 0x187   : > { %1547 = vadd.xlane.f32.xlu0 %v1546_v34 }
 0x188   : > { %v1549_v38 = vsel %vm1503_vm0, %v2951_v25, 0.0 }
 0x189   : > { %1550 = vadd.xlane.f32.xlu1 %v1549_v38 }
 0x1dc   : > { %v1506_v40 = vpop.xlane.xlu0 %1505 }
 0x1dd   : > { %v1552_v42 = vmul.f32 0.11111111, %v1506_v40 }
 0x1df   : > { %v2956_v51 = vsub.f32 %v2877_v8, %v1552_v42 }
 0x1e0   : > { %v1509_v43 = vpop.xlane.xlu0 %1508 }
 0x1e1   : > { %v1553_v3 = vmul.f32 0.11111111, %v1509_v43  ;;  %v1584_v54 = vmul.f32 %v2956_v51, %v2956_v51 }
 0x1e3   : > { %v2961_v44 = vsub.f32 %v2881_v12, %v1553_v3  ;;  %v1600_v45 = vsel %vm1503_vm0, %v1584_v54, 0.0 }
 0x1e4   : > { %v1512_v5 = vpop.xlane.xlu1 %1511  ;;  %1601 = vadd.xlane.f32.xlu0 %v1600_v45 }
 0x1e5   : > { %v1554_v27 = vmul.f32 0.11111111, %v1512_v5  ;;  %v1585_v46 = vmul.f32 %v2961_v44, %v2961_v44 }
 0x1e7   : > { %v2967_v47 = vsub.f32 %v2887_v30, %v1554_v27  ;;  %v1603_v8 = vsel %vm1503_vm0, %v1585_v46, 0.0 }
 0x1e8   : > { %v1515_v48 = vpop.xlane.xlu1 %1514  ;;  %1604 = vadd.xlane.f32.xlu1 %v1603_v8 }
 0x1e9   : > { %v1555_v49 = vmul.f32 0.11111111, %v1515_v48  ;;  %v1586_v12 = vmul.f32 %v2967_v47, %v2967_v47 }
 0x1eb   : > { %v2973_v56 = vsub.f32 %v2891_v33, %v1555_v49  ;;  %v1606_v58 = vsel %vm1503_vm0, %v1586_v12, 0.0 }
 0x1ec   : > { %1607 = vadd.xlane.f32.xlu0 %v1606_v58  ;;  %v1518_v39 = vpop.xlane.xlu0 %1517 }
 0x1ed   : > { %v1556_v60 = vmul.f32 0.11111111, %v1518_v39  ;;  %v1587_v30 = vmul.f32 %v2973_v56, %v2973_v56 }
 0x1ee   : > { %v1521_v61 = vpop.xlane.xlu1 %1520 }
 0x1ef   : > { %v2979_v62 = vsub.f32 %v2897_v50, %v1556_v60  ;;  %v1557_v63 = vmul.f32 0.11111111, %v1521_v61  ;;  %v1609_v19 = vsel %vm1503_vm0, %v1587_v30, 0.0 }
 0x1f0   : > { %1610 = vadd.xlane.f32.xlu1 %v1609_v19 }
 0x1f1   : > { %v2983_v0 = vsub.f32 %v2901_v57, %v1557_v63  ;;  %v1588_v33 = vmul.f32 %v2979_v62, %v2979_v62 }
 0x1f3   : > { %v1612_v41 = vsel %vm1503_vm0, %v1588_v33, 0.0  ;;  %v1589_v21 = vmul.f32 %v2983_v0, %v2983_v0 }
 0x1f4   : > { %1613 = vadd.xlane.f32.xlu0 %v1612_v41  ;;  %v1524_v1 = vpop.xlane.xlu0 %1523 }
 0x1f5   : > { %v1558_v2 = vmul.f32 0.11111111, %v1524_v1  ;;  %v1615_v50 = vsel %vm1503_vm0, %v1589_v21, 0.0 }
 0x1f6   : > { %v1527_v4 = vpop.xlane.xlu1 %1526  ;;  %1616 = vadd.xlane.f32.xlu1 %v1615_v50 }
 0x1f7   : > { %v2992_v6 = vsub.f32 %v2907_v9, %v1558_v2  ;;  %v1559_v57 = vmul.f32 0.11111111, %v1527_v4 }
 0x1f9   : > { %v2995_v7 = vsub.f32 %v2911_v15, %v1559_v57  ;;  %v1590_v14 = vmul.f32 %v2992_v6, %v2992_v6 }
 0x1fb   : > { %v1618_v16 = vsel %vm1503_vm0, %v1590_v14, 0.0  ;;  %v1591_v11 = vmul.f32 %v2995_v7, %v2995_v7 }
 0x1fc   : > { %1619 = vadd.xlane.f32.xlu0 %v1618_v16  ;;  %v1530_v18 = vpop.xlane.xlu0 %1529 }
 0x1fd   : > { %v1560_v20 = vmul.f32 0.11111111, %v1530_v18  ;;  %v1621_v53 = vsel %vm1503_vm0, %v1591_v11, 0.0 }
 0x1fe   : > { %v1533_v22 = vpop.xlane.xlu1 %1532  ;;  %1622 = vadd.xlane.f32.xlu1 %v1621_v53 }
 0x1ff   : > { %v3004_v9 = vsub.f32 %v2917_v31, %v1560_v20  ;;  %v1561_v15 = vmul.f32 0.11111111, %v1533_v22 }
 0x201   : > { %v3007_v35 = vsub.f32 %v2921_v36, %v1561_v15  ;;  %v1592_v23 = vmul.f32 %v3004_v9, %v3004_v9 }
 0x203   : > { %v1624_v55 = vsel %vm1503_vm0, %v1592_v23, 0.0  ;;  %v1593_v37 = vmul.f32 %v3007_v35, %v3007_v35 }
 0x204   : > { %1625 = vadd.xlane.f32.xlu0 %v1624_v55  ;;  %v1536_v13 = vpop.xlane.xlu0 %1535 }
 0x205   : > { %v1562_v24 = vmul.f32 0.11111111, %v1536_v13  ;;  %v1627_v26 = vsel %vm1503_vm0, %v1593_v37, 0.0 }
 0x206   : > { %v1539_v28 = vpop.xlane.xlu1 %1538  ;;  %1628 = vadd.xlane.f32.xlu1 %v1627_v26 }
 0x207   : > { %v3016_v31 = vsub.f32 %v2927_v52, %v1562_v24  ;;  %v1563_v36 = vmul.f32 0.11111111, %v1539_v28 }
 0x209   : > { %v3019_v29 = vsub.f32 %v2931_v59, %v1563_v36  ;;  %v1594_v34 = vmul.f32 %v3016_v31, %v3016_v31 }
 0x20b   : > { %v1630_v38 = vsel %vm1503_vm0, %v1594_v34, 0.0  ;;  %v1595_v40 = vmul.f32 %v3019_v29, %v3019_v29 }
 0x20c   : > { %1631 = vadd.xlane.f32.xlu0 %v1630_v38  ;;  %v1542_v42 = vpop.xlane.xlu0 %1541 }
 0x20d   : > { %v1564_v43 = vmul.f32 0.11111111, %v1542_v42  ;;  %v1633_v3 = vsel %vm1503_vm0, %v1595_v40, 0.0 }
 0x20e   : > { %v1545_v54 = vpop.xlane.xlu1 %1544  ;;  %1634 = vadd.xlane.f32.xlu1 %v1633_v3 }
 0x20f   : > { %v3028_v52 = vsub.f32 %v2937_v10, %v1564_v43  ;;  %v1565_v59 = vmul.f32 0.11111111, %v1545_v54 }
 0x211   : > { %v3031_v45 = vsub.f32 %v2941_v17, %v1565_v59  ;;  %v1596_v5 = vmul.f32 %v3028_v52, %v3028_v52 }
 0x213   : > { %v1636_v27 = vsel %vm1503_vm0, %v1596_v5, 0.0  ;;  %v1597_v46 = vmul.f32 %v3031_v45, %v3031_v45 }
 0x214   : > { %1637 = vadd.xlane.f32.xlu0 %v1636_v27  ;;  %v1548_v8 = vpop.xlane.xlu0 %1547 }
 0x215   : > { %v1566_v48 = vmul.f32 0.11111111, %v1548_v8  ;;  %v1639_v49 = vsel %vm1503_vm0, %v1597_v46, 0.0 }
 0x216   : > { %v1551_v12 = vpop.xlane.xlu1 %1550  ;;  %1640 = vadd.xlane.f32.xlu1 %v1639_v49 }
 0x217   : > { %v3040_v10 = vsub.f32 %v2947_v32, %v1566_v48  ;;  %v1567_v17 = vmul.f32 0.11111111, %v1551_v12 }
 0x219   : > { %v3043_v58 = vsub.f32 %v2951_v25, %v1567_v17  ;;  %v1598_v39 = vmul.f32 %v3040_v10, %v3040_v10 }
 0x21b   : > { %v1642_v60 = vsel %vm1503_vm0, %v1598_v39, 0.0  ;;  %v1599_v30 = vmul.f32 %v3043_v58, %v3043_v58 }
 0x21c   : > { %1643 = vadd.xlane.f32.xlu0 %v1642_v60 }
 0x21d   : > { %v1645_v61 = vsel %vm1503_vm0, %v1599_v30, 0.0 }
 0x21e   : > { %1646 = vadd.xlane.f32.xlu1 %v1645_v61 }
 0x271   : > { %v1602_v63 = vpop.xlane.xlu0 %1601 }
 0x272   : > { %v1648_v19 = vmul.f32 0.11111111, %v1602_v63 }
 0x274   : > { %v1664_v32 = vadd.f32 1e-05, %v1648_v19 }
 0x275   : > { %v1605_v33 = vpop.xlane.xlu1 %1604 }
 0x276   : > { %2474 = vrsqrt.f32 %v1664_v32  ;;  %v1649_v25 = vmul.f32 0.11111111, %v1605_v33 }
 0x278   : > { %v1665_v41 = vadd.f32 1e-05, %v1649_v25 }
 0x279   : > { %v1608_v21 = vpop.xlane.xlu0 %1607 }
 0x27a   : > { %2476 = vrsqrt.f32 %v1665_v41  ;;  %v1650_v1 = vmul.f32 0.11111111, %v1608_v21 }
 0x27c   : > { %v1666_v2 = vadd.f32 1e-05, %v1650_v1 }
 0x27d   : > { %v1611_v50 = vpop.xlane.xlu1 %1610 }
 0x27e   : > { %2478 = vrsqrt.f32 %v1666_v2  ;;  %v1651_v4 = vmul.f32 0.11111111, %v1611_v50 }
 0x280   : > { %v2475_v57 = vpop.eup %2474  ;;  %v1667_v14 = vadd.f32 1e-05, %v1651_v4 }
 0x281   : > { %v1696_v16 = vmul.f32 %v2475_v57, %v2956_v51  ;;  %v1614_v11 = vpop.xlane.xlu0 %1613 }
 0x282   : > { %2480 = vrsqrt.f32 %v1667_v14  ;;  %v1652_v18 = vmul.f32 0.11111111, %v1614_v11 }
 0x283   : > { %vm1712_vm1 = vcmp.gt.f32.partialorder %v1696_v16, 0.0  ;;  %v1728_v20 = vmul.f32 0.2, %v1696_v16  ;;  %v1617_v53 = vpop.xlane.xlu1 %1616 }
 0x284   : > { %v2477_v22 = vpop.eup %2476  ;;  %v1668_v15 = vadd.f32 1e-05, %v1652_v18  ;;  %v1653_v23 = vmul.f32 0.11111111, %v1617_v53 }
 0x285   : > { %v1744_v55 = vsel %vm1712_vm1, %v1696_v16, %v1728_v20  ;;  %v1697_v51 = vmul.f32 %v2477_v22, %v2961_v44 }
 0x286   : > { %v2114_v37 = vpack.c.bf16 %v1744_v55, %v1744_v55  ;;  %2482 = vrsqrt.f32 %v1668_v15  ;;  %v1669_v13 = vadd.f32 1e-05, %v1653_v23 }
 0x287   : > { %vm1713_vm3 = vcmp.gt.f32.partialorder %v1697_v51, 0.0  ;;  %v1729_v24 = vmul.f32 0.2, %v1697_v51 }
 0x288   : > { %v2479_v26 = vpop.eup %2478  ;;  %1825 = vst.msk [vmem:[%s3056_s29] sm:$0xf] %vm1824_vm2, %v2114_v37  ;;  %2484 = vrsqrt.f32 %v1669_v13 }
 0x289   : > { %v1745_v28 = vsel %vm1713_vm3, %v1697_v51, %v1729_v24  ;;  %v1698_v36 = vmul.f32 %v2479_v26, %v2967_v47  ;;  %v1620_v34 = vpop.xlane.xlu0 %1619 }
 0x28a   : > { %v2115_v38 = vpack.c.bf16 %v1745_v28, %v1745_v28  ;;  %v1654_v40 = vmul.f32 0.11111111, %v1620_v34 }
 0x28b   : > { %vm1714_vm4 = vcmp.gt.f32.partialorder %v1698_v36, 0.0  ;;  %v1730_v42 = vmul.f32 0.2, %v1698_v36  ;;  %v1623_v44 = vpop.xlane.xlu1 %1622 }
 0x28c   : > { %v2481_v43 = vpop.eup %2480  ;;  %1826 = vst.msk [vmem:[%s3056_s29 + $0x4] sm:$0xf] %vm1824_vm2, %v2115_v38  ;;  %v1670_v3 = vadd.f32 1e-05, %v1654_v40  ;;  %v1655_v54 = vmul.f32 0.11111111, %v1623_v44 }
 0x28d   : > { %v1746_v59 = vsel %vm1714_vm4, %v1698_v36, %v1730_v42  ;;  %v1699_v5 = vmul.f32 %v2481_v43, %v2973_v56 }
 0x28e   : > { %v2116_v27 = vpack.c.bf16 %v1746_v59, %v1746_v59  ;;  %2486 = vrsqrt.f32 %v1670_v3  ;;  %v1671_v46 = vadd.f32 1e-05, %v1655_v54 }
 0x28f   : > { %vm1715_vm5 = vcmp.gt.f32.partialorder %v1699_v5, 0.0  ;;  %v1731_v47 = vmul.f32 0.2, %v1699_v5 }
 0x290   : > { %v2483_v8 = vpop.eup %2482  ;;  %1827 = vst.msk [vmem:[%s3056_s29 + $0x8] sm:$0xf] %vm1824_vm2, %v2116_v27  ;;  %2488 = vrsqrt.f32 %v1671_v46 }
 0x291   : > { %v1747_v48 = vsel %vm1715_vm5, %v1699_v5, %v1731_v47  ;;  %v1700_v49 = vmul.f32 %v2483_v8, %v2979_v62  ;;  %v1626_v12 = vpop.xlane.xlu0 %1625 }
 0x292   : > { %v2485_v17 = vpop.eup %2484  ;;  %v2117_v39 = vpack.c.bf16 %v1747_v48, %v1747_v48  ;;  %v1656_v60 = vmul.f32 0.11111111, %v1626_v12 }
 0x293   : > { %vm1716_vm6 = vcmp.gt.f32.partialorder %v1700_v49, 0.0  ;;  %v1732_v56 = vmul.f32 0.2, %v1700_v49  ;;  %v1701_v30 = vmul.f32 %v2485_v17, %v2983_v0  ;;  %v1629_v61 = vpop.xlane.xlu1 %1628 }
 0x294   : > { %1828 = vst.msk [vmem:[%s3056_s29 + $0xc] sm:$0xf] %vm1824_vm2, %v2117_v39  ;;  %v1672_v63 = vadd.f32 1e-05, %v1656_v60  ;;  %v1657_v19 = vmul.f32 0.11111111, %v1629_v61 }
 0x295   : > { %v1748_v32 = vsel %vm1716_vm6, %v1700_v49, %v1732_v56  ;;  %vm1717_vm7 = vcmp.gt.f32.partialorder %v1701_v30, 0.0  ;;  %v1733_v33 = vmul.f32 0.2, %v1701_v30 }
 0x296   : > { %v2118_v25 = vpack.c.bf16 %v1748_v32, %v1748_v32  ;;  %2490 = vrsqrt.f32 %v1672_v63  ;;  %v1673_v62 = vadd.f32 1e-05, %v1657_v19 }
 0x297   : > { %v1749_v41 = vsel %vm1717_vm7, %v1701_v30, %v1733_v33 }
 0x298   : > { %v2487_v21 = vpop.eup %2486  ;;  %1829 = vst.msk [vmem:[%s3056_s29 + $0x10] sm:$0xf] %vm1824_vm2, %v2118_v25  ;;  %v2119_v1 = vpack.c.bf16 %v1749_v41, %v1749_v41  ;;  %2492 = vrsqrt.f32 %v1673_v62 }
 0x299   : > { %v1702_v0 = vmul.f32 %v2487_v21, %v2992_v6  ;;  %v1632_v2 = vpop.xlane.xlu0 %1631 }
 0x29a   : > { %v2489_v50 = vpop.eup %2488  ;;  %1830 = vst.msk [vmem:[%s3056_s29 + $0x14] sm:$0xf] %vm1824_vm2, %v2119_v1  ;;  %v1658_v4 = vmul.f32 0.11111111, %v1632_v2 }
 0x29b   : > { %vm1718_vm8 = vcmp.gt.f32.partialorder %v1702_v0, 0.0  ;;  %v1734_v57 = vmul.f32 0.2, %v1702_v0  ;;  %v1703_v14 = vmul.f32 %v2489_v50, %v2995_v7  ;;  %v1635_v16 = vpop.xlane.xlu1 %1634 }
 0x29c   : > { %v1674_v11 = vadd.f32 1e-05, %v1658_v4  ;;  %v1659_v18 = vmul.f32 0.11111111, %v1635_v16 }
 0x29d   : > { %v1750_v20 = vsel %vm1718_vm8, %v1702_v0, %v1734_v57  ;;  %vm1719_vm9 = vcmp.gt.f32.partialorder %v1703_v14, 0.0  ;;  %v1735_v53 = vmul.f32 0.2, %v1703_v14 }
 0x29e   : > { %v2120_v22 = vpack.c.bf16 %v1750_v20, %v1750_v20  ;;  %2494 = vrsqrt.f32 %v1674_v11  ;;  %v1675_v6 = vadd.f32 1e-05, %v1659_v18 }
 0x29f   : > { %v1751_v15 = vsel %vm1719_vm9, %v1703_v14, %v1735_v53 }
 0x2a0   : > { %v2491_v23 = vpop.eup %2490  ;;  %1831 = vst.msk [vmem:[%s3056_s29 + $0x18] sm:$0xf] %vm1824_vm2, %v2120_v22  ;;  %v2121_v55 = vpack.c.bf16 %v1751_v15, %v1751_v15  ;;  %2496 = vrsqrt.f32 %v1675_v6 }
 0x2a1   : > { %v1704_v51 = vmul.f32 %v2491_v23, %v3004_v9  ;;  %v1638_v37 = vpop.xlane.xlu0 %1637 }
 0x2a2   : > { %v2493_v7 = vpop.eup %2492  ;;  %1832 = vst.msk [vmem:[%s3056_s29 + $0x1c] sm:$0xf] %vm1824_vm2, %v2121_v55  ;;  %v1660_v13 = vmul.f32 0.11111111, %v1638_v37 }
 0x2a3   : > { %vm1720_vm10 = vcmp.gt.f32.partialorder %v1704_v51, 0.0  ;;  %v1736_v24 = vmul.f32 0.2, %v1704_v51  ;;  %v1705_v26 = vmul.f32 %v2493_v7, %v3007_v35  ;;  %v1641_v28 = vpop.xlane.xlu1 %1640 }
 0x2a4   : > { %v1676_v36 = vadd.f32 1e-05, %v1660_v13  ;;  %v1661_v34 = vmul.f32 0.11111111, %v1641_v28 }
 0x2a5   : > { %v1752_v38 = vsel %vm1720_vm10, %v1704_v51, %v1736_v24  ;;  %vm1721_vm11 = vcmp.gt.f32.partialorder %v1705_v26, 0.0  ;;  %v1737_v40 = vmul.f32 0.2, %v1705_v26 }
 0x2a6   : > { %v2122_v42 = vpack.c.bf16 %v1752_v38, %v1752_v38  ;;  %2498 = vrsqrt.f32 %v1676_v36  ;;  %v1677_v9 = vadd.f32 1e-05, %v1661_v34 }
 0x2a7   : > { %v1753_v44 = vsel %vm1721_vm11, %v1705_v26, %v1737_v40 }
 0x2a8   : > { %v2495_v43 = vpop.eup %2494  ;;  %1833 = vst.msk [vmem:[%s3056_s29 + $0x20] sm:$0xf] %vm1824_vm2, %v2122_v42  ;;  %v2123_v3 = vpack.c.bf16 %v1753_v44, %v1753_v44  ;;  %2500 = vrsqrt.f32 %v1677_v9 }
 0x2a9   : > { %v1706_v54 = vmul.f32 %v2495_v43, %v3016_v31  ;;  %v1644_v59 = vpop.xlane.xlu0 %1643 }
 0x2aa   : > { %v2497_v35 = vpop.eup %2496  ;;  %1834 = vst.msk [vmem:[%s3056_s29 + $0x24] sm:$0xf] %vm1824_vm2, %v2123_v3  ;;  %v1662_v5 = vmul.f32 0.11111111, %v1644_v59 }
 0x2ab   : > { %vm1722_vm12 = vcmp.gt.f32.partialorder %v1706_v54, 0.0  ;;  %v1738_v27 = vmul.f32 0.2, %v1706_v54  ;;  %v1707_v46 = vmul.f32 %v2497_v35, %v3019_v29  ;;  %v1647_v47 = vpop.xlane.xlu1 %1646 }
 0x2ac   : > { %v1678_v8 = vadd.f32 1e-05, %v1662_v5  ;;  %v1663_v48 = vmul.f32 0.11111111, %v1647_v47 }
 0x2ad   : > { %v1754_v49 = vsel %vm1722_vm12, %v1706_v54, %v1738_v27  ;;  %vm1723_vm13 = vcmp.gt.f32.partialorder %v1707_v46, 0.0  ;;  %v1739_v12 = vmul.f32 0.2, %v1707_v46 }
 0x2ae   : > { %v2124_v17 = vpack.c.bf16 %v1754_v49, %v1754_v49  ;;  %2502 = vrsqrt.f32 %v1678_v8  ;;  %v1679_v31 = vadd.f32 1e-05, %v1663_v48 }
 0x2af   : > { %v1755_v39 = vsel %vm1723_vm13, %v1707_v46, %v1739_v12 }
 0x2b0   : > { %v2499_v60 = vpop.eup %2498  ;;  %1835 = vst.msk [vmem:[%s3056_s29 + $0x28] sm:$0xf] %vm1824_vm2, %v2124_v17  ;;  %v2125_v56 = vpack.c.bf16 %v1755_v39, %v1755_v39  ;;  %2504 = vrsqrt.f32 %v1679_v31 }
 0x2b1   : > { %v1708_v30 = vmul.f32 %v2499_v60, %v3028_v52 }
 0x2b2   : > { %v2501_v29 = vpop.eup %2500  ;;  %1836 = vst.msk [vmem:[%s3056_s29 + $0x2c] sm:$0xf] %vm1824_vm2, %v2125_v56 }
 0x2b3   : > { %vm1724_vm14 = vcmp.gt.f32.partialorder %v1708_v30, 0.0  ;;  %v1740_v61 = vmul.f32 0.2, %v1708_v30  ;;  %v1709_v63 = vmul.f32 %v2501_v29, %v3031_v45 }
 0x2b5   : > { %v1756_v19 = vsel %vm1724_vm14, %v1708_v30, %v1740_v61  ;;  %vm1725_vm15 = vcmp.gt.f32.partialorder %v1709_v63, 0.0  ;;  %v1741_v32 = vmul.f32 0.2, %v1709_v63 }
 0x2b6   : > { %v2126_v33 = vpack.c.bf16 %v1756_v19, %v1756_v19 }
 0x2b7   : > { %v1757_v25 = vsel %vm1725_vm15, %v1709_v63, %v1741_v32 }
 0x2b8   : > { %v2503_v62 = vpop.eup %2502  ;;  %1837 = vst.msk [vmem:[%s3056_s29 + $0x30] sm:$0xf] %vm1824_vm2, %v2126_v33  ;;  %v2127_v41 = vpack.c.bf16 %v1757_v25, %v1757_v25 }
 0x2b9   : > { %v1710_v52 = vmul.f32 %v2503_v62, %v3040_v10 }
 0x2ba   : > { %v2505_v21 = vpop.eup %2504  ;;  %1838 = vst.msk [vmem:[%s3056_s29 + $0x34] sm:$0xf] %vm1824_vm2, %v2127_v41 }
 0x2bb   : > { %vm1726_vm0 = vcmp.gt.f32.partialorder %v1710_v52, 0.0  ;;  %v1742_v1 = vmul.f32 0.2, %v1710_v52  ;;  %v1711_v45 = vmul.f32 %v2505_v21, %v3043_v58 }
 0x2bd   : > { %v1758_v0 = vsel %vm1726_vm0, %v1710_v52, %v1742_v1  ;;  %vm1727_vm1 = vcmp.gt.f32.partialorder %v1711_v45, 0.0  ;;  %v1743_v2 = vmul.f32 0.2, %v1711_v45 }
 0x2be   : > { %v2128_v50 = vpack.c.bf16 %v1758_v0, %v1758_v0 }
 0x2bf   : > { %v1759_v4 = vsel %vm1727_vm1, %v1711_v45, %v1743_v2 }
 0x2c0   : > { %1839 = vst.msk [vmem:[%s3056_s29 + $0x38] sm:$0xf] %vm1824_vm2, %v2128_v50  ;;  %v2129_v57 = vpack.c.bf16 %v1759_v4, %v1759_v4 }
 0x2c2   : > { %1840 = vst.msk [vmem:[%s3056_s29 + $0x3c] sm:$0xf] %vm1824_vm2, %v2129_v57 }
 0x2c3 PF: > { %s12_s11 = sadd.s32 1, %s2528_s11   ;;  %s3117_s9 = smov %s2524_s10 }
 0x2c4   : > { %p9_p5 = scmp.ge.s32.totalorder %s12_s11, 4   ;;  %s3118_s10 = smov %s3120_s12 }
 0x2c6   :  { %11 = sbr.rel (!%p9_p5) target bundleno = 2 (0x2), region = 61 }

// kernel: nlayer_discriminator_forward.9
= control target key start
LH: loop header
LB: loop body
LE: loop exit
PB: predicated region body
PF: predicated region fallthrough
CT: control target
= control target key end

     0   :  { %s2355_s14 = smov 0   ;;  %s2357_s15 = smov 0   ;;  %s2571_s0 = inlined_call_operand.vmem [shape: bf16[2,2048,4], index: 0, kind: input, shape index: {}]   ;;  %s2572_s1 = inlined_call_operand.vmem [shape: bf16[1,2048], index: 1, kind: input, shape index: {}]   ;;  %s2573_s2 = inlined_call_operand.<no memory space> [shape: f32[1,1], index: 2, kind: input, shape index: {}]   ;;  %s2574_s3 = inlined_call_operand.vmem [shape: f32[2,1,4], index: 3, kind: output, shape index: {}]  }
   0x1   :  { %v8_v0 = vstv %s2573_s2  ;;  %s2359_s16 = smov 0  }
   0x2   :  { %9 = vst [vmem:[#allocation2] sm:$0x1] %v8_v0 }
   0x3 LB: > { %s34_s2 = sadd.s32 1, %s2324_s15  ;;  %p1839_p0 = scmp.ge.s32.totalorder %s2328_s16, 1  ;;  %s2328_s16 = sphi %s2359_s16, %s15_s16   ;;  %s2324_s15 = sphi %s2357_s15, %s2576_s15   ;;  %s2320_s14 = sphi %s2355_s14, %s2575_s14  }
   0x4   : > { %p36_p1 = scmp.ge.s32.totalorder %s34_s2, 2  ;;  %p184_p2 = scmp.lt.s32.totalorder %s2328_s16, 3 }
   0x6   : > { %s2578_s2 = smov (%p36_p1, %s34_s2), 0  ;;  %p185_p3 = pnand %p1839_p0, %p184_p2 }
   0x7   : > { %p222_p4 = scmp.lt.s32.totalorder (!%p185_p3), %s2320_s14, 1  ;;  %v511_v1 = vlaneseq (!%p185_p3)  ;;  %v2330_v2 = vmov (!%p185_p3), 1966171168   ;;  %v2331_v4 = vmov (!%p185_p3), 0   ;;  %v247_v8 = vld [vmem:[%s2572_s1] sm:$0xff] (!%p185_p3)  ;;  %vm1719_vm0 = vcmask (!%p185_p3), 24576  }
   0x8   : > { %188 = sbr.rel (%p185_p3) target bundleno = 368 (0x170), region = 32  ;;  %v519_v3 = vunpack.c.l.s4 (!%p185_p3), %v2330_v2  ;;  %2175 = vset.pattern.permute.xlu0 (!%p185_p3), %v2331_v4  ;;  %v517_v33 = vcombine.high (!%p185_p3), %v247_v8, %v247_v8 }
   0x9   : > { %v505_v5 = vld [vmem:[#allocation2] sm:$0x1] (!%p185_p3)  ;;  %v2375_v6 = vshrl.u32 (!%p185_p3), %v511_v1, 7 }
   0xa   : > { %508 = vperm.xlu0 (!%p185_p3), %2175, %v505_v5   ;;  %v520_v7 = vunpack.c.0.s8 (!%p185_p3), %v519_v3 }
   0xc   : > { %v2387_v9 = vsub.s32 (!%p185_p3), %v520_v7, %v2375_v6 }
   0xe   : > { %v2392_v12 = vrot.slane (!%p185_p3), %v247_v8, %v2387_v9  ;;  %v2419_v38 = vrot.slane (!%p185_p3), %v517_v33, %v2387_v9  ;;  %v2456_v8 = vld [vmem:[%s2572_s1 + $0x8] sm:$0xff] (!%p185_p3) }
   0xf   : > { %s2580_s14 = smov (!%p222_p4, %s2320_s14), 1 }
  0x10   : > { %s1972_s17 = sshll.u32 %s2580_s14, 10  ;;  %v532_v15 = vcombine.high %v2392_v12, %v2392_v12  ;;  %v533_v43 = vcombine.high %v2419_v38, %v2419_v38  ;;  %v540_v46 = vrot.slane %v2392_v12, %v2387_v9  ;;  %s245_s27 = scalar_lea.vmem %s2574_s3, %s2580_s14 }
  0x11   : > { %s2384_s22 = scalar_lea.vmem %s2571_s0, %s1972_s17 }
  0x12   : > { %v2176_v10 = vld [vmem:[%s2384_s22 + $0x40] sm:$0xff]   ;;  %v2180_v16 = vld [vmem:[%s2384_s22 + $0x48] sm:$0xff]   ;;  %v554_v18 = vrot.slane %v532_v15, %v2387_v9  ;;  %v2184_v22 = vld [vmem:[%s2384_s22 + $0x50] sm:$0xff]   ;;  %v561_v49 = vrot.slane %v533_v43, %v2387_v9  ;;  %v562_v51 = vcombine.high %v540_v46, %v540_v46  ;;  %v2465_v15 = vrot.slane %v2456_v8, %v2387_v9 }
  0x13   : > { %v2177_v11 = vld [vmem:[%s2384_s22 + $0xc0] sm:$0xff]   ;;  %1973 = vmatprep.subr.bf16.mxu0 %v2176_v10  ;;  %v2181_v17 = vld [vmem:[%s2384_s22 + $0xc8] sm:$0xff]   ;;  %v2185_v23 = vld [vmem:[%s2384_s22 + $0xd0] sm:$0xff]  }
  0x14   : > { %v2178_v13 = vld [vmem:[%s2384_s22] sm:$0xff]   ;;  %1995 = vmatprep.subr.bf16.mxu1 %v2177_v11  ;;  %v2182_v19 = vld [vmem:[%s2384_s22 + $0x8] sm:$0xff]   ;;  %1431 = vmatprep.mubr.bf16.mxu0 %v554_v18  ;;  %v564_v21 = vcombine.high %v554_v18, %v554_v18  ;;  %v2186_v24 = vld [vmem:[%s2384_s22 + $0x10] sm:$0xff]   ;;  %v565_v55 = vcombine.high %v561_v49, %v561_v49 }
  0x15   : > { %v2179_v14 = vld [vmem:[%s2384_s22 + $0x80] sm:$0xff]   ;;  %1974 = vmatpush3.bf16.msra.mxu0 %v2178_v13  ;;  %v2183_v20 = vld [vmem:[%s2384_s22 + $0x88] sm:$0xff]   ;;  %v2187_v25 = vld [vmem:[%s2384_s22 + $0x90] sm:$0xff]  }
  0x16   : > { %1996 = vmatpush3.bf16.msra.mxu1 %v2179_v14  ;;  %1975 = vmatprep.subr.bf16.mxu0 %v2180_v16  ;;  %v2188_v26 = vld [vmem:[%s2384_s22 + $0x58] sm:$0xff]   ;;  %v2192_v30 = vld [vmem:[%s2384_s22 + $0x60] sm:$0xff]   ;;  %v2196_v35 = vld [vmem:[%s2384_s22 + $0x68] sm:$0xff]  }
  0x17   : > { %1997 = vmatprep.subr.bf16.mxu1 %v2181_v17  ;;  %1471 = vmatprep.mubr.bf16.mxu1 %v564_v21  ;;  %v2189_v27 = vld [vmem:[%s2384_s22 + $0xd8] sm:$0xff]   ;;  %v2193_v31 = vld [vmem:[%s2384_s22 + $0xe0] sm:$0xff]   ;;  %v2197_v36 = vld [vmem:[%s2384_s22 + $0xe8] sm:$0xff]  }
  0x18   : > { %v2190_v28 = vld [vmem:[%s2384_s22 + $0x18] sm:$0xff]   ;;  %v2194_v32 = vld [vmem:[%s2384_s22 + $0x20] sm:$0xff]   ;;  %v2198_v37 = vld [vmem:[%s2384_s22 + $0x28] sm:$0xff]  }
  0x19   : > { %1976 = vmatpush3.bf16.msra.mxu0 %v2182_v19  ;;  %v2191_v29 = vld [vmem:[%s2384_s22 + $0x98] sm:$0xff]   ;;  %v2195_v34 = vld [vmem:[%s2384_s22 + $0xa0] sm:$0xff]   ;;  %v2199_v39 = vld [vmem:[%s2384_s22 + $0xa8] sm:$0xff]  }
  0x1a   : > { %1998 = vmatpush3.bf16.msra.mxu1 %v2183_v20  ;;  %1977 = vmatprep.subr.bf16.mxu0 %v2184_v22  ;;  %v2200_v40 = vld [vmem:[%s2384_s22 + $0x70] sm:$0xff]   ;;  %v2204_v45 = vld [vmem:[%s2384_s22 + $0x78] sm:$0xff]   ;;  %v2209_v52 = vld [vmem:[%s2384_s22 + $0x140] sm:$0xff]   ;;  %v581_v20 = vcombine.high %v2465_v15, %v2465_v15 }
  0x1b   : > { %1999 = vmatprep.subr.bf16.mxu1 %v2185_v23  ;;  %v2201_v41 = vld [vmem:[%s2384_s22 + $0xf0] sm:$0xff]   ;;  %v2205_v47 = vld [vmem:[%s2384_s22 + $0xf8] sm:$0xff]   ;;  %v2210_v53 = vld [vmem:[%s2384_s22 + $0x1c0] sm:$0xff]   ;;  %v547_v23 = vrot.slane %v2419_v38, %v2387_v9 }
  0x1c   : > { %v2202_v42 = vld [vmem:[%s2384_s22 + $0x30] sm:$0xff]   ;;  %v2206_v48 = vld [vmem:[%s2384_s22 + $0x38] sm:$0xff]   ;;  %v2211_v54 = vld [vmem:[%s2384_s22 + $0x100] sm:$0xff]  }
  0x1d   : > { %1978 = vmatpush3.bf16.msra.mxu0 %v2186_v24  ;;  %v2203_v44 = vld [vmem:[%s2384_s22 + $0xb0] sm:$0xff]   ;;  %v2207_v50 = vld [vmem:[%s2384_s22 + $0xb8] sm:$0xff]   ;;  %v2212_v56 = vld [vmem:[%s2384_s22 + $0x180] sm:$0xff]  }
  0x1e   : > { %2000 = vmatpush3.bf16.msra.mxu1 %v2187_v25  ;;  %1979 = vmatprep.subr.bf16.mxu0 %v2188_v26  ;;  %v2213_v57 = vld [vmem:[%s2384_s22 + $0x148] sm:$0xff]   ;;  %v2217_v61 = vld [vmem:[%s2384_s22 + $0x150] sm:$0xff]   ;;  %v2221_v1 = vld [vmem:[%s2384_s22 + $0x158] sm:$0xff]   ;;  %v603_v26 = vrot.slane %v581_v20, %v2387_v9 }
  0x1f   : > { %2001 = vmatprep.subr.bf16.mxu1 %v2189_v27  ;;  %v2214_v58 = vld [vmem:[%s2384_s22 + $0x1c8] sm:$0xff]   ;;  %v2218_v62 = vld [vmem:[%s2384_s22 + $0x1d0] sm:$0xff]   ;;  %v2222_v2 = vld [vmem:[%s2384_s22 + $0x1d8] sm:$0xff]  }
  0x20   : > { %v2215_v59 = vld [vmem:[%s2384_s22 + $0x108] sm:$0xff]   ;;  %v2219_v63 = vld [vmem:[%s2384_s22 + $0x110] sm:$0xff]   ;;  %v2223_v3 = vld [vmem:[%s2384_s22 + $0x118] sm:$0xff]  }
  0x21   : > { %1980 = vmatpush3.bf16.msra.mxu0 %v2190_v28  ;;  %v2216_v60 = vld [vmem:[%s2384_s22 + $0x188] sm:$0xff]   ;;  %v2220_v0 = vld [vmem:[%s2384_s22 + $0x190] sm:$0xff]   ;;  %v2224_v4 = vld [vmem:[%s2384_s22 + $0x198] sm:$0xff]   ;;  %v563_v28 = vcombine.high %v547_v23, %v547_v23 }
  0x22   : > { %2002 = vmatpush3.bf16.msra.mxu1 %v2191_v29  ;;  %1981 = vmatprep.subr.bf16.mxu0 %v2192_v30  ;;  %v2225_v5 = vld [vmem:[%s2384_s22 + $0x160] sm:$0xff]   ;;  %v2229_v12 = vld [vmem:[%s2384_s22 + $0x168] sm:$0xff]   ;;  %v2233_v17 = vld [vmem:[%s2384_s22 + $0x170] sm:$0xff]  }
  0x23   : > { %2003 = vmatprep.subr.bf16.mxu1 %v2193_v31  ;;  %v2226_v7 = vld [vmem:[%s2384_s22 + $0x1e0] sm:$0xff]   ;;  %v2230_v13 = vld [vmem:[%s2384_s22 + $0x1e8] sm:$0xff]   ;;  %v2234_v18 = vld [vmem:[%s2384_s22 + $0x1f0] sm:$0xff]  }
  0x24   : > { %v2227_v10 = vld [vmem:[%s2384_s22 + $0x120] sm:$0xff]   ;;  %v2231_v14 = vld [vmem:[%s2384_s22 + $0x128] sm:$0xff]   ;;  %v2235_v19 = vld [vmem:[%s2384_s22 + $0x130] sm:$0xff]  }
  0x25   : > { %1982 = vmatpush3.bf16.msra.mxu0 %v2194_v32  ;;  %v2228_v11 = vld [vmem:[%s2384_s22 + $0x1a0] sm:$0xff]   ;;  %v2232_v16 = vld [vmem:[%s2384_s22 + $0x1a8] sm:$0xff]   ;;  %v2236_v21 = vld [vmem:[%s2384_s22 + $0x1b0] sm:$0xff]   ;;  %v613_v32 = vcombine.high %v603_v26, %v603_v26 }
  0x26   : > { %2004 = vmatpush3.bf16.msra.mxu1 %v2195_v34  ;;  %1983 = vmatprep.subr.bf16.mxu0 %v2196_v35  ;;  %v2237_v22 = vld [vmem:[%s2384_s22 + $0x178] sm:$0xff]   ;;  %v2241_v29 = vld [vmem:[%s2384_s22 + $0x240] sm:$0xff]   ;;  %v2245_v34 = vld [vmem:[%s2384_s22 + $0x248] sm:$0xff]  }
  0x27   : > { %2005 = vmatprep.subr.bf16.mxu1 %v2197_v36  ;;  %v2238_v24 = vld [vmem:[%s2384_s22 + $0x1f8] sm:$0xff]   ;;  %v2242_v30 = vld [vmem:[%s2384_s22 + $0x2c0] sm:$0xff]   ;;  %v2246_v35 = vld [vmem:[%s2384_s22 + $0x2c8] sm:$0xff]  }
  0x28   : > { %v2239_v25 = vld [vmem:[%s2384_s22 + $0x138] sm:$0xff]   ;;  %v2243_v31 = vld [vmem:[%s2384_s22 + $0x200] sm:$0xff]   ;;  %v2247_v36 = vld [vmem:[%s2384_s22 + $0x208] sm:$0xff]  }
  0x29   : > { %1984 = vmatpush3.bf16.msra.mxu0 %v2198_v37  ;;  %v2240_v27 = vld [vmem:[%s2384_s22 + $0x1b8] sm:$0xff]   ;;  %v2244_v33 = vld [vmem:[%s2384_s22 + $0x280] sm:$0xff]   ;;  %v2248_v37 = vld [vmem:[%s2384_s22 + $0x288] sm:$0xff]  }
  0x2a   : > { %2006 = vmatpush3.bf16.msra.mxu1 %v2199_v39  ;;  %1985 = vmatprep.subr.bf16.mxu0 %v2200_v40  ;;  %v2249_v38 = vld [vmem:[%s2384_s22 + $0x250] sm:$0xff]   ;;  %v2254_v43 = vld [vmem:[%s2384_s22 + $0x2d8] sm:$0xff]  }
  0x2b   : > { %2007 = vmatprep.subr.bf16.mxu1 %v2201_v41  ;;  %v2250_v39 = vld [vmem:[%s2384_s22 + $0x2d0] sm:$0xff]   ;;  %v2286_v20 = vld [vmem:[%s2384_s22 + $0x3d8] sm:$0xff]  }
  0x2c   : > { %v2251_v40 = vld [vmem:[%s2384_s22 + $0x210] sm:$0xff]  }
  0x2d   : > { %1986 = vmatpush3.bf16.msra.mxu0 %v2202_v42  ;;  %v2252_v41 = vld [vmem:[%s2384_s22 + $0x290] sm:$0xff]   ;;  %v2253_v42 = vld [vmem:[%s2384_s22 + $0x258] sm:$0xff]  }
  0x2e   : > { %2008 = vmatpush3.bf16.msra.mxu1 %v2203_v44  ;;  %1987 = vmatprep.subr.bf16.mxu0 %v2204_v45  ;;  %v2255_v44 = vld [vmem:[%s2384_s22 + $0x218] sm:$0xff]  }
  0x2f   : > { %2009 = vmatprep.subr.bf16.mxu1 %v2205_v47  ;;  %v2256_v45 = vld [vmem:[%s2384_s22 + $0x298] sm:$0xff]   ;;  %v2258_v47 = vld [vmem:[%s2384_s22 + $0x2e0] sm:$0xff]  }
  0x31   : > { %1988 = vmatpush3.bf16.msra.mxu0 %v2206_v48  ;;  %v2259_v48 = vld [vmem:[%s2384_s22 + $0x220] sm:$0xff]  }
  0x32   : > { %2010 = vmatpush3.bf16.msra.mxu1 %v2207_v50  ;;  %2017 = vmatprep.subr.bf16.mxu0 %v2209_v52  ;;  %v2260_v50 = vld [vmem:[%s2384_s22 + $0x2a0] sm:$0xff]   ;;  %v2262_v52 = vld [vmem:[%s2384_s22 + $0x2e8] sm:$0xff]  }
  0x33   : > { %2039 = vmatprep.subr.bf16.mxu1 %v2210_v53  ;;  %v2263_v53 = vld [vmem:[%s2384_s22 + $0x228] sm:$0xff]  }
  0x34   : > { %1432 = vmatmul.mubr.bf16.vlgmr.msra.gmra.mrb[0].mxu0 %v540_v46  ;;  %v2257_v46 = vld [vmem:[%s2384_s22 + $0x260] sm:$0xff]  }
  0x35   : > { %1472 = vmatmul.mubr.bf16.vlgmr.msra.gmra.mrb[0].mxu1 %v562_v51  ;;  %2018 = vmatpush3.bf16.msra.mxu0 %v2211_v54  ;;  %v2261_v51 = vld [vmem:[%s2384_s22 + $0x268] sm:$0xff]  }
  0x36   : > { %2040 = vmatpush3.bf16.msra.mxu1 %v2212_v56  ;;  %1511 = vmatprep.mubr.bf16.mxu0 %v561_v49  ;;  %v566_v49 = vcombine.high %v2456_v8, %v2456_v8  ;;  %v2265_v56 = vld [vmem:[%s2384_s22 + $0x270] sm:$0xff]  }
  0x37   : > { %2019 = vmatprep.subr.bf16.mxu0 %v2213_v57  ;;  %1551 = vmatprep.mubr.bf16.mxu1 %v565_v55  ;;  %v2264_v55 = vld [vmem:[%s2384_s22 + $0x2a8] sm:$0xff]   ;;  %v2266_v57 = vld [vmem:[%s2384_s22 + $0x2f0] sm:$0xff]  }
  0x38   : > { %2041 = vmatprep.subr.bf16.mxu1 %v2214_v58  ;;  %v2507_v54 = vrot.slane %v566_v49, %v2387_v9  ;;  %v2267_v58 = vld [vmem:[%s2384_s22 + $0x230] sm:$0xff]  }
  0x39   : > { %2020 = vmatpush3.bf16.msra.mxu0 %v2215_v59 }
  0x3a   : > { %2042 = vmatpush3.bf16.msra.mxu1 %v2216_v60  ;;  %2021 = vmatprep.subr.bf16.mxu0 %v2217_v61  ;;  %v582_v59 = vcombine.high %v2507_v54, %v2507_v54  ;;  %v2268_v60 = vld [vmem:[%s2384_s22 + $0x2b0] sm:$0xff]   ;;  %v2269_v61 = vld [vmem:[%s2384_s22 + $0x278] sm:$0xff]  }
  0x3b   : > { %2043 = vmatprep.subr.bf16.mxu1 %v2218_v62  ;;  %v589_v62 = vrot.slane %v2465_v15, %v2387_v9  ;;  %v2281_v15 = vld [vmem:[%s2384_s22 + $0x350] sm:$0xff]  }
  0x3d   : > { %2022 = vmatpush3.bf16.msra.mxu0 %v2219_v63  ;;  %v2270_v63 = vld [vmem:[%s2384_s22 + $0x2f8] sm:$0xff]  }
  0x3e   : > { %2044 = vmatpush3.bf16.msra.mxu1 %v2220_v0  ;;  %2023 = vmatprep.subr.bf16.mxu0 %v2221_v1  ;;  %v2271_v0 = vld [vmem:[%s2384_s22 + $0x238] sm:$0xff]   ;;  %v610_v1 = vrot.slane %v582_v59, %v2387_v9 }
  0x3f   : > { %2045 = vmatprep.subr.bf16.mxu1 %v2222_v2  ;;  %v2272_v2 = vld [vmem:[%s2384_s22 + $0x2b8] sm:$0xff]  }
  0x40   : > { %v614_v8 = vcombine.high %v610_v1, %v610_v1 }
  0x41   : > { %2024 = vmatpush3.bf16.msra.mxu0 %v2223_v3  ;;  %v611_v3 = vcombine.high %v589_v62, %v589_v62 }
  0x42   : > { %2046 = vmatpush3.bf16.msra.mxu1 %v2224_v4  ;;  %2025 = vmatprep.subr.bf16.mxu0 %v2225_v5  ;;  %v2273_v4 = vld [vmem:[%s2384_s22 + $0x340] sm:$0xff]  }
  0x43   : > { %2047 = vmatprep.subr.bf16.mxu1 %v2226_v7  ;;  %v2274_v5 = vld [vmem:[%s2384_s22 + $0x3c0] sm:$0xff]  }
  0x44   : > { %v2275_v7 = vld [vmem:[%s2384_s22 + $0x300] sm:$0xff]  }
  0x45   : > { %2026 = vmatpush3.bf16.msra.mxu0 %v2227_v10  ;;  %v2276_v10 = vld [vmem:[%s2384_s22 + $0x380] sm:$0xff]  }
  0x46   : > { %2048 = vmatpush3.bf16.msra.mxu1 %v2228_v11  ;;  %2027 = vmatprep.subr.bf16.mxu0 %v2229_v12  ;;  %v2277_v11 = vld [vmem:[%s2384_s22 + $0x348] sm:$0xff]  }
  0x47   : > { %2049 = vmatprep.subr.bf16.mxu1 %v2230_v13  ;;  %v2278_v12 = vld [vmem:[%s2384_s22 + $0x3c8] sm:$0xff]  }
  0x48   : > { %v2279_v13 = vld [vmem:[%s2384_s22 + $0x308] sm:$0xff]  }
  0x49   : > { %2028 = vmatpush3.bf16.msra.mxu0 %v2231_v14  ;;  %v2280_v14 = vld [vmem:[%s2384_s22 + $0x388] sm:$0xff]  }
  0x4a   : > { %2050 = vmatpush3.bf16.msra.mxu1 %v2232_v16  ;;  %2029 = vmatprep.subr.bf16.mxu0 %v2233_v17  ;;  %v2282_v16 = vld [vmem:[%s2384_s22 + $0x3d0] sm:$0xff]  }
  0x4b   : > { %2051 = vmatprep.subr.bf16.mxu1 %v2234_v18  ;;  %v2283_v17 = vld [vmem:[%s2384_s22 + $0x310] sm:$0xff]  }
  0x4c   : > { %v2284_v18 = vld [vmem:[%s2384_s22 + $0x390] sm:$0xff]  }
  0x4d   : > { %2030 = vmatpush3.bf16.msra.mxu0 %v2235_v19  ;;  %v2285_v19 = vld [vmem:[%s2384_s22 + $0x358] sm:$0xff]  }
  0x4e   : > { %2052 = vmatpush3.bf16.msra.mxu1 %v2236_v21  ;;  %2031 = vmatprep.subr.bf16.mxu0 %v2237_v22  ;;  %v2287_v21 = vld [vmem:[%s2384_s22 + $0x318] sm:$0xff]  }
  0x4f   : > { %2053 = vmatprep.subr.bf16.mxu1 %v2238_v24  ;;  %v2288_v22 = vld [vmem:[%s2384_s22 + $0x398] sm:$0xff]   ;;  %v2290_v24 = vld [vmem:[%s2384_s22 + $0x3e0] sm:$0xff]  }
  0x51   : > { %2032 = vmatpush3.bf16.msra.mxu0 %v2239_v25  ;;  %v2291_v25 = vld [vmem:[%s2384_s22 + $0x320] sm:$0xff]  }
  0x52   : > { %2054 = vmatpush3.bf16.msra.mxu1 %v2240_v27  ;;  %2061 = vmatprep.subr.bf16.mxu0 %v2241_v29  ;;  %v2293_v27 = vld [vmem:[%s2384_s22 + $0x368] sm:$0xff]  }
  0x53   : > { %2083 = vmatprep.subr.bf16.mxu1 %v2242_v30  ;;  %v2295_v29 = vld [vmem:[%s2384_s22 + $0x328] sm:$0xff]  }
  0x54   : > { %1512 = vmatmul.mubr.bf16.vlgmr.msra.gmra.mrb[4].mxu0 %v547_v23  ;;  %v2289_v23 = vld [vmem:[%s2384_s22 + $0x360] sm:$0xff]   ;;  %v2296_v30 = vld [vmem:[%s2384_s22 + $0x3a8] sm:$0xff]  }
  0x55   : > { %1552 = vmatmul.mubr.bf16.vlgmr.msra.gmra.mrb[4].mxu1 %v563_v28  ;;  %2062 = vmatpush3.bf16.msra.mxu0 %v2243_v31  ;;  %v2294_v28 = vld [vmem:[%s2384_s22 + $0x3e8] sm:$0xff]   ;;  %v2297_v31 = vld [vmem:[%s2384_s22 + $0x370] sm:$0xff]  }
  0x56   : > { %2084 = vmatpush3.bf16.msra.mxu1 %v2244_v33  ;;  %1591 = vmatprep.mubr.bf16.mxu0 %v603_v26  ;;  %v2292_v26 = vld [vmem:[%s2384_s22 + $0x3a0] sm:$0xff]   ;;  %v2299_v33 = vld [vmem:[%s2384_s22 + $0x330] sm:$0xff]  }
  0x57   : > { %2063 = vmatprep.subr.bf16.mxu0 %v2245_v34  ;;  %1631 = vmatprep.mubr.bf16.mxu1 %v613_v32  ;;  %v2298_v32 = vld [vmem:[%s2384_s22 + $0x3f0] sm:$0xff]  }
  0x58   : > { %2085 = vmatprep.subr.bf16.mxu1 %v2246_v35  ;;  %v2300_v34 = vld [vmem:[%s2384_s22 + $0x3b0] sm:$0xff]   ;;  %v2301_v35 = vld [vmem:[%s2384_s22 + $0x378] sm:$0xff]  }
  0x59   : > { %2064 = vmatpush3.bf16.msra.mxu0 %v2247_v36  ;;  %v596_v36 = vrot.slane %v2507_v54, %v2387_v9 }
  0x5a   : > { %2086 = vmatpush3.bf16.msra.mxu1 %v2248_v37  ;;  %2065 = vmatprep.subr.bf16.mxu0 %v2249_v38  ;;  %v2302_v37 = vld [vmem:[%s2384_s22 + $0x3f8] sm:$0xff]  }
  0x5b   : > { %2087 = vmatprep.subr.bf16.mxu1 %v2250_v39  ;;  %v2303_v38 = vld [vmem:[%s2384_s22 + $0x338] sm:$0xff]  }
  0x5c   : > { %v2304_v39 = vld [vmem:[%s2384_s22 + $0x3b8] sm:$0xff]  }
  0x5d   : > { %2066 = vmatpush3.bf16.msra.mxu0 %v2251_v40  ;;  %v612_v40 = vcombine.high %v596_v36, %v596_v36 }
  0x5e   : > { %2088 = vmatpush3.bf16.msra.mxu1 %v2252_v41  ;;  %2067 = vmatprep.subr.bf16.mxu0 %v2253_v42  ;;  %v513_v41 = vsub.s32 0, %v2375_v6 }
  0x5f   : > { %2089 = vmatprep.subr.bf16.mxu1 %v2254_v43 }
  0x61   : > { %2068 = vmatpush3.bf16.msra.mxu0 %v2255_v44 }
  0x62   : > { %2090 = vmatpush3.bf16.msra.mxu1 %v2256_v45  ;;  %2069 = vmatprep.subr.bf16.mxu0 %v2257_v46 }
  0x63   : > { %2091 = vmatprep.subr.bf16.mxu1 %v2258_v47 }
  0x65   : > { %2070 = vmatpush3.bf16.msra.mxu0 %v2259_v48 }
  0x66   : > { %2092 = vmatpush3.bf16.msra.mxu1 %v2260_v50  ;;  %2071 = vmatprep.subr.bf16.mxu0 %v2261_v51 }
  0x67   : > { %2093 = vmatprep.subr.bf16.mxu1 %v2262_v52 }
  0x69   : > { %2072 = vmatpush3.bf16.msra.mxu0 %v2263_v53 }
  0x6a   : > { %2094 = vmatpush3.bf16.msra.mxu1 %v2264_v55  ;;  %2073 = vmatprep.subr.bf16.mxu0 %v2265_v56 }
  0x6b   : > { %2095 = vmatprep.subr.bf16.mxu1 %v2266_v57 }
  0x6d   : > { %2074 = vmatpush3.bf16.msra.mxu0 %v2267_v58 }
  0x6e   : > { %2096 = vmatpush3.bf16.msra.mxu1 %v2268_v60  ;;  %2075 = vmatprep.subr.bf16.mxu0 %v2269_v61 }
  0x6f   : > { %2097 = vmatprep.subr.bf16.mxu1 %v2270_v63 }
  0x71   : > { %2076 = vmatpush3.bf16.msra.mxu0 %v2271_v0 }
  0x72   : > { %2098 = vmatpush3.bf16.msra.mxu1 %v2272_v2  ;;  %2105 = vmatprep.subr.bf16.mxu0 %v2273_v4 }
  0x73   : > { %2127 = vmatprep.subr.bf16.mxu1 %v2274_v5 }
  0x74   : > { %1592 = vmatmul.mubr.bf16.vlgmr.msra.gmra.mrb[8].mxu0 %v589_v62 }
  0x75   : > { %1632 = vmatmul.mubr.bf16.vlgmr.msra.gmra.mrb[8].mxu1 %v611_v3  ;;  %2106 = vmatpush3.bf16.msra.mxu0 %v2275_v7 }
  0x76   : > { %2128 = vmatpush3.bf16.msra.mxu1 %v2276_v10  ;;  %1671 = vmatprep.mubr.bf16.mxu0 %v610_v1 }
  0x77   : > { %2107 = vmatprep.subr.bf16.mxu0 %v2277_v11  ;;  %1711 = vmatprep.mubr.bf16.mxu1 %v614_v8 }
  0x78   : > { %2129 = vmatprep.subr.bf16.mxu1 %v2278_v12 }
  0x79   : > { %2108 = vmatpush3.bf16.msra.mxu0 %v2279_v13 }
  0x7a   : > { %2130 = vmatpush3.bf16.msra.mxu1 %v2280_v14  ;;  %2109 = vmatprep.subr.bf16.mxu0 %v2281_v15 }
  0x7b   : > { %2131 = vmatprep.subr.bf16.mxu1 %v2282_v16 }
  0x7d   : > { %2110 = vmatpush3.bf16.msra.mxu0 %v2283_v17 }
  0x7e   : > { %2132 = vmatpush3.bf16.msra.mxu1 %v2284_v18  ;;  %2111 = vmatprep.subr.bf16.mxu0 %v2285_v19 }
  0x7f   : > { %2133 = vmatprep.subr.bf16.mxu1 %v2286_v20 }
  0x81   : > { %2112 = vmatpush3.bf16.msra.mxu0 %v2287_v21 }
  0x82   : > { %2134 = vmatpush3.bf16.msra.mxu1 %v2288_v22  ;;  %2113 = vmatprep.subr.bf16.mxu0 %v2289_v23 }
  0x83   : > { %2135 = vmatprep.subr.bf16.mxu1 %v2290_v24 }
  0x85   : > { %2114 = vmatpush3.bf16.msra.mxu0 %v2291_v25 }
  0x86   : > { %2136 = vmatpush3.bf16.msra.mxu1 %v2292_v26  ;;  %2115 = vmatprep.subr.bf16.mxu0 %v2293_v27 }
  0x87   : > { %2137 = vmatprep.subr.bf16.mxu1 %v2294_v28 }
  0x89   : > { %2116 = vmatpush3.bf16.msra.mxu0 %v2295_v29  ;;  %v509_v42 = vpop.permute.xlu0 %508 }
  0x8a   : > { %2138 = vmatpush3.bf16.msra.mxu1 %v2296_v30  ;;  %2117 = vmatprep.subr.bf16.mxu0 %v2297_v31  ;;  %v514_v44 = vrot.slane %v509_v42, %v513_v41 }
  0x8b   : > { %2139 = vmatprep.subr.bf16.mxu1 %v2298_v32 }
  0x8d   : > { %2118 = vmatpush3.bf16.msra.mxu0 %v2299_v33 }
  0x8e   : > { %2140 = vmatpush3.bf16.msra.mxu1 %v2300_v34  ;;  %2119 = vmatprep.subr.bf16.mxu0 %v2301_v35 }
  0x8f   : > { %2141 = vmatprep.subr.bf16.mxu1 %v2302_v37 }
  0x91   : > { %2120 = vmatpush3.bf16.msra.mxu0 %v2303_v38 }
  0x92   : > { %2142 = vmatpush3.bf16.msra.mxu1 %v2304_v39 }
  0x94   : > { %1672 = vmatmul.mubr.bf16.vlgmr.msra.gmra.mrb[12].mxu0 %v596_v36 }
  0x95   : > { %1712 = vmatmul.mubr.bf16.vlgmr.msra.gmra.mrb[12].mxu1 %v612_v40 }
 0x107   : > { %v1989_v43 = vpop.f32.mrb[0].mxu0 }
 0x108   : > { %v2011_v45 = vpop.f32.mrb[0].mxu1  ;;  %v1990_v46 = vpop.f32.mrb[1].mxu0 }
 0x109   : > { %v1991_v47 = vadd.f32 %v1990_v46, %v1989_v43  ;;  %v2012_v9 = vpop.f32.mrb[1].mxu1  ;;  %v1992_v48 = vpop.f32.mrb[2].mxu0 }
 0x10a   : > { %v2013_v49 = vadd.f32 %v2012_v9, %v2011_v45  ;;  %v2014_v50 = vpop.f32.mrb[2].mxu1  ;;  %v1993_v51 = vpop.f32.mrb[3].mxu0 }
 0x10b   : > { %v1434_v52 = vadd.f32 %v1991_v47, %v514_v44  ;;  %v2015_v53 = vpop.f32.mrb[3].mxu1 }
 0x10d   : > { %v1474_v54 = vadd.f32 %v2013_v49, %v1434_v52 }
 0x127   : > { %v2033_v55 = vpop.f32.mrb[4].mxu0 }
 0x128   : > { %v2055_v56 = vpop.f32.mrb[4].mxu1  ;;  %v2034_v57 = vpop.f32.mrb[5].mxu0 }
 0x129   : > { %v2035_v58 = vadd.f32 %v2034_v57, %v2033_v55  ;;  %v2056_v59 = vpop.f32.mrb[5].mxu1  ;;  %v2036_v6 = vpop.f32.mrb[6].mxu0 }
 0x12a   : > { %v2057_v60 = vadd.f32 %v2056_v59, %v2055_v56  ;;  %v2058_v61 = vpop.f32.mrb[6].mxu1  ;;  %v2037_v62 = vpop.f32.mrb[7].mxu0 }
 0x12b   : > { %v1514_v63 = vadd.f32 %v2035_v58, %v1474_v54  ;;  %v2059_v0 = vpop.f32.mrb[7].mxu1 }
 0x12d   : > { %v1554_v1 = vadd.f32 %v2057_v60, %v1514_v63 }
 0x147   : > { %v2077_v2 = vpop.f32.mrb[8].mxu0 }
 0x148   : > { %v2099_v3 = vpop.f32.mrb[8].mxu1  ;;  %v2078_v4 = vpop.f32.mrb[9].mxu0 }
 0x149   : > { %v2079_v5 = vadd.f32 %v2078_v4, %v2077_v2  ;;  %v2100_v7 = vpop.f32.mrb[9].mxu1  ;;  %v2080_v8 = vpop.f32.mrb[10].mxu0 }
 0x14a   : > { %v2101_v10 = vadd.f32 %v2100_v7, %v2099_v3  ;;  %v2102_v11 = vpop.f32.mrb[10].mxu1  ;;  %v2081_v12 = vpop.f32.mrb[11].mxu0 }
 0x14b   : > { %v1594_v13 = vadd.f32 %v2079_v5, %v1554_v1  ;;  %v2103_v14 = vpop.f32.mrb[11].mxu1 }
 0x14d   : > { %v1634_v15 = vadd.f32 %v2101_v10, %v1594_v13 }
 0x167   : > { %v2121_v16 = vpop.f32.mrb[12].mxu0 }
 0x168   : > { %v2143_v17 = vpop.f32.mrb[12].mxu1  ;;  %v2122_v18 = vpop.f32.mrb[13].mxu0 }
 0x169   : > { %v2123_v19 = vadd.f32 %v2122_v18, %v2121_v16  ;;  %v2144_v20 = vpop.f32.mrb[13].mxu1  ;;  %v2124_v21 = vpop.f32.mrb[14].mxu0 }
 0x16a   : > { %v2145_v22 = vadd.f32 %v2144_v20, %v2143_v17  ;;  %v2146_v23 = vpop.f32.mrb[14].mxu1  ;;  %v2125_v24 = vpop.f32.mrb[15].mxu0 }
 0x16b   : > { %v1674_v25 = vadd.f32 %v2123_v19, %v1634_v15  ;;  %v2147_v26 = vpop.f32.mrb[15].mxu1 }
 0x16d   : > { %v1714_v27 = vadd.f32 %v2145_v22, %v1674_v25 }
 0x16f   : > { %1720 = vst.msk [vmem:[%s245_s27] sm:$0x1] %vm1719_vm0, %v1714_v27 }
 0x170 PF: > { %s15_s16 = sadd.s32 1, %s2328_s16   ;;  %s2575_s14 = smov %s2324_s15 }
 0x171   : > { %p12_p5 = scmp.ge.s32.totalorder %s15_s16, 4   ;;  %s2576_s15 = smov %s2578_s2 }
 0x173   :  { %14 = sbr.rel (!%p12_p5) target bundleno = 3 (0x3), region = 68 }

</bundles_post_ra>
